<compile_context>
chip_gen: v5e
topology: v5e:2x2
jax: 0.10.0
libtpu: 0.0.40
codegen_flags: <defaults>
</compile_context>

<pallas_src>
import functools

import jax
import jax.numpy as jnp
from jax.experimental import pallas as pl
from jax.experimental.pallas import tpu as pltpu


# ----------------------------------------------------------------------------
# Pallas kernel: accumulate M = sum_k S_k @ D_k^T over K tiles.
# S, D are (R, N) bf16 with R = B * sum(C_i); the output (R, R) f32 block is
# resident across the reduction grid and used directly as the accumulator.
# ----------------------------------------------------------------------------
def _stacked_gram_kernel(s_ref, d_ref, o_ref):
    k = pl.program_id(0)

    @pl.when(k == 0)
    def _():
        o_ref[...] = jnp.zeros_like(o_ref)

    # Contract the last dims of both operands: S @ D^T without materializing
    # a transpose (K streams on lanes for both operands, MXU accumulates f32).
    dims = (((1,), (1,)), ((), ()))
    o_ref[...] += jax.lax.dot_general(
        s_ref[...], d_ref[...], dims, preferred_element_type=jnp.float32)


def _pick_tn(n, rows, bytes_per_el=2, target_bytes=512 * 1024):
    """Largest divisor of n that is a multiple of 128 and keeps one operand
    block under target_bytes; falls back to the full dimension (block == full
    array dim, which Pallas always accepts)."""
    if n % 128 != 0:
        return n
    cap = max(128, target_bytes // max(1, rows * bytes_per_el))
    best = 128
    for tn in range(128, min(n, cap) + 1, 128):
        if n % tn == 0:
            best = tn
    return best


def gram_absdiff_loss_term(feats, recon_feats):
    """Sum over the given (same-spatial-size) tap layers of
         mean_{b,i,j} | gram(f)[b,i,j] - gram(r)[b,i,j] | / (H*W)
    computed with a single Pallas matmul kernel per call."""
    B, _, H, W = feats[0].shape
    N = H * W
    chans = [int(f.shape[1]) for f in feats]
    ctot = sum(chans)
    R = B * ctot

    f_cat = feats[0] if len(feats) == 1 else jnp.concatenate(feats, axis=1)
    r_cat = recon_feats[0] if len(recon_feats) == 1 else jnp.concatenate(
        recon_feats, axis=1)

    f32 = f_cat.astype(jnp.float32).reshape(R, N)
    r32 = r_cat.astype(jnp.float32).reshape(R, N)
    # Sum/difference at f32 precision BEFORE the bf16 cast: D carries the
    # (possibly tiny) reconstruction error, so it must not be formed from two
    # independently bf16-quantized near-equal tensors.
    s = (f32 + r32).astype(jnp.bfloat16)
    d = (f32 - r32).astype(jnp.bfloat16)

    tn = _pick_tn(N, R)
    nk = N // tn

    cost = pl.CostEstimate(
        flops=2 * R * R * N,
        transcendentals=0,
        bytes_accessed=2 * R * N * 2 + R * R * 4,
    )

    m = pl.pallas_call(
        _stacked_gram_kernel,
        out_shape=jax.ShapeDtypeStruct((R, R), jnp.float32),
        grid_spec=pltpu.PrefetchScalarGridSpec(
            num_scalar_prefetch=0,
            grid=(nk,),
            in_specs=[
                pl.BlockSpec((R, tn), lambda k: (0, k)),
                pl.BlockSpec((R, tn), lambda k: (0, k)),
            ],
            out_specs=pl.BlockSpec((R, R), lambda k: (0, 0)),
        ),
        compiler_params=pltpu.CompilerParams(
            dimension_semantics=("arbitrary",)),
        cost_estimate=cost,
    )(s, d)

    # Tiny JAX epilogue on the (R, R) result: for each batch b and tap layer
    # with channel count c, the diagonal (c, c) block M_bb satisfies
    #   gram(f)_b - gram(r)_b = 0.5 * (M_bb + M_bb^T).
    loss = jnp.float32(0.0)
    off = 0
    for c in chans:
        seg_sum = jnp.float32(0.0)
        for b in range(B):
            base = b * ctot + off
            blk = m[base:base + c, base:base + c]
            g = 0.5 * (blk + blk.T)
            seg_sum = seg_sum + jnp.sum(jnp.abs(g))
        # torch.mean over (B, c, c) elements, then / (H*W).
        loss = loss + seg_sum / (B * c * c) / (H * W)
        off += c
    return loss


# ----------------------------------------------------------------------------
# Glue: nearest-neighbor resize (F.interpolate default mode='nearest').
# Exact parity with PyTorch for the integer-ratio 16 -> 224 upsample used here.
# ----------------------------------------------------------------------------
def resize_nearest(x, size):
    B, C, H, W = x.shape
    out_h, out_w = size
    rows = (jnp.arange(out_h) * H // out_h).astype(jnp.int32)
    cols = (jnp.arange(out_w) * W // out_w).astype(jnp.int32)
    return x[:, :, rows][:, :, :, cols]


# ----------------------------------------------------------------------------
# Glue: deterministic VGG16-like feature extractor (channels scaled /16),
# run in f32 so the gram kernel's S/D are formed from full-precision features.
# Module indexing mirrors torchvision vgg16.features: [conv, relu, ..., 'M',...]
# so layer indices [0, 9, 13, 17] pick the same structural positions.
# ----------------------------------------------------------------------------
_VGG_CFG = [4, 4, "M", 8, 8, "M", 16, 16, 16, "M", 32, 32, 32, "M",
            32, 32, 32, "M"]


def build_vgg_modules(key, cfg=_VGG_CFG, in_ch=3):
    modules = []
    for v in cfg:
        if v == "M":
            modules.append(("pool", None, None))
        else:
            key, k_w, k_b = jax.random.split(key, 3)
            fan_in = in_ch * 9
            W = jax.random.normal(k_w, (v, in_ch, 3, 3), jnp.float32)
            W = W / jnp.sqrt(jnp.float32(fan_in))
            b = 0.01 * jax.random.normal(k_b, (v,), jnp.float32)
            modules.append(("conv", W, b))
            modules.append(("relu", None, None))
            in_ch = v
    return modules


def vgg_features(x, modules, layers):
    x = x.astype(jnp.float32)
    feats = {}
    max_layer = max(layers)
    for i, (kind, W, b) in enumerate(modules):
        if kind == "conv":
            y = jax.lax.conv_general_dilated(
                x, W, window_strides=(1, 1), padding=((1, 1), (1, 1)),
                dimension_numbers=("NCHW", "OIHW", "NCHW"),
                preferred_element_type=jnp.float32)
            x = y + b[None, :, None, None]
        elif kind == "relu":
            x = jnp.maximum(x, 0.0)
        else:  # maxpool 2x2 stride 2
            x = jax.lax.reduce_window(
                x, jnp.array(-jnp.inf, dtype=x.dtype), jax.lax.max,
                window_dimensions=(1, 1, 2, 2),
                window_strides=(1, 1, 2, 2), padding="VALID")
        if i in layers:
            feats[i] = x
        if i >= max_layer:
            break
    return [feats[l] for l in layers]


# ----------------------------------------------------------------------------
# StyleLoss forward.
# ----------------------------------------------------------------------------
def style_loss(imgs, recon_imgs, modules, weight=1.0, layers=(0, 9, 13, 17)):
    imgs = resize_nearest(imgs, (224, 224))
    recon_imgs = resize_nearest(recon_imgs, (224, 224))
    feats = vgg_features(imgs, modules, layers)
    recon_feats = vgg_features(recon_imgs, modules, layers)

    # Group tap layers sharing the same spatial size so their channels stack
    # into one pallas_call (layers 9 & 13 at 56x56 merge -> 3 calls, not 4).
    groups = {}
    for f, r in zip(feats, recon_feats):
        groups.setdefault((f.shape[2], f.shape[3]), []).append((f, r))

    loss = jnp.float32(0.0)
    for _, pairs in groups.items():
        fs = [p[0] for p in pairs]
        rs = [p[1] for p in pairs]
        loss = loss + gram_absdiff_loss_term(fs, rs)
    return weight * loss


if __name__ == "__main__":
    key = jax.random.PRNGKey(0)
    k_params, k_img, k_rec = jax.random.split(key, 3)

    modules = build_vgg_modules(k_params)

    # Small inputs consistent with the module (NCHW RGB images).
    imgs = jax.random.normal(k_img, (2, 3, 16, 16), jnp.float32)
    recon_imgs = jax.random.normal(k_rec, (2, 3, 16, 16), jnp.float32)

    loss_fn = jax.jit(functools.partial(
        style_loss, modules=modules, weight=1.0, layers=(0, 9, 13, 17)))

    loss = loss_fn(imgs, recon_imgs)
    jax.block_until_ready(loss)
    assert loss.shape == () and jnp.isfinite(loss)
    print("KERNEL_OK")
</pallas_src>

<mosaic_0001>
module attributes {stable_mosaic.version = 11 : i64} {
  func.func @_stacked_gram_kernel(%arg0: i32, %arg1: memref<8x25088xbf16, #tpu.memory_space<vmem>>, %arg2: memref<8x25088xbf16, #tpu.memory_space<vmem>>, %arg3: memref<8x8xf32, #tpu.memory_space<vmem>>) attributes {dimension_semantics = [#tpu.dimension_semantics<arbitrary>], iteration_bounds = array<i64: 2>, scalar_prefetch = 0 : i64, scratch_operands = 0 : i64, tpu.core_type = #tpu.core_type<tc>, window_params = [{transform_indices = @transform_0, window_bounds = array<i64: 8, 25088>}, {transform_indices = @transform_1, window_bounds = array<i64: 8, 25088>}, {pipeline_mode = #tpu.pipeline_mode<synchronous>, transform_indices = @transform_2, window_bounds = array<i64: 8, 8>}]} {
    %c0_i32 = arith.constant 0 : i32
    %0 = arith.cmpi eq, %arg0, %c0_i32 : i32
    %1 = arith.extui %0 : i1 to i32
    %c0_i32_0 = arith.constant 0 : i32
    %2 = arith.cmpi ne, %1, %c0_i32_0 : i32
    scf.if %2 {
      %cst_8 = arith.constant 0.000000e+00 : f32
      %9 = vector.broadcast %cst_8 : f32 to vector<8x8xf32>
      %c0_9 = arith.constant 0 : index
      %c0_10 = arith.constant 0 : index
      %10 = vector.load %arg3[%c0_9, %c0_10] : memref<8x8xf32, #tpu.memory_space<vmem>>, vector<8x8xf32>
      tpu.vector_store %arg3[%c0_9, %c0_10], %9 {strides = array<i32>} : memref<8x8xf32, #tpu.memory_space<vmem>>, vector<8x8xf32>,
    } else {
    }
    %c0 = arith.constant 0 : index
    %c0_1 = arith.constant 0 : index
    %3 = vector.load %arg3[%c0, %c0_1] : memref<8x8xf32, #tpu.memory_space<vmem>>, vector<8x8xf32>
    %c0_2 = arith.constant 0 : index
    %c0_3 = arith.constant 0 : index
    %4 = vector.load %arg1[%c0_2, %c0_3] : memref<8x25088xbf16, #tpu.memory_space<vmem>>, vector<8x25088xbf16>
    %c0_4 = arith.constant 0 : index
    %c0_5 = arith.constant 0 : index
    %5 = vector.load %arg2[%c0_4, %c0_5] : memref<8x25088xbf16, #tpu.memory_space<vmem>>, vector<8x25088xbf16>
    %cst = arith.constant dense<0.000000e+00> : vector<8x8xf32>
    %6 = tpu.matmul %4, %5, %cst {dimension_numbers = #tpu.dot_dimension_numbers<[1], [1], [0], [0], [0, 0, 1, 0], [], []>} : vector<8x25088xbf16>, vector<8x25088xbf16>, vector<8x8xf32> -> vector<8x8xf32>
    %7 = arith.addf %3, %6 : vector<8x8xf32>
    %c0_6 = arith.constant 0 : index
    %c0_7 = arith.constant 0 : index
    %8 = vector.load %arg3[%c0_6, %c0_7] : memref<8x8xf32, #tpu.memory_space<vmem>>, vector<8x8xf32>
    tpu.vector_store %arg3[%c0_6, %c0_7], %7 {strides = array<i32>} : memref<8x8xf32, #tpu.memory_space<vmem>>, vector<8x8xf32>,
    return
  }
  func.func @transform_0(%arg0: i32) -> (i32, i32) {
    %c0_i32 = arith.constant 0 : i32
    %c0_i32_0 = arith.constant 0 : i32
    return %c0_i32, %arg0 : i32, i32
  }
  func.func @transform_1(%arg0: i32) -> (i32, i32) {
    %c0_i32 = arith.constant 0 : i32
    %c0_i32_0 = arith.constant 0 : i32
    return %c0_i32, %arg0 : i32, i32
  }
  func.func @transform_2(%arg0: i32) -> (i32, i32) {
    %c0_i32 = arith.constant 0 : i32
    %c0_i32_0 = arith.constant 0 : i32
    %c0_i32_1 = arith.constant 0 : i32
    return %c0_i32, %c0_i32_0 : i32, i32
  }
}

module attributes {stable_mosaic.version = 11 : i64} {
  func.func @_stacked_gram_kernel(%arg0: i32, %arg1: memref<48x3136xbf16, #tpu.memory_space<vmem>>, %arg2: memref<48x3136xbf16, #tpu.memory_space<vmem>>, %arg3: memref<48x48xf32, #tpu.memory_space<vmem>>) attributes {dimension_semantics = [#tpu.dimension_semantics<arbitrary>], iteration_bounds = array<i64: 1>, scalar_prefetch = 0 : i64, scratch_operands = 0 : i64, tpu.core_type = #tpu.core_type<tc>, window_params = [{transform_indices = @transform_0, window_bounds = array<i64: 48, 3136>}, {transform_indices = @transform_1, window_bounds = array<i64: 48, 3136>}, {pipeline_mode = #tpu.pipeline_mode<synchronous>, transform_indices = @transform_2, window_bounds = array<i64: 48, 48>}]} {
    %c0_i32 = arith.constant 0 : i32
    %0 = arith.cmpi eq, %arg0, %c0_i32 : i32
    %1 = arith.extui %0 : i1 to i32
    %c0_i32_0 = arith.constant 0 : i32
    %2 = arith.cmpi ne, %1, %c0_i32_0 : i32
    scf.if %2 {
      %cst_8 = arith.constant 0.000000e+00 : f32
      %9 = vector.broadcast %cst_8 : f32 to vector<48x48xf32>
      %c0_9 = arith.constant 0 : index
      %c0_10 = arith.constant 0 : index
      %10 = vector.load %arg3[%c0_9, %c0_10] : memref<48x48xf32, #tpu.memory_space<vmem>>, vector<48x48xf32>
      tpu.vector_store %arg3[%c0_9, %c0_10], %9 {strides = array<i32>} : memref<48x48xf32, #tpu.memory_space<vmem>>, vector<48x48xf32>,
    } else {
    }
    %c0 = arith.constant 0 : index
    %c0_1 = arith.constant 0 : index
    %3 = vector.load %arg3[%c0, %c0_1] : memref<48x48xf32, #tpu.memory_space<vmem>>, vector<48x48xf32>
    %c0_2 = arith.constant 0 : index
    %c0_3 = arith.constant 0 : index
    %4 = vector.load %arg1[%c0_2, %c0_3] : memref<48x3136xbf16, #tpu.memory_space<vmem>>, vector<48x3136xbf16>
    %c0_4 = arith.constant 0 : index
    %c0_5 = arith.constant 0 : index
    %5 = vector.load %arg2[%c0_4, %c0_5] : memref<48x3136xbf16, #tpu.memory_space<vmem>>, vector<48x3136xbf16>
    %cst = arith.constant dense<0.000000e+00> : vector<48x48xf32>
    %6 = tpu.matmul %4, %5, %cst {dimension_numbers = #tpu.dot_dimension_numbers<[1], [1], [0], [0], [0, 0, 1, 0], [], []>} : vector<48x3136xbf16>, vector<48x3136xbf16>, vector<48x48xf32> -> vector<48x48xf32>
    %7 = arith.addf %3, %6 : vector<48x48xf32>
    %c0_6 = arith.constant 0 : index
    %c0_7 = arith.constant 0 : index
    %8 = vector.load %arg3[%c0_6, %c0_7] : memref<48x48xf32, #tpu.memory_space<vmem>>, vector<48x48xf32>
    tpu.vector_store %arg3[%c0_6, %c0_7], %7 {strides = array<i32>} : memref<48x48xf32, #tpu.memory_space<vmem>>, vector<48x48xf32>,
    return
  }
  func.func @transform_0(%arg0: i32) -> (i32, i32) {
    %c0_i32 = arith.constant 0 : i32
    %c0_i32_0 = arith.constant 0 : i32
    return %c0_i32, %arg0 : i32, i32
  }
  func.func @transform_1(%arg0: i32) -> (i32, i32) {
    %c0_i32 = arith.constant 0 : i32
    %c0_i32_0 = arith.constant 0 : i32
    return %c0_i32, %arg0 : i32, i32
  }
  func.func @transform_2(%arg0: i32) -> (i32, i32) {
    %c0_i32 = arith.constant 0 : i32
    %c0_i32_0 = arith.constant 0 : i32
    %c0_i32_1 = arith.constant 0 : i32
    return %c0_i32, %c0_i32_0 : i32, i32
  }
}

module attributes {stable_mosaic.version = 11 : i64} {
  func.func @_stacked_gram_kernel(%arg0: i32, %arg1: memref<64x784xbf16, #tpu.memory_space<vmem>>, %arg2: memref<64x784xbf16, #tpu.memory_space<vmem>>, %arg3: memref<64x64xf32, #tpu.memory_space<vmem>>) attributes {dimension_semantics = [#tpu.dimension_semantics<arbitrary>], iteration_bounds = array<i64: 1>, scalar_prefetch = 0 : i64, scratch_operands = 0 : i64, tpu.core_type = #tpu.core_type<tc>, window_params = [{transform_indices = @transform_0, window_bounds = array<i64: 64, 784>}, {transform_indices = @transform_1, window_bounds = array<i64: 64, 784>}, {pipeline_mode = #tpu.pipeline_mode<synchronous>, transform_indices = @transform_2, window_bounds = array<i64: 64, 64>}]} {
    %c0_i32 = arith.constant 0 : i32
    %0 = arith.cmpi eq, %arg0, %c0_i32 : i32
    %1 = arith.extui %0 : i1 to i32
    %c0_i32_0 = arith.constant 0 : i32
    %2 = arith.cmpi ne, %1, %c0_i32_0 : i32
    scf.if %2 {
      %cst_8 = arith.constant 0.000000e+00 : f32
      %9 = vector.broadcast %cst_8 : f32 to vector<64x64xf32>
      %c0_9 = arith.constant 0 : index
      %c0_10 = arith.constant 0 : index
      %10 = vector.load %arg3[%c0_9, %c0_10] : memref<64x64xf32, #tpu.memory_space<vmem>>, vector<64x64xf32>
      tpu.vector_store %arg3[%c0_9, %c0_10], %9 {strides = array<i32>} : memref<64x64xf32, #tpu.memory_space<vmem>>, vector<64x64xf32>,
    } else {
    }
    %c0 = arith.constant 0 : index
    %c0_1 = arith.constant 0 : index
    %3 = vector.load %arg3[%c0, %c0_1] : memref<64x64xf32, #tpu.memory_space<vmem>>, vector<64x64xf32>
    %c0_2 = arith.constant 0 : index
    %c0_3 = arith.constant 0 : index
    %4 = vector.load %arg1[%c0_2, %c0_3] : memref<64x784xbf16, #tpu.memory_space<vmem>>, vector<64x784xbf16>
    %c0_4 = arith.constant 0 : index
    %c0_5 = arith.constant 0 : index
    %5 = vector.load %arg2[%c0_4, %c0_5] : memref<64x784xbf16, #tpu.memory_space<vmem>>, vector<64x784xbf16>
    %cst = arith.constant dense<0.000000e+00> : vector<64x64xf32>
    %6 = tpu.matmul %4, %5, %cst {dimension_numbers = #tpu.dot_dimension_numbers<[1], [1], [0], [0], [0, 0, 1, 0], [], []>} : vector<64x784xbf16>, vector<64x784xbf16>, vector<64x64xf32> -> vector<64x64xf32>
    %7 = arith.addf %3, %6 : vector<64x64xf32>
    %c0_6 = arith.constant 0 : index
    %c0_7 = arith.constant 0 : index
    %8 = vector.load %arg3[%c0_6, %c0_7] : memref<64x64xf32, #tpu.memory_space<vmem>>, vector<64x64xf32>
    tpu.vector_store %arg3[%c0_6, %c0_7], %7 {strides = array<i32>} : memref<64x64xf32, #tpu.memory_space<vmem>>, vector<64x64xf32>,
    return
  }
  func.func @transform_0(%arg0: i32) -> (i32, i32) {
    %c0_i32 = arith.constant 0 : i32
    %c0_i32_0 = arith.constant 0 : i32
    return %c0_i32, %arg0 : i32, i32
  }
  func.func @transform_1(%arg0: i32) -> (i32, i32) {
    %c0_i32 = arith.constant 0 : i32
    %c0_i32_0 = arith.constant 0 : i32
    return %c0_i32, %arg0 : i32, i32
  }
  func.func @transform_2(%arg0: i32) -> (i32, i32) {
    %c0_i32 = arith.constant 0 : i32
    %c0_i32_0 = arith.constant 0 : i32
    %c0_i32_1 = arith.constant 0 : i32
    return %c0_i32, %c0_i32_0 : i32, i32
  }
}

</mosaic_0001>

<bundles_post_ra>
// kernel: style_loss.3
= control target key start
LH: loop header
LB: loop body
LE: loop exit
PB: predicated region body
PF: predicated region fallthrough
CT: control target
= control target key end

     0   :  { %s4362_s9 = smov 0   ;;  %s4588_s0 = inlined_call_operand.vmem [shape: bf16[8,50176], index: 0, kind: input, shape index: {}]   ;;  %s4589_s1 = inlined_call_operand.vmem [shape: bf16[8,50176], index: 1, kind: input, shape index: {}]   ;;  %s4590_s2 = inlined_call_operand.vmem [shape: f32[8,8], index: 2, kind: output, shape index: {}]  }
   0x1 LB: > { %s4320_s10 = sadd.s32 4294967295, %s4344_s9   ;;  %p4323_p0 = scmp.ge.s32.totalorder %s4344_s9, 1  ;;  %s4344_s9 = sphi %s4362_s9, %s12_s9  }
   0x2   : > { %p119_p1 = scmp.lt.s32.totalorder %s4344_s9, 3 }
   0x4   : > { %p120_p2 = pnand %p4323_p0, %p119_p1 }
   0x5   : > { %s141_s11 = smul.u32 (!%p120_p2), 196, %s4320_s10  ;;  %p4326_p4 = scmp.ne.s32.totalorder (!%p120_p2), %s4320_s10, 0 }
   0x6   : > { %123 = sbr.rel (%p120_p2) target bundleno = 941 (0x3ad), region = 28 }
   0x7   : > { %p142_p3 = scmp.lt.s32.totalorder (!%p120_p2), %s141_s11, 391 }
   0xb   : > { %s4592_s11 = smov (!%p142_p3, %s141_s11), 391  ;;  %157 = sbr.rel (%p4326_p4) target bundleno = 18 (0x12), region = 32 }
   0xc   : > { %s4324_s12 = sshll.u32 %s4592_s11, 2 }
   0xd   : > { %s4373_s15 = scalar_lea.vmem %s4588_s0, %s4324_s12  ;;  %s4378_s18 = scalar_lea.vmem %s4589_s1, %s4324_s12 }
  0x10   : > { %vm158_vm0 = vcmask 64512   ;;  %v4346_v0 = vmov 0.0  }
  0x11   : > { %159 = vst.msk [vmem:[%s4590_s2] sm:$0xff] %vm158_vm0, %v4346_v0 }
  0x12 PF: > { %v259_v1 = vld [vmem:[%s4378_s18] sm:$0xff]  ;;  %v260_v2 = vld [vmem:[%s4378_s18 + $0x8] sm:$0xff]  ;;  %v262_v9 = vld [vmem:[%s4378_s18 + $0x18] sm:$0xff]  ;;  %vm4278_vm1 = vcmask 64512  }
  0x13   : > { %v1141_v3 = vunpack.c.l.b16 %v259_v1  ;;  %v1142_v4 = vunpack.c.h.b16 %v259_v1  ;;  %v1143_v5 = vunpack.c.l.b16 %v260_v2  ;;  %v1144_v6 = vunpack.c.h.b16 %v260_v2  ;;  %v161_v7 = vld [vmem:[%s4373_s15] sm:$0xff]  ;;  %v162_v8 = vld [vmem:[%s4373_s15 + $0x8] sm:$0xff]  ;;  %v261_v10 = vld [vmem:[%s4378_s18 + $0x10] sm:$0xff] }
  0x14   : > { %v455_v15 = vunpack.c.l.b16 %v161_v7  ;;  %v456_v16 = vunpack.c.h.b16 %v161_v7  ;;  %v457_v17 = vunpack.c.l.b16 %v162_v8  ;;  %v458_v18 = vunpack.c.h.b16 %v162_v8  ;;  %v264_v23 = vld [vmem:[%s4378_s18 + $0x28] sm:$0xff]  ;;  %v263_v24 = vld [vmem:[%s4378_s18 + $0x20] sm:$0xff]  ;;  %v163_v41 = vld [vmem:[%s4373_s15 + $0x10] sm:$0xff] }
  0x15   : > { %v1337_v11 = vpack.c.b16 %v1141_v3, %v1141_v3  ;;  %v1338_v12 = vpack.c.b16 %v1142_v4, %v1142_v4  ;;  %v1339_v13 = vpack.c.b16 %v1143_v5, %v1143_v5  ;;  %v1340_v14 = vpack.c.b16 %v1144_v6, %v1144_v6  ;;  %v164_v42 = vld [vmem:[%s4373_s15 + $0x18] sm:$0xff]  ;;  %v265_v46 = vld [vmem:[%s4378_s18 + $0x30] sm:$0xff]  ;;  %v165_v61 = vld [vmem:[%s4373_s15 + $0x20] sm:$0xff] }
  0x16   : > { %v1147_v19 = vunpack.c.l.b16 %v262_v9  ;;  %v1148_v20 = vunpack.c.h.b16 %v262_v9  ;;  %v1145_v21 = vunpack.c.l.b16 %v261_v10  ;;  %v1146_v22 = vunpack.c.h.b16 %v261_v10  ;;  %v266_v43 = vld [vmem:[%s4378_s18 + $0x38] sm:$0xff]  ;;  %v166_v62 = vld [vmem:[%s4373_s15 + $0x28] sm:$0xff]  ;;  %v267_v2 = vld [vmem:[%s4378_s18 + $0x40] sm:$0xff] }
  0x17   : > { %1736 = vmatpush.bf16.xpose.msra.mxu0 %v1337_v11  ;;  %1749 = vmatpush.bf16.xpose.msra.mxu1 %v1338_v12  ;;  %v651_v29 = vpack.c.b16 %v455_v15, %v455_v15  ;;  %v652_v30 = vpack.c.b16 %v456_v16, %v456_v16  ;;  %v653_v31 = vpack.c.b16 %v457_v17, %v457_v17  ;;  %v1151_v33 = vunpack.c.l.b16 %v264_v23  ;;  %v268_v63 = vld [vmem:[%s4378_s18 + $0x48] sm:$0xff]  ;;  %v167_v17 = vld [vmem:[%s4373_s15 + $0x30] sm:$0xff] }
  0x18   : > { %1762 = vmatpush.bf16.xpose.msra.mxu2 %v1339_v13  ;;  %1775 = vmatpush.bf16.xpose.msra.mxu3 %v1340_v14  ;;  %v1343_v25 = vpack.c.b16 %v1147_v19, %v1147_v19  ;;  %v1344_v26 = vpack.c.b16 %v1148_v20, %v1148_v20  ;;  %v1341_v27 = vpack.c.b16 %v1145_v21, %v1145_v21  ;;  %v1152_v34 = vunpack.c.h.b16 %v264_v23  ;;  %v270_v19 = vld [vmem:[%s4378_s18 + $0x58] sm:$0xff] }
  0x19   : > { %v1342_v28 = vpack.c.b16 %v1146_v22, %v1146_v22  ;;  %v654_v32 = vpack.c.b16 %v458_v18, %v458_v18  ;;  %v1149_v35 = vunpack.c.l.b16 %v263_v24  ;;  %v1150_v36 = vunpack.c.h.b16 %v263_v24  ;;  %v168_v18 = vld [vmem:[%s4373_s15 + $0x38] sm:$0xff]  ;;  %v269_v22 = vld [vmem:[%s4378_s18 + $0x50] sm:$0xff] }
  0x1a   : > { %v1347_v37 = vpack.c.b16 %v1151_v33, %v1151_v33  ;;  %v1348_v38 = vpack.c.b16 %v1152_v34, %v1152_v34  ;;  %v459_v44 = vunpack.c.l.b16 %v163_v41  ;;  %v460_v45 = vunpack.c.h.b16 %v163_v41 }
  0x1b   : > { %v1345_v39 = vpack.c.b16 %v1149_v35, %v1149_v35  ;;  %v1346_v40 = vpack.c.b16 %v1150_v36, %v1150_v36  ;;  %v461_v47 = vunpack.c.l.b16 %v164_v42  ;;  %v462_v48 = vunpack.c.h.b16 %v164_v42  ;;  %v271_v42 = vld [vmem:[%s4378_s18 + $0x60] sm:$0xff] }
  0x1c   : > { %v1155_v49 = vunpack.c.l.b16 %v266_v43  ;;  %v1156_v50 = vunpack.c.h.b16 %v266_v43  ;;  %v1153_v51 = vunpack.c.l.b16 %v265_v46  ;;  %v1154_v52 = vunpack.c.h.b16 %v265_v46 }
  0x1d   : > { %v655_v53 = vpack.c.b16 %v459_v44, %v459_v44  ;;  %v656_v54 = vpack.c.b16 %v460_v45, %v460_v45  ;;  %v657_v55 = vpack.c.b16 %v461_v47, %v461_v47  ;;  %v658_v56 = vpack.c.b16 %v462_v48, %v462_v48 }
  0x1e   : > { %1737 = vmatmul.bf16.vlgmr.msra.gmra.mxu0 %v651_v29  ;;  %1750 = vmatmul.bf16.vlgmr.msra.gmra.mxu1 %v652_v30  ;;  %v1351_v57 = vpack.c.b16 %v1155_v49, %v1155_v49  ;;  %v1352_v58 = vpack.c.b16 %v1156_v50, %v1156_v50  ;;  %v1349_v59 = vpack.c.b16 %v1153_v51, %v1153_v51  ;;  %v463_v0 = vunpack.c.l.b16 %v165_v61 }
  0x1f   : > { %1788 = vmatpush.bf16.xpose.msrb.mxu0 %v1341_v27  ;;  %1801 = vmatpush.bf16.xpose.msrb.mxu1 %v1342_v28  ;;  %v1350_v60 = vpack.c.b16 %v1154_v52, %v1154_v52  ;;  %v464_v1 = vunpack.c.h.b16 %v165_v61  ;;  %v465_v3 = vunpack.c.l.b16 %v166_v62  ;;  %v466_v4 = vunpack.c.h.b16 %v166_v62  ;;  %v273_v62 = vld [vmem:[%s4378_s18 + $0x70] sm:$0xff] }
  0x20   : > { %1814 = vmatpush.bf16.xpose.msrb.mxu2 %v1343_v25  ;;  %1827 = vmatpush.bf16.xpose.msrb.mxu3 %v1344_v26  ;;  %v1159_v5 = vunpack.c.l.b16 %v268_v63  ;;  %v1160_v6 = vunpack.c.h.b16 %v268_v63  ;;  %v1157_v7 = vunpack.c.l.b16 %v267_v2  ;;  %v1158_v8 = vunpack.c.h.b16 %v267_v2 }
  0x21   : > { %1763 = vmatmul.bf16.vlgmr.msra.gmra.mxu2 %v653_v31  ;;  %1776 = vmatmul.bf16.vlgmr.msra.gmra.mxu3 %v654_v32  ;;  %v659_v9 = vpack.c.b16 %v463_v0, %v463_v0  ;;  %v660_v10 = vpack.c.b16 %v464_v1, %v464_v1  ;;  %v661_v11 = vpack.c.b16 %v465_v3, %v465_v3  ;;  %v467_v20 = vunpack.c.l.b16 %v167_v17 }
  0x22   : > { %v662_v12 = vpack.c.b16 %v466_v4, %v466_v4  ;;  %v1355_v13 = vpack.c.b16 %v1159_v5, %v1159_v5  ;;  %v1356_v14 = vpack.c.b16 %v1160_v6, %v1160_v6  ;;  %v1353_v15 = vpack.c.b16 %v1157_v7, %v1157_v7 }
  0x23   : > { %v1354_v16 = vpack.c.b16 %v1158_v8, %v1158_v8  ;;  %v468_v21 = vunpack.c.h.b16 %v167_v17  ;;  %v469_v23 = vunpack.c.l.b16 %v168_v18  ;;  %v470_v24 = vunpack.c.h.b16 %v168_v18  ;;  %v275_v18 = vld [vmem:[%s4378_s18 + $0x80] sm:$0xff] }
  0x24   : > { %v1163_v25 = vunpack.c.l.b16 %v270_v19  ;;  %v1164_v26 = vunpack.c.h.b16 %v270_v19  ;;  %v1161_v27 = vunpack.c.l.b16 %v269_v22  ;;  %v1162_v28 = vunpack.c.h.b16 %v269_v22 }
  0x25   : > { %v663_v29 = vpack.c.b16 %v467_v20, %v467_v20  ;;  %v664_v30 = vpack.c.b16 %v468_v21, %v468_v21  ;;  %v665_v31 = vpack.c.b16 %v469_v23, %v469_v23  ;;  %v666_v32 = vpack.c.b16 %v470_v24, %v470_v24 }
  0x26   : > { %v1359_v33 = vpack.c.b16 %v1163_v25, %v1163_v25  ;;  %v1360_v34 = vpack.c.b16 %v1164_v26, %v1164_v26  ;;  %v1357_v35 = vpack.c.b16 %v1161_v27, %v1161_v27  ;;  %v1358_v36 = vpack.c.b16 %v1162_v28, %v1162_v28 }
  0x27   : > { %1840 = vmatpush.bf16.xpose.msra.mxu0 %v1345_v39  ;;  %1853 = vmatpush.bf16.xpose.msra.mxu1 %v1346_v40  ;;  %v272_v39 = vld [vmem:[%s4378_s18 + $0x68] sm:$0xff]  ;;  %v1165_v47 = vunpack.c.l.b16 %v271_v42  ;;  %v1166_v48 = vunpack.c.h.b16 %v271_v42  ;;  %v1169_v3 = vunpack.c.l.b16 %v273_v62  ;;  %v1170_v4 = vunpack.c.h.b16 %v273_v62 }
  0x28   : > { %1866 = vmatpush.bf16.xpose.msra.mxu2 %v1347_v37  ;;  %1879 = vmatpush.bf16.xpose.msra.mxu3 %v1348_v38  ;;  %v169_v37 = vld [vmem:[%s4373_s15 + $0x40] sm:$0xff]  ;;  %v170_v38 = vld [vmem:[%s4373_s15 + $0x48] sm:$0xff]  ;;  %v1167_v45 = vunpack.c.l.b16 %v272_v39  ;;  %v1168_v46 = vunpack.c.h.b16 %v272_v39  ;;  %v1173_v23 = vunpack.c.l.b16 %v275_v18  ;;  %v1174_v24 = vunpack.c.h.b16 %v275_v18  ;;  %v180_v18 = vld [vmem:[%s4373_s15 + $0x98] sm:$0xff] }
  0x29   : > { %v471_v40 = vunpack.c.l.b16 %v169_v37  ;;  %v472_v41 = vunpack.c.h.b16 %v169_v37  ;;  %v473_v43 = vunpack.c.l.b16 %v170_v38  ;;  %v474_v44 = vunpack.c.h.b16 %v170_v38  ;;  %v277_v38 = vld [vmem:[%s4378_s18 + $0x90] sm:$0xff] }
  0x2b   : > { %v667_v49 = vpack.c.b16 %v471_v40, %v471_v40  ;;  %v668_v50 = vpack.c.b16 %v472_v41, %v472_v41  ;;  %v669_v51 = vpack.c.b16 %v473_v43, %v473_v43  ;;  %v670_v52 = vpack.c.b16 %v474_v44, %v474_v44 }
  0x2c   : > { %v1177_v43 = vunpack.c.l.b16 %v277_v38  ;;  %v1178_v44 = vunpack.c.h.b16 %v277_v38 }
  0x2e   : > { %1789 = vmatmul.bf16.vlgmr.msrb.gmra.mxu0 %v655_v53  ;;  %1802 = vmatmul.bf16.vlgmr.msrb.gmra.mxu1 %v656_v54  ;;  %v1363_v53 = vpack.c.b16 %v1167_v45, %v1167_v45  ;;  %v1364_v54 = vpack.c.b16 %v1168_v46, %v1168_v46 }
  0x2f   : > { %1892 = vmatpush.bf16.xpose.msrb.mxu0 %v1349_v59  ;;  %1905 = vmatpush.bf16.xpose.msrb.mxu1 %v1350_v60  ;;  %v274_v59 = vld [vmem:[%s4378_s18 + $0x78] sm:$0xff] }
  0x30   : > { %v1171_v1 = vunpack.c.l.b16 %v274_v59  ;;  %v1172_v2 = vunpack.c.h.b16 %v274_v59 }
  0x31   : > { %1815 = vmatmul.bf16.vlgmr.msrb.gmra.mxu2 %v657_v55  ;;  %1828 = vmatmul.bf16.vlgmr.msrb.gmra.mxu3 %v658_v56  ;;  %v1361_v55 = vpack.c.b16 %v1165_v47, %v1165_v47  ;;  %v1362_v56 = vpack.c.b16 %v1166_v48, %v1166_v48 }
  0x32   : > { %1918 = vmatpush.bf16.xpose.msrb.mxu2 %v1351_v57  ;;  %1931 = vmatpush.bf16.xpose.msrb.mxu3 %v1352_v58  ;;  %v171_v57 = vld [vmem:[%s4373_s15 + $0x50] sm:$0xff]  ;;  %v172_v58 = vld [vmem:[%s4373_s15 + $0x58] sm:$0xff] }
  0x33   : > { %v475_v60 = vunpack.c.l.b16 %v171_v57  ;;  %v476_v61 = vunpack.c.h.b16 %v171_v57  ;;  %v477_v63 = vunpack.c.l.b16 %v172_v58  ;;  %v478_v0 = vunpack.c.h.b16 %v172_v58  ;;  %v279_v58 = vld [vmem:[%s4378_s18 + $0xa0] sm:$0xff] }
  0x35   : > { %v671_v5 = vpack.c.b16 %v475_v60, %v475_v60  ;;  %v672_v6 = vpack.c.b16 %v476_v61, %v476_v61  ;;  %v673_v7 = vpack.c.b16 %v477_v63, %v477_v63  ;;  %v674_v8 = vpack.c.b16 %v478_v0, %v478_v0 }
  0x36   : > { %v1181_v63 = vunpack.c.l.b16 %v279_v58  ;;  %v1182_v0 = vunpack.c.h.b16 %v279_v58 }
  0x3e   : > { %1841 = vmatmul.bf16.vlgmr.msra.gmra.mxu0 %v659_v9  ;;  %1854 = vmatmul.bf16.vlgmr.msra.gmra.mxu1 %v660_v10  ;;  %v1367_v9 = vpack.c.b16 %v1171_v1, %v1171_v1  ;;  %v1368_v10 = vpack.c.b16 %v1172_v2, %v1172_v2 }
  0x3f   : > { %1944 = vmatpush.bf16.xpose.msra.mxu0 %v1353_v15  ;;  %1957 = vmatpush.bf16.xpose.msra.mxu1 %v1354_v16  ;;  %v276_v15 = vld [vmem:[%s4378_s18 + $0x88] sm:$0xff] }
  0x40   : > { %v1175_v21 = vunpack.c.l.b16 %v276_v15  ;;  %v1176_v22 = vunpack.c.h.b16 %v276_v15 }
  0x41   : > { %1867 = vmatmul.bf16.vlgmr.msra.gmra.mxu2 %v661_v11  ;;  %1880 = vmatmul.bf16.vlgmr.msra.gmra.mxu3 %v662_v12  ;;  %v1365_v11 = vpack.c.b16 %v1169_v3, %v1169_v3  ;;  %v1366_v12 = vpack.c.b16 %v1170_v4, %v1170_v4 }
  0x42   : > { %1970 = vmatpush.bf16.xpose.msra.mxu2 %v1355_v13  ;;  %1983 = vmatpush.bf16.xpose.msra.mxu3 %v1356_v14  ;;  %v173_v13 = vld [vmem:[%s4373_s15 + $0x60] sm:$0xff]  ;;  %v174_v14 = vld [vmem:[%s4373_s15 + $0x68] sm:$0xff] }
  0x43   : > { %v479_v16 = vunpack.c.l.b16 %v173_v13  ;;  %v480_v17 = vunpack.c.h.b16 %v173_v13  ;;  %v481_v19 = vunpack.c.l.b16 %v174_v14  ;;  %v482_v20 = vunpack.c.h.b16 %v174_v14 }
  0x45   : > { %v675_v25 = vpack.c.b16 %v479_v16, %v479_v16  ;;  %v676_v26 = vpack.c.b16 %v480_v17, %v480_v17  ;;  %v677_v27 = vpack.c.b16 %v481_v19, %v481_v19  ;;  %v678_v28 = vpack.c.b16 %v482_v20, %v482_v20  ;;  %v179_v17 = vld [vmem:[%s4373_s15 + $0x90] sm:$0xff]  ;;  %v282_v20 = vld [vmem:[%s4378_s18 + $0xb8] sm:$0xff] }
  0x4e   : > { %1893 = vmatmul.bf16.vlgmr.msrb.gmra.mxu0 %v663_v29  ;;  %1906 = vmatmul.bf16.vlgmr.msrb.gmra.mxu1 %v664_v30  ;;  %v1371_v29 = vpack.c.b16 %v1175_v21, %v1175_v21  ;;  %v1372_v30 = vpack.c.b16 %v1176_v22, %v1176_v22  ;;  %v491_v21 = vunpack.c.l.b16 %v179_v17  ;;  %v492_v22 = vunpack.c.h.b16 %v179_v17  ;;  %v183_v17 = vld [vmem:[%s4373_s15 + $0xb0] sm:$0xff] }
  0x4f   : > { %1996 = vmatpush.bf16.xpose.msrb.mxu0 %v1357_v35  ;;  %2009 = vmatpush.bf16.xpose.msrb.mxu1 %v1358_v36  ;;  %v278_v35 = vld [vmem:[%s4378_s18 + $0x98] sm:$0xff] }
  0x50   : > { %v1179_v41 = vunpack.c.l.b16 %v278_v35  ;;  %v1180_v42 = vunpack.c.h.b16 %v278_v35 }
  0x51   : > { %1919 = vmatmul.bf16.vlgmr.msrb.gmra.mxu2 %v665_v31  ;;  %1932 = vmatmul.bf16.vlgmr.msrb.gmra.mxu3 %v666_v32  ;;  %v1369_v31 = vpack.c.b16 %v1173_v23, %v1173_v23  ;;  %v1370_v32 = vpack.c.b16 %v1174_v24, %v1174_v24  ;;  %v281_v23 = vld [vmem:[%s4378_s18 + $0xb0] sm:$0xff]  ;;  %v493_v24 = vunpack.c.l.b16 %v180_v18 }
  0x52   : > { %2022 = vmatpush.bf16.xpose.msrb.mxu2 %v1359_v33  ;;  %2035 = vmatpush.bf16.xpose.msrb.mxu3 %v1360_v34  ;;  %v175_v33 = vld [vmem:[%s4373_s15 + $0x70] sm:$0xff]  ;;  %v176_v34 = vld [vmem:[%s4373_s15 + $0x78] sm:$0xff] }
  0x53   : > { %v483_v36 = vunpack.c.l.b16 %v175_v33  ;;  %v484_v37 = vunpack.c.h.b16 %v175_v33  ;;  %v485_v39 = vunpack.c.l.b16 %v176_v34  ;;  %v486_v40 = vunpack.c.h.b16 %v176_v34 }
  0x54   : > { %v688_v33 = vpack.c.b16 %v492_v22, %v492_v22  ;;  %v500_v22 = vunpack.c.h.b16 %v183_v17 }
  0x55   : > { %v679_v45 = vpack.c.b16 %v483_v36, %v483_v36  ;;  %v680_v46 = vpack.c.b16 %v484_v37, %v484_v37  ;;  %v681_v47 = vpack.c.b16 %v485_v39, %v485_v39  ;;  %v682_v48 = vpack.c.b16 %v486_v40, %v486_v40 }
  0x56   : > { %v689_v36 = vpack.c.b16 %v493_v24, %v493_v24 }
  0x5e   : > { %1945 = vmatmul.bf16.vlgmr.msra.gmra.mxu0 %v667_v49  ;;  %1958 = vmatmul.bf16.vlgmr.msra.gmra.mxu1 %v668_v50  ;;  %v1375_v49 = vpack.c.b16 %v1179_v41, %v1179_v41  ;;  %v1376_v50 = vpack.c.b16 %v1180_v42, %v1180_v42 }
  0x5f   : > { %2048 = vmatpush.bf16.xpose.msra.mxu0 %v1361_v55  ;;  %2061 = vmatpush.bf16.xpose.msra.mxu1 %v1362_v56  ;;  %v280_v55 = vld [vmem:[%s4378_s18 + $0xa8] sm:$0xff] }
  0x60   : > { %v1183_v61 = vunpack.c.l.b16 %v280_v55  ;;  %v1184_v62 = vunpack.c.h.b16 %v280_v55  ;;  %v283_v55 = vld [vmem:[%s4378_s18 + $0xc0] sm:$0xff] }
  0x61   : > { %1971 = vmatmul.bf16.vlgmr.msra.gmra.mxu2 %v669_v51  ;;  %1984 = vmatmul.bf16.vlgmr.msra.gmra.mxu3 %v670_v52  ;;  %v1373_v51 = vpack.c.b16 %v1177_v43, %v1177_v43  ;;  %v1374_v52 = vpack.c.b16 %v1178_v44, %v1178_v44 }
  0x62   : > { %2074 = vmatpush.bf16.xpose.msra.mxu2 %v1363_v53  ;;  %2087 = vmatpush.bf16.xpose.msra.mxu3 %v1364_v54  ;;  %v177_v53 = vld [vmem:[%s4373_s15 + $0x80] sm:$0xff]  ;;  %v178_v54 = vld [vmem:[%s4373_s15 + $0x88] sm:$0xff] }
  0x63   : > { %v487_v56 = vunpack.c.l.b16 %v177_v53  ;;  %v488_v57 = vunpack.c.h.b16 %v177_v53  ;;  %v489_v59 = vunpack.c.l.b16 %v178_v54  ;;  %v490_v60 = vunpack.c.h.b16 %v178_v54 }
  0x65   : > { %v683_v1 = vpack.c.b16 %v487_v56, %v487_v56  ;;  %v684_v2 = vpack.c.b16 %v488_v57, %v488_v57 }
  0x6e   : > { %1997 = vmatmul.bf16.vlgmr.msrb.gmra.mxu0 %v671_v5  ;;  %2010 = vmatmul.bf16.vlgmr.msrb.gmra.mxu1 %v672_v6  ;;  %v685_v5 = vpack.c.b16 %v489_v59, %v489_v59  ;;  %v686_v6 = vpack.c.b16 %v490_v60, %v490_v60  ;;  %v1189_v60 = vunpack.c.l.b16 %v283_v55 }
  0x6f   : > { %2100 = vmatpush.bf16.xpose.msrb.mxu0 %v1365_v11  ;;  %2113 = vmatpush.bf16.xpose.msrb.mxu1 %v1366_v12  ;;  %v1378_v11 = vpack.c.b16 %v1182_v0, %v1182_v0 }
  0x71   : > { %2023 = vmatmul.bf16.vlgmr.msrb.gmra.mxu2 %v673_v7  ;;  %2036 = vmatmul.bf16.vlgmr.msrb.gmra.mxu3 %v674_v8  ;;  %v1379_v8 = vpack.c.b16 %v1183_v61, %v1183_v61  ;;  %v1190_v61 = vunpack.c.h.b16 %v283_v55  ;;  %v287_v55 = vld [vmem:[%s4378_s18 + $0xe0] sm:$0xff] }
  0x72   : > { %2126 = vmatpush.bf16.xpose.msrb.mxu2 %v1367_v9  ;;  %2139 = vmatpush.bf16.xpose.msrb.mxu3 %v1368_v10  ;;  %v1380_v9 = vpack.c.b16 %v1184_v62, %v1184_v62  ;;  %v1377_v10 = vpack.c.b16 %v1181_v63, %v1181_v63 }
  0x7e   : > { %2049 = vmatmul.bf16.vlgmr.msra.gmra.mxu0 %v675_v25  ;;  %2062 = vmatmul.bf16.vlgmr.msra.gmra.mxu1 %v676_v26  ;;  %v494_v25 = vunpack.c.h.b16 %v180_v18  ;;  %v1187_v26 = vunpack.c.l.b16 %v282_v20  ;;  %v184_v18 = vld [vmem:[%s4373_s15 + $0xb8] sm:$0xff] }
  0x7f   : > { %2152 = vmatpush.bf16.xpose.msra.mxu0 %v1369_v31  ;;  %2165 = vmatpush.bf16.xpose.msra.mxu1 %v1370_v32  ;;  %v687_v32 = vpack.c.b16 %v491_v21, %v491_v21  ;;  %v499_v21 = vunpack.c.l.b16 %v183_v17  ;;  %v501_v24 = vunpack.c.l.b16 %v184_v18  ;;  %v187_v17 = vld [vmem:[%s4373_s15 + $0xd0] sm:$0xff] }
  0x80   : > { %v690_v37 = vpack.c.b16 %v494_v25, %v494_v25  ;;  %v1383_v39 = vpack.c.b16 %v1187_v26, %v1187_v26  ;;  %v502_v25 = vunpack.c.h.b16 %v184_v18  ;;  %v188_v18 = vld [vmem:[%s4373_s15 + $0xd8] sm:$0xff] }
  0x81   : > { %2075 = vmatmul.bf16.vlgmr.msra.gmra.mxu2 %v677_v27  ;;  %2088 = vmatmul.bf16.vlgmr.msra.gmra.mxu3 %v678_v28  ;;  %v1188_v27 = vunpack.c.h.b16 %v282_v20  ;;  %v1185_v28 = vunpack.c.l.b16 %v281_v23  ;;  %v286_v20 = vld [vmem:[%s4378_s18 + $0xd8] sm:$0xff] }
  0x82   : > { %2178 = vmatpush.bf16.xpose.msra.mxu2 %v1371_v29  ;;  %2191 = vmatpush.bf16.xpose.msra.mxu3 %v1372_v30  ;;  %v1186_v29 = vunpack.c.h.b16 %v281_v23  ;;  %v285_v23 = vld [vmem:[%s4378_s18 + $0xd0] sm:$0xff]  ;;  %v1195_v26 = vunpack.c.l.b16 %v286_v20 }
  0x83   : > { %v1384_v40 = vpack.c.b16 %v1188_v27, %v1188_v27  ;;  %v1381_v41 = vpack.c.b16 %v1185_v28, %v1185_v28  ;;  %v1196_v27 = vunpack.c.h.b16 %v286_v20  ;;  %v1193_v28 = vunpack.c.l.b16 %v285_v23  ;;  %v290_v20 = vld [vmem:[%s4378_s18 + $0xf8] sm:$0xff] }
  0x84   : > { %v1382_v42 = vpack.c.b16 %v1186_v29, %v1186_v29  ;;  %v1194_v29 = vunpack.c.h.b16 %v285_v23  ;;  %v289_v23 = vld [vmem:[%s4378_s18 + $0xf0] sm:$0xff] }
  0x8e   : > { %2101 = vmatmul.bf16.vlgmr.msrb.gmra.mxu0 %v679_v45  ;;  %2114 = vmatmul.bf16.vlgmr.msrb.gmra.mxu1 %v680_v46 }
  0x8f   : > { %2204 = vmatpush.bf16.xpose.msrb.mxu0 %v1373_v51  ;;  %2217 = vmatpush.bf16.xpose.msrb.mxu1 %v1374_v52  ;;  %v284_v52 = vld [vmem:[%s4378_s18 + $0xc8] sm:$0xff] }
  0x90   : > { %v1191_v58 = vunpack.c.l.b16 %v284_v52  ;;  %v1192_v59 = vunpack.c.h.b16 %v284_v52  ;;  %v288_v52 = vld [vmem:[%s4378_s18 + $0xe8] sm:$0xff] }
  0x91   : > { %2127 = vmatmul.bf16.vlgmr.msrb.gmra.mxu2 %v681_v47  ;;  %2140 = vmatmul.bf16.vlgmr.msrb.gmra.mxu3 %v682_v48 }
  0x92   : > { %2230 = vmatpush.bf16.xpose.msrb.mxu2 %v1375_v49  ;;  %2243 = vmatpush.bf16.xpose.msrb.mxu3 %v1376_v50  ;;  %v181_v49 = vld [vmem:[%s4373_s15 + $0xa0] sm:$0xff]  ;;  %v182_v50 = vld [vmem:[%s4373_s15 + $0xa8] sm:$0xff] }
  0x93   : > { %v495_v53 = vunpack.c.l.b16 %v181_v49  ;;  %v496_v54 = vunpack.c.h.b16 %v181_v49  ;;  %v497_v56 = vunpack.c.l.b16 %v182_v50  ;;  %v498_v57 = vunpack.c.h.b16 %v182_v50  ;;  %v185_v49 = vld [vmem:[%s4373_s15 + $0xc0] sm:$0xff]  ;;  %v186_v50 = vld [vmem:[%s4373_s15 + $0xc8] sm:$0xff] }
  0x95   : > { %v691_v0 = vpack.c.b16 %v495_v53, %v495_v53  ;;  %v503_v53 = vunpack.c.l.b16 %v185_v49 }
  0x9b   : > { %v1738_v3 = vpop.f32.mrf.mxu0  ;;  %v1751_v4 = vpop.f32.mrf.mxu1 }
  0x9c   : > { %v1752_v7 = vadd.f32 %v1751_v4, %v1738_v3  ;;  %v693_v4 = vpack.c.b16 %v497_v56, %v497_v56  ;;  %v505_v56 = vunpack.c.l.b16 %v186_v50 }
  0x9e   : > { %2153 = vmatmul.bf16.vlgmr.msra.gmra.mxu0 %v683_v1  ;;  %2166 = vmatmul.bf16.vlgmr.msra.gmra.mxu1 %v684_v2  ;;  %v692_v1 = vpack.c.b16 %v496_v54, %v496_v54  ;;  %v504_v54 = vunpack.c.h.b16 %v185_v49  ;;  %v189_v49 = vld [vmem:[%s4373_s15 + $0xe0] sm:$0xff] }
  0x9f   : > { %2256 = vmatpush.bf16.xpose.msra.mxu0 %v1377_v10  ;;  %2269 = vmatpush.bf16.xpose.msra.mxu1 %v1378_v11  ;;  %v1386_v10 = vpack.c.b16 %v1190_v61, %v1190_v61  ;;  %v1198_v61 = vunpack.c.h.b16 %v287_v55 }
  0xa1   : > { %2179 = vmatmul.bf16.vlgmr.msra.gmra.mxu2 %v685_v5  ;;  %2192 = vmatmul.bf16.vlgmr.msra.gmra.mxu3 %v686_v6  ;;  %v694_v5 = vpack.c.b16 %v498_v57, %v498_v57  ;;  %v506_v57 = vunpack.c.h.b16 %v186_v50  ;;  %v190_v50 = vld [vmem:[%s4373_s15 + $0xe8] sm:$0xff] }
  0xa2   : > { %2282 = vmatpush.bf16.xpose.msra.mxu2 %v1379_v8  ;;  %2295 = vmatpush.bf16.xpose.msra.mxu3 %v1380_v9  ;;  %v1388_v8 = vpack.c.b16 %v1192_v59, %v1192_v59  ;;  %v1385_v9 = vpack.c.b16 %v1189_v60, %v1189_v60  ;;  %v1200_v59 = vunpack.c.h.b16 %v288_v52  ;;  %v1197_v60 = vunpack.c.l.b16 %v287_v55  ;;  %v291_v55 = vld [vmem:[%s4378_s18 + $0x100] sm:$0xff] }
  0xa3   : > { %v1740_v15 = vpop.f32.mrf.mxu0  ;;  %v1753_v16 = vpop.f32.mrf.mxu1 }
  0xa4   : > { %v1764_v12 = vpop.f32.mrf.mxu2  ;;  %v1777_v13 = vpop.f32.mrf.mxu3 }
  0xa5   : > { %v1765_v14 = vadd.f32 %v1764_v12, %v1752_v7  ;;  %v1387_v7 = vpack.c.b16 %v1191_v58, %v1191_v58  ;;  %v1199_v58 = vunpack.c.l.b16 %v288_v52  ;;  %v292_v52 = vld [vmem:[%s4378_s18 + $0x108] sm:$0xff] }
  0xa7   : > { %v1778_v19 = vadd.f32 %v1777_v13, %v1765_v14 }
  0xab   : > { %v1790_v34 = vpop.f32.mrf.mxu0  ;;  %v1803_v35 = vpop.f32.mrf.mxu1 }
  0xac   : > { %v1766_v30 = vpop.f32.mrf.mxu2  ;;  %v1779_v31 = vpop.f32.mrf.mxu3  ;;  %v1791_v38 = vadd.f32 %v1790_v34, %v1778_v19 }
  0xae   : > { %v1804_v43 = vadd.f32 %v1803_v35, %v1791_v38  ;;  %2205 = vmatmul.bf16.vlgmr.msrb.gmra.mxu0 %v687_v32  ;;  %2218 = vmatmul.bf16.vlgmr.msrb.gmra.mxu1 %v688_v33  ;;  %v695_v32 = vpack.c.b16 %v499_v21, %v499_v21  ;;  %v696_v33 = vpack.c.b16 %v500_v22, %v500_v22  ;;  %v507_v21 = vunpack.c.l.b16 %v187_v17 }
  0xaf   : > { %2308 = vmatpush.bf16.xpose.msrb.mxu0 %v1381_v41  ;;  %2321 = vmatpush.bf16.xpose.msrb.mxu1 %v1382_v42  ;;  %v1389_v41 = vpack.c.b16 %v1193_v28, %v1193_v28  ;;  %v1390_v42 = vpack.c.b16 %v1194_v29, %v1194_v29  ;;  %v508_v22 = vunpack.c.h.b16 %v187_v17  ;;  %v1201_v28 = vunpack.c.l.b16 %v289_v23  ;;  %v191_v17 = vld [vmem:[%s4373_s15 + $0xf0] sm:$0xff] }
  0xb0   : > { %v1202_v29 = vunpack.c.h.b16 %v289_v23  ;;  %v293_v23 = vld [vmem:[%s4378_s18 + $0x110] sm:$0xff] }
  0xb1   : > { %2231 = vmatmul.bf16.vlgmr.msrb.gmra.mxu2 %v689_v36  ;;  %2244 = vmatmul.bf16.vlgmr.msrb.gmra.mxu3 %v690_v37  ;;  %v697_v36 = vpack.c.b16 %v501_v24, %v501_v24  ;;  %v698_v37 = vpack.c.b16 %v502_v25, %v502_v25  ;;  %v509_v24 = vunpack.c.l.b16 %v188_v18  ;;  %v510_v25 = vunpack.c.h.b16 %v188_v18  ;;  %v192_v18 = vld [vmem:[%s4373_s15 + $0xf8] sm:$0xff] }
  0xb2   : > { %2334 = vmatpush.bf16.xpose.msrb.mxu2 %v1383_v39  ;;  %2347 = vmatpush.bf16.xpose.msrb.mxu3 %v1384_v40  ;;  %v1391_v39 = vpack.c.b16 %v1195_v26, %v1195_v26  ;;  %v1392_v40 = vpack.c.b16 %v1196_v27, %v1196_v27  ;;  %v1203_v26 = vunpack.c.l.b16 %v290_v20  ;;  %v1204_v27 = vunpack.c.h.b16 %v290_v20  ;;  %v294_v20 = vld [vmem:[%s4378_s18 + $0x118] sm:$0xff] }
  0xb3   : > { %v1792_v47 = vpop.f32.mrf.mxu0  ;;  %v1805_v48 = vpop.f32.mrf.mxu1 }
  0xb4   : > { %v1816_v44 = vpop.f32.mrf.mxu2  ;;  %v1829_v45 = vpop.f32.mrf.mxu3 }
  0xb5   : > { %v1817_v46 = vadd.f32 %v1816_v44, %v1804_v43 }
  0xb7   : > { %v1830_v51 = vadd.f32 %v1829_v45, %v1817_v46 }
  0xbb   : > { %v1842_v2 = vpop.f32.mrf.mxu0  ;;  %v1855_v3 = vpop.f32.mrf.mxu1 }
  0xbc   : > { %v1818_v62 = vpop.f32.mrf.mxu2  ;;  %v1831_v63 = vpop.f32.mrf.mxu3  ;;  %v1843_v6 = vadd.f32 %v1842_v2, %v1830_v51 }
  0xbe   : > { %v1856_v11 = vadd.f32 %v1855_v3, %v1843_v6  ;;  %2257 = vmatmul.bf16.vlgmr.msra.gmra.mxu0 %v691_v0  ;;  %2270 = vmatmul.bf16.vlgmr.msra.gmra.mxu1 %v692_v1  ;;  %v699_v0 = vpack.c.b16 %v503_v53, %v503_v53  ;;  %v700_v1 = vpack.c.b16 %v504_v54, %v504_v54  ;;  %v511_v53 = vunpack.c.l.b16 %v189_v49 }
  0xbf   : > { %2360 = vmatpush.bf16.xpose.msra.mxu0 %v1385_v9  ;;  %2373 = vmatpush.bf16.xpose.msra.mxu1 %v1386_v10  ;;  %v1393_v9 = vpack.c.b16 %v1197_v60, %v1197_v60  ;;  %v1394_v10 = vpack.c.b16 %v1198_v61, %v1198_v61  ;;  %v512_v54 = vunpack.c.h.b16 %v189_v49  ;;  %v1205_v60 = vunpack.c.l.b16 %v291_v55  ;;  %v193_v49 = vld [vmem:[%s4373_s15 + $0x100] sm:$0xff] }
  0xc0   : > { %v1206_v61 = vunpack.c.h.b16 %v291_v55  ;;  %v295_v55 = vld [vmem:[%s4378_s18 + $0x120] sm:$0xff] }
  0xc1   : > { %2283 = vmatmul.bf16.vlgmr.msra.gmra.mxu2 %v693_v4  ;;  %2296 = vmatmul.bf16.vlgmr.msra.gmra.mxu3 %v694_v5  ;;  %v701_v4 = vpack.c.b16 %v505_v56, %v505_v56  ;;  %v702_v5 = vpack.c.b16 %v506_v57, %v506_v57  ;;  %v513_v56 = vunpack.c.l.b16 %v190_v50  ;;  %v514_v57 = vunpack.c.h.b16 %v190_v50  ;;  %v194_v50 = vld [vmem:[%s4373_s15 + $0x108] sm:$0xff] }
  0xc2   : > { %2386 = vmatpush.bf16.xpose.msra.mxu2 %v1387_v7  ;;  %2399 = vmatpush.bf16.xpose.msra.mxu3 %v1388_v8  ;;  %v1395_v7 = vpack.c.b16 %v1199_v58, %v1199_v58  ;;  %v1396_v8 = vpack.c.b16 %v1200_v59, %v1200_v59  ;;  %v1207_v58 = vunpack.c.l.b16 %v292_v52  ;;  %v1208_v59 = vunpack.c.h.b16 %v292_v52  ;;  %v296_v52 = vld [vmem:[%s4378_s18 + $0x128] sm:$0xff] }
  0xc3   : > { %v1844_v15 = vpop.f32.mrf.mxu0  ;;  %v1857_v16 = vpop.f32.mrf.mxu1 }
  0xc4   : > { %v1868_v12 = vpop.f32.mrf.mxu2  ;;  %v1881_v13 = vpop.f32.mrf.mxu3 }
  0xc5   : > { %v1869_v14 = vadd.f32 %v1868_v12, %v1856_v11 }
  0xc7   : > { %v1882_v19 = vadd.f32 %v1881_v13, %v1869_v14 }
  0xcb   : > { %v1894_v34 = vpop.f32.mrf.mxu0  ;;  %v1907_v35 = vpop.f32.mrf.mxu1 }
  0xcc   : > { %v1870_v30 = vpop.f32.mrf.mxu2  ;;  %v1883_v31 = vpop.f32.mrf.mxu3  ;;  %v1895_v38 = vadd.f32 %v1894_v34, %v1882_v19 }
  0xce   : > { %v1908_v43 = vadd.f32 %v1907_v35, %v1895_v38  ;;  %2309 = vmatmul.bf16.vlgmr.msrb.gmra.mxu0 %v695_v32  ;;  %2322 = vmatmul.bf16.vlgmr.msrb.gmra.mxu1 %v696_v33  ;;  %v703_v32 = vpack.c.b16 %v507_v21, %v507_v21  ;;  %v704_v33 = vpack.c.b16 %v508_v22, %v508_v22  ;;  %v515_v21 = vunpack.c.l.b16 %v191_v17 }
  0xcf   : > { %2412 = vmatpush.bf16.xpose.msrb.mxu0 %v1389_v41  ;;  %2425 = vmatpush.bf16.xpose.msrb.mxu1 %v1390_v42  ;;  %v1397_v41 = vpack.c.b16 %v1201_v28, %v1201_v28  ;;  %v1398_v42 = vpack.c.b16 %v1202_v29, %v1202_v29  ;;  %v516_v22 = vunpack.c.h.b16 %v191_v17  ;;  %v1209_v28 = vunpack.c.l.b16 %v293_v23  ;;  %v195_v17 = vld [vmem:[%s4373_s15 + $0x110] sm:$0xff] }
  0xd0   : > { %v1210_v29 = vunpack.c.h.b16 %v293_v23  ;;  %v297_v23 = vld [vmem:[%s4378_s18 + $0x130] sm:$0xff] }
  0xd1   : > { %2335 = vmatmul.bf16.vlgmr.msrb.gmra.mxu2 %v697_v36  ;;  %2348 = vmatmul.bf16.vlgmr.msrb.gmra.mxu3 %v698_v37  ;;  %v705_v36 = vpack.c.b16 %v509_v24, %v509_v24  ;;  %v706_v37 = vpack.c.b16 %v510_v25, %v510_v25  ;;  %v517_v24 = vunpack.c.l.b16 %v192_v18  ;;  %v518_v25 = vunpack.c.h.b16 %v192_v18  ;;  %v196_v18 = vld [vmem:[%s4373_s15 + $0x118] sm:$0xff] }
  0xd2   : > { %2438 = vmatpush.bf16.xpose.msrb.mxu2 %v1391_v39  ;;  %2451 = vmatpush.bf16.xpose.msrb.mxu3 %v1392_v40  ;;  %v1399_v39 = vpack.c.b16 %v1203_v26, %v1203_v26  ;;  %v1400_v40 = vpack.c.b16 %v1204_v27, %v1204_v27  ;;  %v1211_v26 = vunpack.c.l.b16 %v294_v20  ;;  %v1212_v27 = vunpack.c.h.b16 %v294_v20  ;;  %v298_v20 = vld [vmem:[%s4378_s18 + $0x138] sm:$0xff] }
  0xd3   : > { %v1896_v47 = vpop.f32.mrf.mxu0  ;;  %v1909_v48 = vpop.f32.mrf.mxu1 }
  0xd4   : > { %v1920_v44 = vpop.f32.mrf.mxu2  ;;  %v1933_v45 = vpop.f32.mrf.mxu3 }
  0xd5   : > { %v1921_v46 = vadd.f32 %v1920_v44, %v1908_v43 }
  0xd7   : > { %v1934_v51 = vadd.f32 %v1933_v45, %v1921_v46 }
  0xdb   : > { %v1946_v2 = vpop.f32.mrf.mxu0  ;;  %v1959_v3 = vpop.f32.mrf.mxu1 }
  0xdc   : > { %v1922_v62 = vpop.f32.mrf.mxu2  ;;  %v1935_v63 = vpop.f32.mrf.mxu3  ;;  %v1947_v6 = vadd.f32 %v1946_v2, %v1934_v51 }
  0xde   : > { %v1960_v11 = vadd.f32 %v1959_v3, %v1947_v6  ;;  %2361 = vmatmul.bf16.vlgmr.msra.gmra.mxu0 %v699_v0  ;;  %2374 = vmatmul.bf16.vlgmr.msra.gmra.mxu1 %v700_v1  ;;  %v707_v0 = vpack.c.b16 %v511_v53, %v511_v53  ;;  %v708_v1 = vpack.c.b16 %v512_v54, %v512_v54  ;;  %v519_v53 = vunpack.c.l.b16 %v193_v49 }
  0xdf   : > { %2464 = vmatpush.bf16.xpose.msra.mxu0 %v1393_v9  ;;  %2477 = vmatpush.bf16.xpose.msra.mxu1 %v1394_v10  ;;  %v1401_v9 = vpack.c.b16 %v1205_v60, %v1205_v60  ;;  %v1402_v10 = vpack.c.b16 %v1206_v61, %v1206_v61  ;;  %v520_v54 = vunpack.c.h.b16 %v193_v49  ;;  %v1213_v60 = vunpack.c.l.b16 %v295_v55  ;;  %v197_v49 = vld [vmem:[%s4373_s15 + $0x120] sm:$0xff] }
  0xe0   : > { %v1214_v61 = vunpack.c.h.b16 %v295_v55  ;;  %v299_v55 = vld [vmem:[%s4378_s18 + $0x140] sm:$0xff] }
  0xe1   : > { %2387 = vmatmul.bf16.vlgmr.msra.gmra.mxu2 %v701_v4  ;;  %2400 = vmatmul.bf16.vlgmr.msra.gmra.mxu3 %v702_v5  ;;  %v709_v4 = vpack.c.b16 %v513_v56, %v513_v56  ;;  %v710_v5 = vpack.c.b16 %v514_v57, %v514_v57  ;;  %v521_v56 = vunpack.c.l.b16 %v194_v50  ;;  %v522_v57 = vunpack.c.h.b16 %v194_v50  ;;  %v198_v50 = vld [vmem:[%s4373_s15 + $0x128] sm:$0xff] }
  0xe2   : > { %2490 = vmatpush.bf16.xpose.msra.mxu2 %v1395_v7  ;;  %2503 = vmatpush.bf16.xpose.msra.mxu3 %v1396_v8  ;;  %v1403_v7 = vpack.c.b16 %v1207_v58, %v1207_v58  ;;  %v1404_v8 = vpack.c.b16 %v1208_v59, %v1208_v59  ;;  %v1215_v58 = vunpack.c.l.b16 %v296_v52  ;;  %v1216_v59 = vunpack.c.h.b16 %v296_v52  ;;  %v300_v52 = vld [vmem:[%s4378_s18 + $0x148] sm:$0xff] }
  0xe3   : > { %v1948_v15 = vpop.f32.mrf.mxu0  ;;  %v1961_v16 = vpop.f32.mrf.mxu1 }
  0xe4   : > { %v1972_v12 = vpop.f32.mrf.mxu2  ;;  %v1985_v13 = vpop.f32.mrf.mxu3 }
  0xe5   : > { %v1973_v14 = vadd.f32 %v1972_v12, %v1960_v11 }
  0xe7   : > { %v1986_v19 = vadd.f32 %v1985_v13, %v1973_v14 }
  0xeb   : > { %v1998_v34 = vpop.f32.mrf.mxu0  ;;  %v2011_v35 = vpop.f32.mrf.mxu1 }
  0xec   : > { %v1974_v30 = vpop.f32.mrf.mxu2  ;;  %v1987_v31 = vpop.f32.mrf.mxu3  ;;  %v1999_v38 = vadd.f32 %v1998_v34, %v1986_v19 }
  0xee   : > { %v2012_v43 = vadd.f32 %v2011_v35, %v1999_v38  ;;  %2413 = vmatmul.bf16.vlgmr.msrb.gmra.mxu0 %v703_v32  ;;  %2426 = vmatmul.bf16.vlgmr.msrb.gmra.mxu1 %v704_v33  ;;  %v711_v32 = vpack.c.b16 %v515_v21, %v515_v21  ;;  %v712_v33 = vpack.c.b16 %v516_v22, %v516_v22  ;;  %v523_v21 = vunpack.c.l.b16 %v195_v17 }
  0xef   : > { %2516 = vmatpush.bf16.xpose.msrb.mxu0 %v1397_v41  ;;  %2529 = vmatpush.bf16.xpose.msrb.mxu1 %v1398_v42  ;;  %v1405_v41 = vpack.c.b16 %v1209_v28, %v1209_v28  ;;  %v1406_v42 = vpack.c.b16 %v1210_v29, %v1210_v29  ;;  %v524_v22 = vunpack.c.h.b16 %v195_v17  ;;  %v1217_v28 = vunpack.c.l.b16 %v297_v23  ;;  %v199_v17 = vld [vmem:[%s4373_s15 + $0x130] sm:$0xff] }
  0xf0   : > { %v1218_v29 = vunpack.c.h.b16 %v297_v23  ;;  %v301_v23 = vld [vmem:[%s4378_s18 + $0x150] sm:$0xff] }
  0xf1   : > { %2439 = vmatmul.bf16.vlgmr.msrb.gmra.mxu2 %v705_v36  ;;  %2452 = vmatmul.bf16.vlgmr.msrb.gmra.mxu3 %v706_v37  ;;  %v713_v36 = vpack.c.b16 %v517_v24, %v517_v24  ;;  %v714_v37 = vpack.c.b16 %v518_v25, %v518_v25  ;;  %v525_v24 = vunpack.c.l.b16 %v196_v18  ;;  %v526_v25 = vunpack.c.h.b16 %v196_v18  ;;  %v200_v18 = vld [vmem:[%s4373_s15 + $0x138] sm:$0xff] }
  0xf2   : > { %2542 = vmatpush.bf16.xpose.msrb.mxu2 %v1399_v39  ;;  %2555 = vmatpush.bf16.xpose.msrb.mxu3 %v1400_v40  ;;  %v1407_v39 = vpack.c.b16 %v1211_v26, %v1211_v26  ;;  %v1408_v40 = vpack.c.b16 %v1212_v27, %v1212_v27  ;;  %v1219_v26 = vunpack.c.l.b16 %v298_v20  ;;  %v1220_v27 = vunpack.c.h.b16 %v298_v20  ;;  %v302_v20 = vld [vmem:[%s4378_s18 + $0x158] sm:$0xff] }
  0xf3   : > { %v2000_v47 = vpop.f32.mrf.mxu0  ;;  %v2013_v48 = vpop.f32.mrf.mxu1 }
  0xf4   : > { %v2024_v44 = vpop.f32.mrf.mxu2  ;;  %v2037_v45 = vpop.f32.mrf.mxu3 }
  0xf5   : > { %v2025_v46 = vadd.f32 %v2024_v44, %v2012_v43 }
  0xf7   : > { %v2038_v51 = vadd.f32 %v2037_v45, %v2025_v46 }
  0xfb   : > { %v2050_v2 = vpop.f32.mrf.mxu0  ;;  %v2063_v3 = vpop.f32.mrf.mxu1 }
  0xfc   : > { %v2026_v62 = vpop.f32.mrf.mxu2  ;;  %v2039_v63 = vpop.f32.mrf.mxu3  ;;  %v2051_v6 = vadd.f32 %v2050_v2, %v2038_v51 }
  0xfe   : > { %v2064_v11 = vadd.f32 %v2063_v3, %v2051_v6  ;;  %2465 = vmatmul.bf16.vlgmr.msra.gmra.mxu0 %v707_v0  ;;  %2478 = vmatmul.bf16.vlgmr.msra.gmra.mxu1 %v708_v1  ;;  %v715_v0 = vpack.c.b16 %v519_v53, %v519_v53  ;;  %v716_v1 = vpack.c.b16 %v520_v54, %v520_v54  ;;  %v527_v53 = vunpack.c.l.b16 %v197_v49 }
  0xff   : > { %2568 = vmatpush.bf16.xpose.msra.mxu0 %v1401_v9  ;;  %2581 = vmatpush.bf16.xpose.msra.mxu1 %v1402_v10  ;;  %v1409_v9 = vpack.c.b16 %v1213_v60, %v1213_v60  ;;  %v1410_v10 = vpack.c.b16 %v1214_v61, %v1214_v61  ;;  %v528_v54 = vunpack.c.h.b16 %v197_v49  ;;  %v1221_v60 = vunpack.c.l.b16 %v299_v55  ;;  %v201_v49 = vld [vmem:[%s4373_s15 + $0x140] sm:$0xff] }
 0x100   : > { %v1222_v61 = vunpack.c.h.b16 %v299_v55  ;;  %v303_v55 = vld [vmem:[%s4378_s18 + $0x160] sm:$0xff] }
 0x101   : > { %2491 = vmatmul.bf16.vlgmr.msra.gmra.mxu2 %v709_v4  ;;  %2504 = vmatmul.bf16.vlgmr.msra.gmra.mxu3 %v710_v5  ;;  %v717_v4 = vpack.c.b16 %v521_v56, %v521_v56  ;;  %v718_v5 = vpack.c.b16 %v522_v57, %v522_v57  ;;  %v529_v56 = vunpack.c.l.b16 %v198_v50  ;;  %v530_v57 = vunpack.c.h.b16 %v198_v50  ;;  %v202_v50 = vld [vmem:[%s4373_s15 + $0x148] sm:$0xff] }
 0x102   : > { %2594 = vmatpush.bf16.xpose.msra.mxu2 %v1403_v7  ;;  %2607 = vmatpush.bf16.xpose.msra.mxu3 %v1404_v8  ;;  %v1411_v7 = vpack.c.b16 %v1215_v58, %v1215_v58  ;;  %v1412_v8 = vpack.c.b16 %v1216_v59, %v1216_v59  ;;  %v1223_v58 = vunpack.c.l.b16 %v300_v52  ;;  %v1224_v59 = vunpack.c.h.b16 %v300_v52  ;;  %v304_v52 = vld [vmem:[%s4378_s18 + $0x168] sm:$0xff] }
 0x103   : > { %v2052_v15 = vpop.f32.mrf.mxu0  ;;  %v2065_v16 = vpop.f32.mrf.mxu1 }
 0x104   : > { %v2076_v12 = vpop.f32.mrf.mxu2  ;;  %v2089_v13 = vpop.f32.mrf.mxu3 }
 0x105   : > { %v2077_v14 = vadd.f32 %v2076_v12, %v2064_v11 }
 0x107   : > { %v2090_v19 = vadd.f32 %v2089_v13, %v2077_v14 }
 0x10b   : > { %v2102_v34 = vpop.f32.mrf.mxu0  ;;  %v2115_v35 = vpop.f32.mrf.mxu1 }
 0x10c   : > { %v2078_v30 = vpop.f32.mrf.mxu2  ;;  %v2091_v31 = vpop.f32.mrf.mxu3  ;;  %v2103_v38 = vadd.f32 %v2102_v34, %v2090_v19 }
 0x10e   : > { %v2116_v43 = vadd.f32 %v2115_v35, %v2103_v38  ;;  %2517 = vmatmul.bf16.vlgmr.msrb.gmra.mxu0 %v711_v32  ;;  %2530 = vmatmul.bf16.vlgmr.msrb.gmra.mxu1 %v712_v33  ;;  %v719_v32 = vpack.c.b16 %v523_v21, %v523_v21  ;;  %v720_v33 = vpack.c.b16 %v524_v22, %v524_v22  ;;  %v531_v21 = vunpack.c.l.b16 %v199_v17 }
 0x10f   : > { %2620 = vmatpush.bf16.xpose.msrb.mxu0 %v1405_v41  ;;  %2633 = vmatpush.bf16.xpose.msrb.mxu1 %v1406_v42  ;;  %v1413_v41 = vpack.c.b16 %v1217_v28, %v1217_v28  ;;  %v1414_v42 = vpack.c.b16 %v1218_v29, %v1218_v29  ;;  %v532_v22 = vunpack.c.h.b16 %v199_v17  ;;  %v1225_v28 = vunpack.c.l.b16 %v301_v23  ;;  %v203_v17 = vld [vmem:[%s4373_s15 + $0x150] sm:$0xff] }
 0x110   : > { %v1226_v29 = vunpack.c.h.b16 %v301_v23  ;;  %v305_v23 = vld [vmem:[%s4378_s18 + $0x170] sm:$0xff] }
 0x111   : > { %2543 = vmatmul.bf16.vlgmr.msrb.gmra.mxu2 %v713_v36  ;;  %2556 = vmatmul.bf16.vlgmr.msrb.gmra.mxu3 %v714_v37  ;;  %v721_v36 = vpack.c.b16 %v525_v24, %v525_v24  ;;  %v722_v37 = vpack.c.b16 %v526_v25, %v526_v25  ;;  %v533_v24 = vunpack.c.l.b16 %v200_v18  ;;  %v534_v25 = vunpack.c.h.b16 %v200_v18  ;;  %v204_v18 = vld [vmem:[%s4373_s15 + $0x158] sm:$0xff] }
 0x112   : > { %2646 = vmatpush.bf16.xpose.msrb.mxu2 %v1407_v39  ;;  %2659 = vmatpush.bf16.xpose.msrb.mxu3 %v1408_v40  ;;  %v1415_v39 = vpack.c.b16 %v1219_v26, %v1219_v26  ;;  %v1416_v40 = vpack.c.b16 %v1220_v27, %v1220_v27  ;;  %v1227_v26 = vunpack.c.l.b16 %v302_v20  ;;  %v1228_v27 = vunpack.c.h.b16 %v302_v20  ;;  %v306_v20 = vld [vmem:[%s4378_s18 + $0x178] sm:$0xff] }
 0x113   : > { %v2104_v47 = vpop.f32.mrf.mxu0  ;;  %v2117_v48 = vpop.f32.mrf.mxu1 }
 0x114   : > { %v2128_v44 = vpop.f32.mrf.mxu2  ;;  %v2141_v45 = vpop.f32.mrf.mxu3 }
 0x115   : > { %v2129_v46 = vadd.f32 %v2128_v44, %v2116_v43 }
 0x117   : > { %v2142_v51 = vadd.f32 %v2141_v45, %v2129_v46 }
 0x11b   : > { %v2154_v2 = vpop.f32.mrf.mxu0  ;;  %v2167_v3 = vpop.f32.mrf.mxu1 }
 0x11c   : > { %v2130_v62 = vpop.f32.mrf.mxu2  ;;  %v2143_v63 = vpop.f32.mrf.mxu3  ;;  %v2155_v6 = vadd.f32 %v2154_v2, %v2142_v51 }
 0x11e   : > { %v2168_v11 = vadd.f32 %v2167_v3, %v2155_v6  ;;  %2569 = vmatmul.bf16.vlgmr.msra.gmra.mxu0 %v715_v0  ;;  %2582 = vmatmul.bf16.vlgmr.msra.gmra.mxu1 %v716_v1  ;;  %v723_v0 = vpack.c.b16 %v527_v53, %v527_v53  ;;  %v724_v1 = vpack.c.b16 %v528_v54, %v528_v54  ;;  %v535_v53 = vunpack.c.l.b16 %v201_v49 }
 0x11f   : > { %2672 = vmatpush.bf16.xpose.msra.mxu0 %v1409_v9  ;;  %2685 = vmatpush.bf16.xpose.msra.mxu1 %v1410_v10  ;;  %v1417_v9 = vpack.c.b16 %v1221_v60, %v1221_v60  ;;  %v1418_v10 = vpack.c.b16 %v1222_v61, %v1222_v61  ;;  %v536_v54 = vunpack.c.h.b16 %v201_v49  ;;  %v1229_v60 = vunpack.c.l.b16 %v303_v55  ;;  %v205_v49 = vld [vmem:[%s4373_s15 + $0x160] sm:$0xff] }
 0x120   : > { %v1230_v61 = vunpack.c.h.b16 %v303_v55  ;;  %v307_v55 = vld [vmem:[%s4378_s18 + $0x180] sm:$0xff] }
 0x121   : > { %2595 = vmatmul.bf16.vlgmr.msra.gmra.mxu2 %v717_v4  ;;  %2608 = vmatmul.bf16.vlgmr.msra.gmra.mxu3 %v718_v5  ;;  %v725_v4 = vpack.c.b16 %v529_v56, %v529_v56  ;;  %v726_v5 = vpack.c.b16 %v530_v57, %v530_v57  ;;  %v537_v56 = vunpack.c.l.b16 %v202_v50  ;;  %v538_v57 = vunpack.c.h.b16 %v202_v50  ;;  %v206_v50 = vld [vmem:[%s4373_s15 + $0x168] sm:$0xff] }
 0x122   : > { %2698 = vmatpush.bf16.xpose.msra.mxu2 %v1411_v7  ;;  %2711 = vmatpush.bf16.xpose.msra.mxu3 %v1412_v8  ;;  %v1419_v7 = vpack.c.b16 %v1223_v58, %v1223_v58  ;;  %v1420_v8 = vpack.c.b16 %v1224_v59, %v1224_v59  ;;  %v1231_v58 = vunpack.c.l.b16 %v304_v52  ;;  %v1232_v59 = vunpack.c.h.b16 %v304_v52  ;;  %v308_v52 = vld [vmem:[%s4378_s18 + $0x188] sm:$0xff] }
 0x123   : > { %v2156_v15 = vpop.f32.mrf.mxu0  ;;  %v2169_v16 = vpop.f32.mrf.mxu1 }
 0x124   : > { %v2180_v12 = vpop.f32.mrf.mxu2  ;;  %v2193_v13 = vpop.f32.mrf.mxu3 }
 0x125   : > { %v2181_v14 = vadd.f32 %v2180_v12, %v2168_v11 }
 0x127   : > { %v2194_v19 = vadd.f32 %v2193_v13, %v2181_v14 }
 0x12b   : > { %v2206_v34 = vpop.f32.mrf.mxu0  ;;  %v2219_v35 = vpop.f32.mrf.mxu1 }
 0x12c   : > { %v2182_v30 = vpop.f32.mrf.mxu2  ;;  %v2195_v31 = vpop.f32.mrf.mxu3  ;;  %v2207_v38 = vadd.f32 %v2206_v34, %v2194_v19 }
 0x12e   : > { %v2220_v43 = vadd.f32 %v2219_v35, %v2207_v38  ;;  %2621 = vmatmul.bf16.vlgmr.msrb.gmra.mxu0 %v719_v32  ;;  %2634 = vmatmul.bf16.vlgmr.msrb.gmra.mxu1 %v720_v33  ;;  %v727_v32 = vpack.c.b16 %v531_v21, %v531_v21  ;;  %v728_v33 = vpack.c.b16 %v532_v22, %v532_v22  ;;  %v539_v21 = vunpack.c.l.b16 %v203_v17 }
 0x12f   : > { %2724 = vmatpush.bf16.xpose.msrb.mxu0 %v1413_v41  ;;  %2737 = vmatpush.bf16.xpose.msrb.mxu1 %v1414_v42  ;;  %v1421_v41 = vpack.c.b16 %v1225_v28, %v1225_v28  ;;  %v1422_v42 = vpack.c.b16 %v1226_v29, %v1226_v29  ;;  %v540_v22 = vunpack.c.h.b16 %v203_v17  ;;  %v1233_v28 = vunpack.c.l.b16 %v305_v23  ;;  %v207_v17 = vld [vmem:[%s4373_s15 + $0x170] sm:$0xff] }
 0x130   : > { %v1234_v29 = vunpack.c.h.b16 %v305_v23  ;;  %v309_v23 = vld [vmem:[%s4378_s18 + $0x190] sm:$0xff] }
 0x131   : > { %2647 = vmatmul.bf16.vlgmr.msrb.gmra.mxu2 %v721_v36  ;;  %2660 = vmatmul.bf16.vlgmr.msrb.gmra.mxu3 %v722_v37  ;;  %v729_v36 = vpack.c.b16 %v533_v24, %v533_v24  ;;  %v730_v37 = vpack.c.b16 %v534_v25, %v534_v25  ;;  %v541_v24 = vunpack.c.l.b16 %v204_v18  ;;  %v542_v25 = vunpack.c.h.b16 %v204_v18  ;;  %v208_v18 = vld [vmem:[%s4373_s15 + $0x178] sm:$0xff] }
 0x132   : > { %2750 = vmatpush.bf16.xpose.msrb.mxu2 %v1415_v39  ;;  %2763 = vmatpush.bf16.xpose.msrb.mxu3 %v1416_v40  ;;  %v1423_v39 = vpack.c.b16 %v1227_v26, %v1227_v26  ;;  %v1424_v40 = vpack.c.b16 %v1228_v27, %v1228_v27  ;;  %v1235_v26 = vunpack.c.l.b16 %v306_v20  ;;  %v1236_v27 = vunpack.c.h.b16 %v306_v20  ;;  %v310_v20 = vld [vmem:[%s4378_s18 + $0x198] sm:$0xff] }
 0x133   : > { %v2208_v47 = vpop.f32.mrf.mxu0  ;;  %v2221_v48 = vpop.f32.mrf.mxu1 }
 0x134   : > { %v2232_v44 = vpop.f32.mrf.mxu2  ;;  %v2245_v45 = vpop.f32.mrf.mxu3 }
 0x135   : > { %v2233_v46 = vadd.f32 %v2232_v44, %v2220_v43 }
 0x137   : > { %v2246_v51 = vadd.f32 %v2245_v45, %v2233_v46 }
 0x13b   : > { %v2258_v2 = vpop.f32.mrf.mxu0  ;;  %v2271_v3 = vpop.f32.mrf.mxu1 }
 0x13c   : > { %v2234_v62 = vpop.f32.mrf.mxu2  ;;  %v2247_v63 = vpop.f32.mrf.mxu3  ;;  %v2259_v6 = vadd.f32 %v2258_v2, %v2246_v51 }
 0x13e   : > { %v2272_v11 = vadd.f32 %v2271_v3, %v2259_v6  ;;  %2673 = vmatmul.bf16.vlgmr.msra.gmra.mxu0 %v723_v0  ;;  %2686 = vmatmul.bf16.vlgmr.msra.gmra.mxu1 %v724_v1  ;;  %v731_v0 = vpack.c.b16 %v535_v53, %v535_v53  ;;  %v732_v1 = vpack.c.b16 %v536_v54, %v536_v54  ;;  %v543_v53 = vunpack.c.l.b16 %v205_v49 }
 0x13f   : > { %2776 = vmatpush.bf16.xpose.msra.mxu0 %v1417_v9  ;;  %2789 = vmatpush.bf16.xpose.msra.mxu1 %v1418_v10  ;;  %v1425_v9 = vpack.c.b16 %v1229_v60, %v1229_v60  ;;  %v1426_v10 = vpack.c.b16 %v1230_v61, %v1230_v61  ;;  %v544_v54 = vunpack.c.h.b16 %v205_v49  ;;  %v1237_v60 = vunpack.c.l.b16 %v307_v55  ;;  %v209_v49 = vld [vmem:[%s4373_s15 + $0x180] sm:$0xff] }
 0x140   : > { %v1238_v61 = vunpack.c.h.b16 %v307_v55  ;;  %v311_v55 = vld [vmem:[%s4378_s18 + $0x1a0] sm:$0xff] }
 0x141   : > { %2699 = vmatmul.bf16.vlgmr.msra.gmra.mxu2 %v725_v4  ;;  %2712 = vmatmul.bf16.vlgmr.msra.gmra.mxu3 %v726_v5  ;;  %v733_v4 = vpack.c.b16 %v537_v56, %v537_v56  ;;  %v734_v5 = vpack.c.b16 %v538_v57, %v538_v57  ;;  %v545_v56 = vunpack.c.l.b16 %v206_v50  ;;  %v546_v57 = vunpack.c.h.b16 %v206_v50  ;;  %v210_v50 = vld [vmem:[%s4373_s15 + $0x188] sm:$0xff] }
 0x142   : > { %2802 = vmatpush.bf16.xpose.msra.mxu2 %v1419_v7  ;;  %2815 = vmatpush.bf16.xpose.msra.mxu3 %v1420_v8  ;;  %v1427_v7 = vpack.c.b16 %v1231_v58, %v1231_v58  ;;  %v1428_v8 = vpack.c.b16 %v1232_v59, %v1232_v59  ;;  %v1239_v58 = vunpack.c.l.b16 %v308_v52  ;;  %v1240_v59 = vunpack.c.h.b16 %v308_v52  ;;  %v312_v52 = vld [vmem:[%s4378_s18 + $0x1a8] sm:$0xff] }
 0x143   : > { %v2260_v15 = vpop.f32.mrf.mxu0  ;;  %v2273_v16 = vpop.f32.mrf.mxu1 }
 0x144   : > { %v2284_v12 = vpop.f32.mrf.mxu2  ;;  %v2297_v13 = vpop.f32.mrf.mxu3 }
 0x145   : > { %v2285_v14 = vadd.f32 %v2284_v12, %v2272_v11 }
 0x147   : > { %v2298_v19 = vadd.f32 %v2297_v13, %v2285_v14 }
 0x14b   : > { %v2310_v34 = vpop.f32.mrf.mxu0  ;;  %v2323_v35 = vpop.f32.mrf.mxu1 }
 0x14c   : > { %v2286_v30 = vpop.f32.mrf.mxu2  ;;  %v2299_v31 = vpop.f32.mrf.mxu3  ;;  %v2311_v38 = vadd.f32 %v2310_v34, %v2298_v19 }
 0x14e   : > { %v2324_v43 = vadd.f32 %v2323_v35, %v2311_v38  ;;  %2725 = vmatmul.bf16.vlgmr.msrb.gmra.mxu0 %v727_v32  ;;  %2738 = vmatmul.bf16.vlgmr.msrb.gmra.mxu1 %v728_v33  ;;  %v735_v32 = vpack.c.b16 %v539_v21, %v539_v21  ;;  %v736_v33 = vpack.c.b16 %v540_v22, %v540_v22  ;;  %v547_v21 = vunpack.c.l.b16 %v207_v17 }
 0x14f   : > { %2828 = vmatpush.bf16.xpose.msrb.mxu0 %v1421_v41  ;;  %2841 = vmatpush.bf16.xpose.msrb.mxu1 %v1422_v42  ;;  %v1429_v41 = vpack.c.b16 %v1233_v28, %v1233_v28  ;;  %v1430_v42 = vpack.c.b16 %v1234_v29, %v1234_v29  ;;  %v548_v22 = vunpack.c.h.b16 %v207_v17  ;;  %v1241_v28 = vunpack.c.l.b16 %v309_v23  ;;  %v211_v17 = vld [vmem:[%s4373_s15 + $0x190] sm:$0xff] }
 0x150   : > { %v1242_v29 = vunpack.c.h.b16 %v309_v23  ;;  %v313_v23 = vld [vmem:[%s4378_s18 + $0x1b0] sm:$0xff] }
 0x151   : > { %2751 = vmatmul.bf16.vlgmr.msrb.gmra.mxu2 %v729_v36  ;;  %2764 = vmatmul.bf16.vlgmr.msrb.gmra.mxu3 %v730_v37  ;;  %v737_v36 = vpack.c.b16 %v541_v24, %v541_v24  ;;  %v738_v37 = vpack.c.b16 %v542_v25, %v542_v25  ;;  %v549_v24 = vunpack.c.l.b16 %v208_v18  ;;  %v550_v25 = vunpack.c.h.b16 %v208_v18  ;;  %v212_v18 = vld [vmem:[%s4373_s15 + $0x198] sm:$0xff] }
 0x152   : > { %2854 = vmatpush.bf16.xpose.msrb.mxu2 %v1423_v39  ;;  %2867 = vmatpush.bf16.xpose.msrb.mxu3 %v1424_v40  ;;  %v1431_v39 = vpack.c.b16 %v1235_v26, %v1235_v26  ;;  %v1432_v40 = vpack.c.b16 %v1236_v27, %v1236_v27  ;;  %v1243_v26 = vunpack.c.l.b16 %v310_v20  ;;  %v1244_v27 = vunpack.c.h.b16 %v310_v20  ;;  %v314_v20 = vld [vmem:[%s4378_s18 + $0x1b8] sm:$0xff] }
 0x153   : > { %v2312_v47 = vpop.f32.mrf.mxu0  ;;  %v2325_v48 = vpop.f32.mrf.mxu1 }
 0x154   : > { %v2336_v44 = vpop.f32.mrf.mxu2  ;;  %v2349_v45 = vpop.f32.mrf.mxu3 }
 0x155   : > { %v2337_v46 = vadd.f32 %v2336_v44, %v2324_v43 }
 0x157   : > { %v2350_v51 = vadd.f32 %v2349_v45, %v2337_v46 }
 0x15b   : > { %v2362_v2 = vpop.f32.mrf.mxu0  ;;  %v2375_v3 = vpop.f32.mrf.mxu1 }
 0x15c   : > { %v2338_v62 = vpop.f32.mrf.mxu2  ;;  %v2351_v63 = vpop.f32.mrf.mxu3  ;;  %v2363_v6 = vadd.f32 %v2362_v2, %v2350_v51 }
 0x15e   : > { %v2376_v11 = vadd.f32 %v2375_v3, %v2363_v6  ;;  %2777 = vmatmul.bf16.vlgmr.msra.gmra.mxu0 %v731_v0  ;;  %2790 = vmatmul.bf16.vlgmr.msra.gmra.mxu1 %v732_v1  ;;  %v739_v0 = vpack.c.b16 %v543_v53, %v543_v53  ;;  %v740_v1 = vpack.c.b16 %v544_v54, %v544_v54  ;;  %v551_v53 = vunpack.c.l.b16 %v209_v49 }
 0x15f   : > { %2880 = vmatpush.bf16.xpose.msra.mxu0 %v1425_v9  ;;  %2893 = vmatpush.bf16.xpose.msra.mxu1 %v1426_v10  ;;  %v1433_v9 = vpack.c.b16 %v1237_v60, %v1237_v60  ;;  %v1434_v10 = vpack.c.b16 %v1238_v61, %v1238_v61  ;;  %v552_v54 = vunpack.c.h.b16 %v209_v49  ;;  %v1245_v60 = vunpack.c.l.b16 %v311_v55  ;;  %v213_v49 = vld [vmem:[%s4373_s15 + $0x1a0] sm:$0xff] }
 0x160   : > { %v1246_v61 = vunpack.c.h.b16 %v311_v55  ;;  %v315_v55 = vld [vmem:[%s4378_s18 + $0x1c0] sm:$0xff] }
 0x161   : > { %2803 = vmatmul.bf16.vlgmr.msra.gmra.mxu2 %v733_v4  ;;  %2816 = vmatmul.bf16.vlgmr.msra.gmra.mxu3 %v734_v5  ;;  %v741_v4 = vpack.c.b16 %v545_v56, %v545_v56  ;;  %v742_v5 = vpack.c.b16 %v546_v57, %v546_v57  ;;  %v553_v56 = vunpack.c.l.b16 %v210_v50  ;;  %v554_v57 = vunpack.c.h.b16 %v210_v50  ;;  %v214_v50 = vld [vmem:[%s4373_s15 + $0x1a8] sm:$0xff] }
 0x162   : > { %2906 = vmatpush.bf16.xpose.msra.mxu2 %v1427_v7  ;;  %2919 = vmatpush.bf16.xpose.msra.mxu3 %v1428_v8  ;;  %v1435_v7 = vpack.c.b16 %v1239_v58, %v1239_v58  ;;  %v1436_v8 = vpack.c.b16 %v1240_v59, %v1240_v59  ;;  %v1247_v58 = vunpack.c.l.b16 %v312_v52  ;;  %v1248_v59 = vunpack.c.h.b16 %v312_v52  ;;  %v316_v52 = vld [vmem:[%s4378_s18 + $0x1c8] sm:$0xff] }
 0x163   : > { %v2364_v15 = vpop.f32.mrf.mxu0  ;;  %v2377_v16 = vpop.f32.mrf.mxu1 }
 0x164   : > { %v2388_v12 = vpop.f32.mrf.mxu2  ;;  %v2401_v13 = vpop.f32.mrf.mxu3 }
 0x165   : > { %v2389_v14 = vadd.f32 %v2388_v12, %v2376_v11 }
 0x167   : > { %v2402_v19 = vadd.f32 %v2401_v13, %v2389_v14 }
 0x16b   : > { %v2414_v34 = vpop.f32.mrf.mxu0  ;;  %v2427_v35 = vpop.f32.mrf.mxu1 }
 0x16c   : > { %v2390_v30 = vpop.f32.mrf.mxu2  ;;  %v2403_v31 = vpop.f32.mrf.mxu3  ;;  %v2415_v38 = vadd.f32 %v2414_v34, %v2402_v19 }
 0x16e   : > { %v2428_v43 = vadd.f32 %v2427_v35, %v2415_v38  ;;  %2829 = vmatmul.bf16.vlgmr.msrb.gmra.mxu0 %v735_v32  ;;  %2842 = vmatmul.bf16.vlgmr.msrb.gmra.mxu1 %v736_v33  ;;  %v743_v32 = vpack.c.b16 %v547_v21, %v547_v21  ;;  %v744_v33 = vpack.c.b16 %v548_v22, %v548_v22  ;;  %v555_v21 = vunpack.c.l.b16 %v211_v17 }
 0x16f   : > { %2932 = vmatpush.bf16.xpose.msrb.mxu0 %v1429_v41  ;;  %2945 = vmatpush.bf16.xpose.msrb.mxu1 %v1430_v42  ;;  %v1437_v41 = vpack.c.b16 %v1241_v28, %v1241_v28  ;;  %v1438_v42 = vpack.c.b16 %v1242_v29, %v1242_v29  ;;  %v556_v22 = vunpack.c.h.b16 %v211_v17  ;;  %v1249_v28 = vunpack.c.l.b16 %v313_v23  ;;  %v215_v17 = vld [vmem:[%s4373_s15 + $0x1b0] sm:$0xff] }
 0x170   : > { %v1250_v29 = vunpack.c.h.b16 %v313_v23  ;;  %v317_v23 = vld [vmem:[%s4378_s18 + $0x1d0] sm:$0xff] }
 0x171   : > { %2855 = vmatmul.bf16.vlgmr.msrb.gmra.mxu2 %v737_v36  ;;  %2868 = vmatmul.bf16.vlgmr.msrb.gmra.mxu3 %v738_v37  ;;  %v745_v36 = vpack.c.b16 %v549_v24, %v549_v24  ;;  %v746_v37 = vpack.c.b16 %v550_v25, %v550_v25  ;;  %v557_v24 = vunpack.c.l.b16 %v212_v18  ;;  %v558_v25 = vunpack.c.h.b16 %v212_v18  ;;  %v216_v18 = vld [vmem:[%s4373_s15 + $0x1b8] sm:$0xff] }
 0x172   : > { %2958 = vmatpush.bf16.xpose.msrb.mxu2 %v1431_v39  ;;  %2971 = vmatpush.bf16.xpose.msrb.mxu3 %v1432_v40  ;;  %v1439_v39 = vpack.c.b16 %v1243_v26, %v1243_v26  ;;  %v1440_v40 = vpack.c.b16 %v1244_v27, %v1244_v27  ;;  %v1251_v26 = vunpack.c.l.b16 %v314_v20  ;;  %v1252_v27 = vunpack.c.h.b16 %v314_v20  ;;  %v318_v20 = vld [vmem:[%s4378_s18 + $0x1d8] sm:$0xff] }
 0x173   : > { %v2416_v47 = vpop.f32.mrf.mxu0  ;;  %v2429_v48 = vpop.f32.mrf.mxu1 }
 0x174   : > { %v2440_v44 = vpop.f32.mrf.mxu2  ;;  %v2453_v45 = vpop.f32.mrf.mxu3 }
 0x175   : > { %v2441_v46 = vadd.f32 %v2440_v44, %v2428_v43 }
 0x177   : > { %v2454_v51 = vadd.f32 %v2453_v45, %v2441_v46 }
 0x17b   : > { %v2466_v2 = vpop.f32.mrf.mxu0  ;;  %v2479_v3 = vpop.f32.mrf.mxu1 }
 0x17c   : > { %v2442_v62 = vpop.f32.mrf.mxu2  ;;  %v2455_v63 = vpop.f32.mrf.mxu3  ;;  %v2467_v6 = vadd.f32 %v2466_v2, %v2454_v51 }
 0x17e   : > { %v2480_v11 = vadd.f32 %v2479_v3, %v2467_v6  ;;  %2881 = vmatmul.bf16.vlgmr.msra.gmra.mxu0 %v739_v0  ;;  %2894 = vmatmul.bf16.vlgmr.msra.gmra.mxu1 %v740_v1  ;;  %v747_v0 = vpack.c.b16 %v551_v53, %v551_v53  ;;  %v748_v1 = vpack.c.b16 %v552_v54, %v552_v54  ;;  %v559_v53 = vunpack.c.l.b16 %v213_v49 }
 0x17f   : > { %2984 = vmatpush.bf16.xpose.msra.mxu0 %v1433_v9  ;;  %2997 = vmatpush.bf16.xpose.msra.mxu1 %v1434_v10  ;;  %v1441_v9 = vpack.c.b16 %v1245_v60, %v1245_v60  ;;  %v1442_v10 = vpack.c.b16 %v1246_v61, %v1246_v61  ;;  %v560_v54 = vunpack.c.h.b16 %v213_v49  ;;  %v1253_v60 = vunpack.c.l.b16 %v315_v55  ;;  %v217_v49 = vld [vmem:[%s4373_s15 + $0x1c0] sm:$0xff] }
 0x180   : > { %v1254_v61 = vunpack.c.h.b16 %v315_v55  ;;  %v319_v55 = vld [vmem:[%s4378_s18 + $0x1e0] sm:$0xff] }
 0x181   : > { %2907 = vmatmul.bf16.vlgmr.msra.gmra.mxu2 %v741_v4  ;;  %2920 = vmatmul.bf16.vlgmr.msra.gmra.mxu3 %v742_v5  ;;  %v749_v4 = vpack.c.b16 %v553_v56, %v553_v56  ;;  %v750_v5 = vpack.c.b16 %v554_v57, %v554_v57  ;;  %v561_v56 = vunpack.c.l.b16 %v214_v50  ;;  %v562_v57 = vunpack.c.h.b16 %v214_v50  ;;  %v218_v50 = vld [vmem:[%s4373_s15 + $0x1c8] sm:$0xff] }
 0x182   : > { %3010 = vmatpush.bf16.xpose.msra.mxu2 %v1435_v7  ;;  %3023 = vmatpush.bf16.xpose.msra.mxu3 %v1436_v8  ;;  %v1443_v7 = vpack.c.b16 %v1247_v58, %v1247_v58  ;;  %v1444_v8 = vpack.c.b16 %v1248_v59, %v1248_v59  ;;  %v1255_v58 = vunpack.c.l.b16 %v316_v52  ;;  %v1256_v59 = vunpack.c.h.b16 %v316_v52  ;;  %v320_v52 = vld [vmem:[%s4378_s18 + $0x1e8] sm:$0xff] }
 0x183   : > { %v2468_v15 = vpop.f32.mrf.mxu0  ;;  %v2481_v16 = vpop.f32.mrf.mxu1 }
 0x184   : > { %v2492_v12 = vpop.f32.mrf.mxu2  ;;  %v2505_v13 = vpop.f32.mrf.mxu3 }
 0x185   : > { %v2493_v14 = vadd.f32 %v2492_v12, %v2480_v11 }
 0x187   : > { %v2506_v19 = vadd.f32 %v2505_v13, %v2493_v14 }
 0x18b   : > { %v2518_v34 = vpop.f32.mrf.mxu0  ;;  %v2531_v35 = vpop.f32.mrf.mxu1 }
 0x18c   : > { %v2494_v30 = vpop.f32.mrf.mxu2  ;;  %v2507_v31 = vpop.f32.mrf.mxu3  ;;  %v2519_v38 = vadd.f32 %v2518_v34, %v2506_v19 }
 0x18e   : > { %v2532_v43 = vadd.f32 %v2531_v35, %v2519_v38  ;;  %2933 = vmatmul.bf16.vlgmr.msrb.gmra.mxu0 %v743_v32  ;;  %2946 = vmatmul.bf16.vlgmr.msrb.gmra.mxu1 %v744_v33  ;;  %v751_v32 = vpack.c.b16 %v555_v21, %v555_v21  ;;  %v752_v33 = vpack.c.b16 %v556_v22, %v556_v22  ;;  %v563_v21 = vunpack.c.l.b16 %v215_v17 }
 0x18f   : > { %3036 = vmatpush.bf16.xpose.msrb.mxu0 %v1437_v41  ;;  %3049 = vmatpush.bf16.xpose.msrb.mxu1 %v1438_v42  ;;  %v1445_v41 = vpack.c.b16 %v1249_v28, %v1249_v28  ;;  %v1446_v42 = vpack.c.b16 %v1250_v29, %v1250_v29  ;;  %v564_v22 = vunpack.c.h.b16 %v215_v17  ;;  %v1257_v28 = vunpack.c.l.b16 %v317_v23  ;;  %v219_v17 = vld [vmem:[%s4373_s15 + $0x1d0] sm:$0xff] }
 0x190   : > { %v1258_v29 = vunpack.c.h.b16 %v317_v23  ;;  %v321_v23 = vld [vmem:[%s4378_s18 + $0x1f0] sm:$0xff] }
 0x191   : > { %2959 = vmatmul.bf16.vlgmr.msrb.gmra.mxu2 %v745_v36  ;;  %2972 = vmatmul.bf16.vlgmr.msrb.gmra.mxu3 %v746_v37  ;;  %v753_v36 = vpack.c.b16 %v557_v24, %v557_v24  ;;  %v754_v37 = vpack.c.b16 %v558_v25, %v558_v25  ;;  %v565_v24 = vunpack.c.l.b16 %v216_v18  ;;  %v566_v25 = vunpack.c.h.b16 %v216_v18  ;;  %v220_v18 = vld [vmem:[%s4373_s15 + $0x1d8] sm:$0xff] }
 0x192   : > { %3062 = vmatpush.bf16.xpose.msrb.mxu2 %v1439_v39  ;;  %3075 = vmatpush.bf16.xpose.msrb.mxu3 %v1440_v40  ;;  %v1447_v39 = vpack.c.b16 %v1251_v26, %v1251_v26  ;;  %v1448_v40 = vpack.c.b16 %v1252_v27, %v1252_v27  ;;  %v1259_v26 = vunpack.c.l.b16 %v318_v20  ;;  %v1260_v27 = vunpack.c.h.b16 %v318_v20  ;;  %v322_v20 = vld [vmem:[%s4378_s18 + $0x1f8] sm:$0xff] }
 0x193   : > { %v2520_v47 = vpop.f32.mrf.mxu0  ;;  %v2533_v48 = vpop.f32.mrf.mxu1 }
 0x194   : > { %v2544_v44 = vpop.f32.mrf.mxu2  ;;  %v2557_v45 = vpop.f32.mrf.mxu3 }
 0x195   : > { %v2545_v46 = vadd.f32 %v2544_v44, %v2532_v43 }
 0x197   : > { %v2558_v51 = vadd.f32 %v2557_v45, %v2545_v46 }
 0x19b   : > { %v2570_v2 = vpop.f32.mrf.mxu0  ;;  %v2583_v3 = vpop.f32.mrf.mxu1 }
 0x19c   : > { %v2546_v62 = vpop.f32.mrf.mxu2  ;;  %v2559_v63 = vpop.f32.mrf.mxu3  ;;  %v2571_v6 = vadd.f32 %v2570_v2, %v2558_v51 }
 0x19e   : > { %v2584_v11 = vadd.f32 %v2583_v3, %v2571_v6  ;;  %2985 = vmatmul.bf16.vlgmr.msra.gmra.mxu0 %v747_v0  ;;  %2998 = vmatmul.bf16.vlgmr.msra.gmra.mxu1 %v748_v1  ;;  %v755_v0 = vpack.c.b16 %v559_v53, %v559_v53  ;;  %v756_v1 = vpack.c.b16 %v560_v54, %v560_v54  ;;  %v567_v53 = vunpack.c.l.b16 %v217_v49 }
 0x19f   : > { %3088 = vmatpush.bf16.xpose.msra.mxu0 %v1441_v9  ;;  %3101 = vmatpush.bf16.xpose.msra.mxu1 %v1442_v10  ;;  %v1449_v9 = vpack.c.b16 %v1253_v60, %v1253_v60  ;;  %v1450_v10 = vpack.c.b16 %v1254_v61, %v1254_v61  ;;  %v568_v54 = vunpack.c.h.b16 %v217_v49  ;;  %v1261_v60 = vunpack.c.l.b16 %v319_v55  ;;  %v221_v49 = vld [vmem:[%s4373_s15 + $0x1e0] sm:$0xff] }
 0x1a0   : > { %v1262_v61 = vunpack.c.h.b16 %v319_v55  ;;  %v323_v55 = vld [vmem:[%s4378_s18 + $0x200] sm:$0xff] }
 0x1a1   : > { %3011 = vmatmul.bf16.vlgmr.msra.gmra.mxu2 %v749_v4  ;;  %3024 = vmatmul.bf16.vlgmr.msra.gmra.mxu3 %v750_v5  ;;  %v757_v4 = vpack.c.b16 %v561_v56, %v561_v56  ;;  %v758_v5 = vpack.c.b16 %v562_v57, %v562_v57  ;;  %v569_v56 = vunpack.c.l.b16 %v218_v50  ;;  %v570_v57 = vunpack.c.h.b16 %v218_v50  ;;  %v222_v50 = vld [vmem:[%s4373_s15 + $0x1e8] sm:$0xff] }
 0x1a2   : > { %3114 = vmatpush.bf16.xpose.msra.mxu2 %v1443_v7  ;;  %3127 = vmatpush.bf16.xpose.msra.mxu3 %v1444_v8  ;;  %v1451_v7 = vpack.c.b16 %v1255_v58, %v1255_v58  ;;  %v1452_v8 = vpack.c.b16 %v1256_v59, %v1256_v59  ;;  %v1263_v58 = vunpack.c.l.b16 %v320_v52  ;;  %v1264_v59 = vunpack.c.h.b16 %v320_v52  ;;  %v324_v52 = vld [vmem:[%s4378_s18 + $0x208] sm:$0xff] }
 0x1a3   : > { %v2572_v15 = vpop.f32.mrf.mxu0  ;;  %v2585_v16 = vpop.f32.mrf.mxu1 }
 0x1a4   : > { %v2596_v12 = vpop.f32.mrf.mxu2  ;;  %v2609_v13 = vpop.f32.mrf.mxu3 }
 0x1a5   : > { %v2597_v14 = vadd.f32 %v2596_v12, %v2584_v11 }
 0x1a7   : > { %v2610_v19 = vadd.f32 %v2609_v13, %v2597_v14 }
 0x1ab   : > { %v2622_v34 = vpop.f32.mrf.mxu0  ;;  %v2635_v35 = vpop.f32.mrf.mxu1 }
 0x1ac   : > { %v2598_v30 = vpop.f32.mrf.mxu2  ;;  %v2611_v31 = vpop.f32.mrf.mxu3  ;;  %v2623_v38 = vadd.f32 %v2622_v34, %v2610_v19 }
 0x1ae   : > { %v2636_v43 = vadd.f32 %v2635_v35, %v2623_v38  ;;  %3037 = vmatmul.bf16.vlgmr.msrb.gmra.mxu0 %v751_v32  ;;  %3050 = vmatmul.bf16.vlgmr.msrb.gmra.mxu1 %v752_v33  ;;  %v759_v32 = vpack.c.b16 %v563_v21, %v563_v21  ;;  %v760_v33 = vpack.c.b16 %v564_v22, %v564_v22  ;;  %v571_v21 = vunpack.c.l.b16 %v219_v17 }
 0x1af   : > { %3140 = vmatpush.bf16.xpose.msrb.mxu0 %v1445_v41  ;;  %3153 = vmatpush.bf16.xpose.msrb.mxu1 %v1446_v42  ;;  %v1453_v41 = vpack.c.b16 %v1257_v28, %v1257_v28  ;;  %v1454_v42 = vpack.c.b16 %v1258_v29, %v1258_v29  ;;  %v572_v22 = vunpack.c.h.b16 %v219_v17  ;;  %v1265_v28 = vunpack.c.l.b16 %v321_v23  ;;  %v223_v17 = vld [vmem:[%s4373_s15 + $0x1f0] sm:$0xff] }
 0x1b0   : > { %v1266_v29 = vunpack.c.h.b16 %v321_v23  ;;  %v325_v23 = vld [vmem:[%s4378_s18 + $0x210] sm:$0xff] }
 0x1b1   : > { %3063 = vmatmul.bf16.vlgmr.msrb.gmra.mxu2 %v753_v36  ;;  %3076 = vmatmul.bf16.vlgmr.msrb.gmra.mxu3 %v754_v37  ;;  %v761_v36 = vpack.c.b16 %v565_v24, %v565_v24  ;;  %v762_v37 = vpack.c.b16 %v566_v25, %v566_v25  ;;  %v573_v24 = vunpack.c.l.b16 %v220_v18  ;;  %v574_v25 = vunpack.c.h.b16 %v220_v18  ;;  %v224_v18 = vld [vmem:[%s4373_s15 + $0x1f8] sm:$0xff] }
 0x1b2   : > { %3166 = vmatpush.bf16.xpose.msrb.mxu2 %v1447_v39  ;;  %3179 = vmatpush.bf16.xpose.msrb.mxu3 %v1448_v40  ;;  %v1455_v39 = vpack.c.b16 %v1259_v26, %v1259_v26  ;;  %v1456_v40 = vpack.c.b16 %v1260_v27, %v1260_v27  ;;  %v1267_v26 = vunpack.c.l.b16 %v322_v20  ;;  %v1268_v27 = vunpack.c.h.b16 %v322_v20  ;;  %v326_v20 = vld [vmem:[%s4378_s18 + $0x218] sm:$0xff] }
 0x1b3   : > { %v2624_v47 = vpop.f32.mrf.mxu0  ;;  %v2637_v48 = vpop.f32.mrf.mxu1 }
 0x1b4   : > { %v2648_v44 = vpop.f32.mrf.mxu2  ;;  %v2661_v45 = vpop.f32.mrf.mxu3 }
 0x1b5   : > { %v2649_v46 = vadd.f32 %v2648_v44, %v2636_v43 }
 0x1b7   : > { %v2662_v51 = vadd.f32 %v2661_v45, %v2649_v46 }
 0x1bb   : > { %v2674_v2 = vpop.f32.mrf.mxu0  ;;  %v2687_v3 = vpop.f32.mrf.mxu1 }
 0x1bc   : > { %v2650_v62 = vpop.f32.mrf.mxu2  ;;  %v2663_v63 = vpop.f32.mrf.mxu3  ;;  %v2675_v6 = vadd.f32 %v2674_v2, %v2662_v51 }
 0x1be   : > { %v2688_v11 = vadd.f32 %v2687_v3, %v2675_v6  ;;  %3089 = vmatmul.bf16.vlgmr.msra.gmra.mxu0 %v755_v0  ;;  %3102 = vmatmul.bf16.vlgmr.msra.gmra.mxu1 %v756_v1  ;;  %v763_v0 = vpack.c.b16 %v567_v53, %v567_v53  ;;  %v764_v1 = vpack.c.b16 %v568_v54, %v568_v54  ;;  %v575_v53 = vunpack.c.l.b16 %v221_v49 }
 0x1bf   : > { %3192 = vmatpush.bf16.xpose.msra.mxu0 %v1449_v9  ;;  %3205 = vmatpush.bf16.xpose.msra.mxu1 %v1450_v10  ;;  %v1457_v9 = vpack.c.b16 %v1261_v60, %v1261_v60  ;;  %v1458_v10 = vpack.c.b16 %v1262_v61, %v1262_v61  ;;  %v576_v54 = vunpack.c.h.b16 %v221_v49  ;;  %v1269_v60 = vunpack.c.l.b16 %v323_v55  ;;  %v225_v49 = vld [vmem:[%s4373_s15 + $0x200] sm:$0xff] }
 0x1c0   : > { %v1270_v61 = vunpack.c.h.b16 %v323_v55  ;;  %v327_v55 = vld [vmem:[%s4378_s18 + $0x220] sm:$0xff] }
 0x1c1   : > { %3115 = vmatmul.bf16.vlgmr.msra.gmra.mxu2 %v757_v4  ;;  %3128 = vmatmul.bf16.vlgmr.msra.gmra.mxu3 %v758_v5  ;;  %v765_v4 = vpack.c.b16 %v569_v56, %v569_v56  ;;  %v766_v5 = vpack.c.b16 %v570_v57, %v570_v57  ;;  %v577_v56 = vunpack.c.l.b16 %v222_v50  ;;  %v578_v57 = vunpack.c.h.b16 %v222_v50  ;;  %v226_v50 = vld [vmem:[%s4373_s15 + $0x208] sm:$0xff] }
 0x1c2   : > { %3218 = vmatpush.bf16.xpose.msra.mxu2 %v1451_v7  ;;  %3231 = vmatpush.bf16.xpose.msra.mxu3 %v1452_v8  ;;  %v1459_v7 = vpack.c.b16 %v1263_v58, %v1263_v58  ;;  %v1460_v8 = vpack.c.b16 %v1264_v59, %v1264_v59  ;;  %v1271_v58 = vunpack.c.l.b16 %v324_v52  ;;  %v1272_v59 = vunpack.c.h.b16 %v324_v52  ;;  %v328_v52 = vld [vmem:[%s4378_s18 + $0x228] sm:$0xff] }
 0x1c3   : > { %v2676_v15 = vpop.f32.mrf.mxu0  ;;  %v2689_v16 = vpop.f32.mrf.mxu1 }
 0x1c4   : > { %v2700_v12 = vpop.f32.mrf.mxu2  ;;  %v2713_v13 = vpop.f32.mrf.mxu3 }
 0x1c5   : > { %v2701_v14 = vadd.f32 %v2700_v12, %v2688_v11 }
 0x1c7   : > { %v2714_v19 = vadd.f32 %v2713_v13, %v2701_v14 }
 0x1cb   : > { %v2726_v34 = vpop.f32.mrf.mxu0  ;;  %v2739_v35 = vpop.f32.mrf.mxu1 }
 0x1cc   : > { %v2702_v30 = vpop.f32.mrf.mxu2  ;;  %v2715_v31 = vpop.f32.mrf.mxu3  ;;  %v2727_v38 = vadd.f32 %v2726_v34, %v2714_v19 }
 0x1ce   : > { %v2740_v43 = vadd.f32 %v2739_v35, %v2727_v38  ;;  %3141 = vmatmul.bf16.vlgmr.msrb.gmra.mxu0 %v759_v32  ;;  %3154 = vmatmul.bf16.vlgmr.msrb.gmra.mxu1 %v760_v33  ;;  %v767_v32 = vpack.c.b16 %v571_v21, %v571_v21  ;;  %v768_v33 = vpack.c.b16 %v572_v22, %v572_v22  ;;  %v579_v21 = vunpack.c.l.b16 %v223_v17 }
 0x1cf   : > { %3244 = vmatpush.bf16.xpose.msrb.mxu0 %v1453_v41  ;;  %3257 = vmatpush.bf16.xpose.msrb.mxu1 %v1454_v42  ;;  %v1461_v41 = vpack.c.b16 %v1265_v28, %v1265_v28  ;;  %v1462_v42 = vpack.c.b16 %v1266_v29, %v1266_v29  ;;  %v580_v22 = vunpack.c.h.b16 %v223_v17  ;;  %v1273_v28 = vunpack.c.l.b16 %v325_v23  ;;  %v227_v17 = vld [vmem:[%s4373_s15 + $0x210] sm:$0xff] }
 0x1d0   : > { %v1274_v29 = vunpack.c.h.b16 %v325_v23  ;;  %v329_v23 = vld [vmem:[%s4378_s18 + $0x230] sm:$0xff] }
 0x1d1   : > { %3167 = vmatmul.bf16.vlgmr.msrb.gmra.mxu2 %v761_v36  ;;  %3180 = vmatmul.bf16.vlgmr.msrb.gmra.mxu3 %v762_v37  ;;  %v769_v36 = vpack.c.b16 %v573_v24, %v573_v24  ;;  %v770_v37 = vpack.c.b16 %v574_v25, %v574_v25  ;;  %v581_v24 = vunpack.c.l.b16 %v224_v18  ;;  %v582_v25 = vunpack.c.h.b16 %v224_v18  ;;  %v228_v18 = vld [vmem:[%s4373_s15 + $0x218] sm:$0xff] }
 0x1d2   : > { %3270 = vmatpush.bf16.xpose.msrb.mxu2 %v1455_v39  ;;  %3283 = vmatpush.bf16.xpose.msrb.mxu3 %v1456_v40  ;;  %v1463_v39 = vpack.c.b16 %v1267_v26, %v1267_v26  ;;  %v1464_v40 = vpack.c.b16 %v1268_v27, %v1268_v27  ;;  %v1275_v26 = vunpack.c.l.b16 %v326_v20  ;;  %v1276_v27 = vunpack.c.h.b16 %v326_v20  ;;  %v330_v20 = vld [vmem:[%s4378_s18 + $0x238] sm:$0xff] }
 0x1d3   : > { %v2728_v47 = vpop.f32.mrf.mxu0  ;;  %v2741_v48 = vpop.f32.mrf.mxu1 }
 0x1d4   : > { %v2752_v44 = vpop.f32.mrf.mxu2  ;;  %v2765_v45 = vpop.f32.mrf.mxu3 }
 0x1d5   : > { %v2753_v46 = vadd.f32 %v2752_v44, %v2740_v43 }
 0x1d7   : > { %v2766_v51 = vadd.f32 %v2765_v45, %v2753_v46 }
 0x1db   : > { %v2778_v2 = vpop.f32.mrf.mxu0  ;;  %v2791_v3 = vpop.f32.mrf.mxu1 }
 0x1dc   : > { %v2754_v62 = vpop.f32.mrf.mxu2  ;;  %v2767_v63 = vpop.f32.mrf.mxu3  ;;  %v2779_v6 = vadd.f32 %v2778_v2, %v2766_v51 }
 0x1de   : > { %v2792_v11 = vadd.f32 %v2791_v3, %v2779_v6  ;;  %3193 = vmatmul.bf16.vlgmr.msra.gmra.mxu0 %v763_v0  ;;  %3206 = vmatmul.bf16.vlgmr.msra.gmra.mxu1 %v764_v1  ;;  %v771_v0 = vpack.c.b16 %v575_v53, %v575_v53  ;;  %v772_v1 = vpack.c.b16 %v576_v54, %v576_v54  ;;  %v583_v53 = vunpack.c.l.b16 %v225_v49 }
 0x1df   : > { %3296 = vmatpush.bf16.xpose.msra.mxu0 %v1457_v9  ;;  %3309 = vmatpush.bf16.xpose.msra.mxu1 %v1458_v10  ;;  %v1465_v9 = vpack.c.b16 %v1269_v60, %v1269_v60  ;;  %v1466_v10 = vpack.c.b16 %v1270_v61, %v1270_v61  ;;  %v584_v54 = vunpack.c.h.b16 %v225_v49  ;;  %v1277_v60 = vunpack.c.l.b16 %v327_v55  ;;  %v229_v49 = vld [vmem:[%s4373_s15 + $0x220] sm:$0xff] }
 0x1e0   : > { %v1278_v61 = vunpack.c.h.b16 %v327_v55  ;;  %v331_v55 = vld [vmem:[%s4378_s18 + $0x240] sm:$0xff] }
 0x1e1   : > { %3219 = vmatmul.bf16.vlgmr.msra.gmra.mxu2 %v765_v4  ;;  %3232 = vmatmul.bf16.vlgmr.msra.gmra.mxu3 %v766_v5  ;;  %v773_v4 = vpack.c.b16 %v577_v56, %v577_v56  ;;  %v774_v5 = vpack.c.b16 %v578_v57, %v578_v57  ;;  %v585_v56 = vunpack.c.l.b16 %v226_v50  ;;  %v586_v57 = vunpack.c.h.b16 %v226_v50  ;;  %v230_v50 = vld [vmem:[%s4373_s15 + $0x228] sm:$0xff] }
 0x1e2   : > { %3322 = vmatpush.bf16.xpose.msra.mxu2 %v1459_v7  ;;  %3335 = vmatpush.bf16.xpose.msra.mxu3 %v1460_v8  ;;  %v1467_v7 = vpack.c.b16 %v1271_v58, %v1271_v58  ;;  %v1468_v8 = vpack.c.b16 %v1272_v59, %v1272_v59  ;;  %v1279_v58 = vunpack.c.l.b16 %v328_v52  ;;  %v1280_v59 = vunpack.c.h.b16 %v328_v52  ;;  %v332_v52 = vld [vmem:[%s4378_s18 + $0x248] sm:$0xff] }
 0x1e3   : > { %v2780_v15 = vpop.f32.mrf.mxu0  ;;  %v2793_v16 = vpop.f32.mrf.mxu1 }
 0x1e4   : > { %v2804_v12 = vpop.f32.mrf.mxu2  ;;  %v2817_v13 = vpop.f32.mrf.mxu3 }
 0x1e5   : > { %v2805_v14 = vadd.f32 %v2804_v12, %v2792_v11 }
 0x1e7   : > { %v2818_v19 = vadd.f32 %v2817_v13, %v2805_v14 }
 0x1eb   : > { %v2830_v34 = vpop.f32.mrf.mxu0  ;;  %v2843_v35 = vpop.f32.mrf.mxu1 }
 0x1ec   : > { %v2806_v30 = vpop.f32.mrf.mxu2  ;;  %v2819_v31 = vpop.f32.mrf.mxu3  ;;  %v2831_v38 = vadd.f32 %v2830_v34, %v2818_v19 }
 0x1ee   : > { %v2844_v43 = vadd.f32 %v2843_v35, %v2831_v38  ;;  %3245 = vmatmul.bf16.vlgmr.msrb.gmra.mxu0 %v767_v32  ;;  %3258 = vmatmul.bf16.vlgmr.msrb.gmra.mxu1 %v768_v33  ;;  %v775_v32 = vpack.c.b16 %v579_v21, %v579_v21  ;;  %v776_v33 = vpack.c.b16 %v580_v22, %v580_v22  ;;  %v587_v21 = vunpack.c.l.b16 %v227_v17 }
 0x1ef   : > { %3348 = vmatpush.bf16.xpose.msrb.mxu0 %v1461_v41  ;;  %3361 = vmatpush.bf16.xpose.msrb.mxu1 %v1462_v42  ;;  %v1469_v41 = vpack.c.b16 %v1273_v28, %v1273_v28  ;;  %v1470_v42 = vpack.c.b16 %v1274_v29, %v1274_v29  ;;  %v588_v22 = vunpack.c.h.b16 %v227_v17  ;;  %v1281_v28 = vunpack.c.l.b16 %v329_v23  ;;  %v231_v17 = vld [vmem:[%s4373_s15 + $0x230] sm:$0xff] }
 0x1f0   : > { %v1282_v29 = vunpack.c.h.b16 %v329_v23  ;;  %v333_v23 = vld [vmem:[%s4378_s18 + $0x250] sm:$0xff] }
 0x1f1   : > { %3271 = vmatmul.bf16.vlgmr.msrb.gmra.mxu2 %v769_v36  ;;  %3284 = vmatmul.bf16.vlgmr.msrb.gmra.mxu3 %v770_v37  ;;  %v777_v36 = vpack.c.b16 %v581_v24, %v581_v24  ;;  %v778_v37 = vpack.c.b16 %v582_v25, %v582_v25  ;;  %v589_v24 = vunpack.c.l.b16 %v228_v18  ;;  %v590_v25 = vunpack.c.h.b16 %v228_v18  ;;  %v232_v18 = vld [vmem:[%s4373_s15 + $0x238] sm:$0xff] }
 0x1f2   : > { %3374 = vmatpush.bf16.xpose.msrb.mxu2 %v1463_v39  ;;  %3387 = vmatpush.bf16.xpose.msrb.mxu3 %v1464_v40  ;;  %v1471_v39 = vpack.c.b16 %v1275_v26, %v1275_v26  ;;  %v1472_v40 = vpack.c.b16 %v1276_v27, %v1276_v27  ;;  %v1283_v26 = vunpack.c.l.b16 %v330_v20  ;;  %v1284_v27 = vunpack.c.h.b16 %v330_v20  ;;  %v334_v20 = vld [vmem:[%s4378_s18 + $0x258] sm:$0xff] }
 0x1f3   : > { %v2832_v47 = vpop.f32.mrf.mxu0  ;;  %v2845_v48 = vpop.f32.mrf.mxu1 }
 0x1f4   : > { %v2856_v44 = vpop.f32.mrf.mxu2  ;;  %v2869_v45 = vpop.f32.mrf.mxu3 }
 0x1f5   : > { %v2857_v46 = vadd.f32 %v2856_v44, %v2844_v43 }
 0x1f7   : > { %v2870_v51 = vadd.f32 %v2869_v45, %v2857_v46 }
 0x1fb   : > { %v2882_v2 = vpop.f32.mrf.mxu0  ;;  %v2895_v3 = vpop.f32.mrf.mxu1 }
 0x1fc   : > { %v2858_v62 = vpop.f32.mrf.mxu2  ;;  %v2871_v63 = vpop.f32.mrf.mxu3  ;;  %v2883_v6 = vadd.f32 %v2882_v2, %v2870_v51 }
 0x1fe   : > { %v2896_v11 = vadd.f32 %v2895_v3, %v2883_v6  ;;  %3297 = vmatmul.bf16.vlgmr.msra.gmra.mxu0 %v771_v0  ;;  %3310 = vmatmul.bf16.vlgmr.msra.gmra.mxu1 %v772_v1  ;;  %v779_v0 = vpack.c.b16 %v583_v53, %v583_v53  ;;  %v780_v1 = vpack.c.b16 %v584_v54, %v584_v54  ;;  %v591_v53 = vunpack.c.l.b16 %v229_v49 }
 0x1ff   : > { %3400 = vmatpush.bf16.xpose.msra.mxu0 %v1465_v9  ;;  %3413 = vmatpush.bf16.xpose.msra.mxu1 %v1466_v10  ;;  %v1473_v9 = vpack.c.b16 %v1277_v60, %v1277_v60  ;;  %v1474_v10 = vpack.c.b16 %v1278_v61, %v1278_v61  ;;  %v592_v54 = vunpack.c.h.b16 %v229_v49  ;;  %v1285_v60 = vunpack.c.l.b16 %v331_v55  ;;  %v233_v49 = vld [vmem:[%s4373_s15 + $0x240] sm:$0xff] }
 0x200   : > { %v1286_v61 = vunpack.c.h.b16 %v331_v55  ;;  %v335_v55 = vld [vmem:[%s4378_s18 + $0x260] sm:$0xff] }
 0x201   : > { %3323 = vmatmul.bf16.vlgmr.msra.gmra.mxu2 %v773_v4  ;;  %3336 = vmatmul.bf16.vlgmr.msra.gmra.mxu3 %v774_v5  ;;  %v781_v4 = vpack.c.b16 %v585_v56, %v585_v56  ;;  %v782_v5 = vpack.c.b16 %v586_v57, %v586_v57  ;;  %v593_v56 = vunpack.c.l.b16 %v230_v50  ;;  %v594_v57 = vunpack.c.h.b16 %v230_v50  ;;  %v234_v50 = vld [vmem:[%s4373_s15 + $0x248] sm:$0xff] }
 0x202   : > { %3426 = vmatpush.bf16.xpose.msra.mxu2 %v1467_v7  ;;  %3439 = vmatpush.bf16.xpose.msra.mxu3 %v1468_v8  ;;  %v1475_v7 = vpack.c.b16 %v1279_v58, %v1279_v58  ;;  %v1476_v8 = vpack.c.b16 %v1280_v59, %v1280_v59  ;;  %v1287_v58 = vunpack.c.l.b16 %v332_v52  ;;  %v1288_v59 = vunpack.c.h.b16 %v332_v52  ;;  %v336_v52 = vld [vmem:[%s4378_s18 + $0x268] sm:$0xff] }
 0x203   : > { %v2884_v15 = vpop.f32.mrf.mxu0  ;;  %v2897_v16 = vpop.f32.mrf.mxu1 }
 0x204   : > { %v2908_v12 = vpop.f32.mrf.mxu2  ;;  %v2921_v13 = vpop.f32.mrf.mxu3 }
 0x205   : > { %v2909_v14 = vadd.f32 %v2908_v12, %v2896_v11 }
 0x207   : > { %v2922_v19 = vadd.f32 %v2921_v13, %v2909_v14 }
 0x20b   : > { %v2934_v34 = vpop.f32.mrf.mxu0  ;;  %v2947_v35 = vpop.f32.mrf.mxu1 }
 0x20c   : > { %v2910_v30 = vpop.f32.mrf.mxu2  ;;  %v2923_v31 = vpop.f32.mrf.mxu3  ;;  %v2935_v38 = vadd.f32 %v2934_v34, %v2922_v19 }
 0x20e   : > { %v2948_v43 = vadd.f32 %v2947_v35, %v2935_v38  ;;  %3349 = vmatmul.bf16.vlgmr.msrb.gmra.mxu0 %v775_v32  ;;  %3362 = vmatmul.bf16.vlgmr.msrb.gmra.mxu1 %v776_v33  ;;  %v783_v32 = vpack.c.b16 %v587_v21, %v587_v21  ;;  %v784_v33 = vpack.c.b16 %v588_v22, %v588_v22  ;;  %v595_v21 = vunpack.c.l.b16 %v231_v17 }
 0x20f   : > { %3452 = vmatpush.bf16.xpose.msrb.mxu0 %v1469_v41  ;;  %3465 = vmatpush.bf16.xpose.msrb.mxu1 %v1470_v42  ;;  %v1477_v41 = vpack.c.b16 %v1281_v28, %v1281_v28  ;;  %v1478_v42 = vpack.c.b16 %v1282_v29, %v1282_v29  ;;  %v596_v22 = vunpack.c.h.b16 %v231_v17  ;;  %v1289_v28 = vunpack.c.l.b16 %v333_v23  ;;  %v235_v17 = vld [vmem:[%s4373_s15 + $0x250] sm:$0xff] }
 0x210   : > { %v1290_v29 = vunpack.c.h.b16 %v333_v23  ;;  %v337_v23 = vld [vmem:[%s4378_s18 + $0x270] sm:$0xff] }
 0x211   : > { %3375 = vmatmul.bf16.vlgmr.msrb.gmra.mxu2 %v777_v36  ;;  %3388 = vmatmul.bf16.vlgmr.msrb.gmra.mxu3 %v778_v37  ;;  %v785_v36 = vpack.c.b16 %v589_v24, %v589_v24  ;;  %v786_v37 = vpack.c.b16 %v590_v25, %v590_v25  ;;  %v597_v24 = vunpack.c.l.b16 %v232_v18  ;;  %v598_v25 = vunpack.c.h.b16 %v232_v18  ;;  %v236_v18 = vld [vmem:[%s4373_s15 + $0x258] sm:$0xff] }
 0x212   : > { %3478 = vmatpush.bf16.xpose.msrb.mxu2 %v1471_v39  ;;  %3491 = vmatpush.bf16.xpose.msrb.mxu3 %v1472_v40  ;;  %v1479_v39 = vpack.c.b16 %v1283_v26, %v1283_v26  ;;  %v1480_v40 = vpack.c.b16 %v1284_v27, %v1284_v27  ;;  %v1291_v26 = vunpack.c.l.b16 %v334_v20  ;;  %v1292_v27 = vunpack.c.h.b16 %v334_v20  ;;  %v338_v20 = vld [vmem:[%s4378_s18 + $0x278] sm:$0xff] }
 0x213   : > { %v2936_v47 = vpop.f32.mrf.mxu0  ;;  %v2949_v48 = vpop.f32.mrf.mxu1 }
 0x214   : > { %v2960_v44 = vpop.f32.mrf.mxu2  ;;  %v2973_v45 = vpop.f32.mrf.mxu3 }
 0x215   : > { %v2961_v46 = vadd.f32 %v2960_v44, %v2948_v43 }
 0x217   : > { %v2974_v51 = vadd.f32 %v2973_v45, %v2961_v46 }
 0x21b   : > { %v2986_v2 = vpop.f32.mrf.mxu0  ;;  %v2999_v3 = vpop.f32.mrf.mxu1 }
 0x21c   : > { %v2962_v62 = vpop.f32.mrf.mxu2  ;;  %v2975_v63 = vpop.f32.mrf.mxu3  ;;  %v2987_v6 = vadd.f32 %v2986_v2, %v2974_v51 }
 0x21e   : > { %v3000_v11 = vadd.f32 %v2999_v3, %v2987_v6  ;;  %3401 = vmatmul.bf16.vlgmr.msra.gmra.mxu0 %v779_v0  ;;  %3414 = vmatmul.bf16.vlgmr.msra.gmra.mxu1 %v780_v1  ;;  %v787_v0 = vpack.c.b16 %v591_v53, %v591_v53  ;;  %v788_v1 = vpack.c.b16 %v592_v54, %v592_v54  ;;  %v599_v53 = vunpack.c.l.b16 %v233_v49 }
 0x21f   : > { %3504 = vmatpush.bf16.xpose.msra.mxu0 %v1473_v9  ;;  %3517 = vmatpush.bf16.xpose.msra.mxu1 %v1474_v10  ;;  %v1481_v9 = vpack.c.b16 %v1285_v60, %v1285_v60  ;;  %v1482_v10 = vpack.c.b16 %v1286_v61, %v1286_v61  ;;  %v600_v54 = vunpack.c.h.b16 %v233_v49  ;;  %v1293_v60 = vunpack.c.l.b16 %v335_v55  ;;  %v237_v49 = vld [vmem:[%s4373_s15 + $0x260] sm:$0xff] }
 0x220   : > { %v1294_v61 = vunpack.c.h.b16 %v335_v55  ;;  %v339_v55 = vld [vmem:[%s4378_s18 + $0x280] sm:$0xff] }
 0x221   : > { %3427 = vmatmul.bf16.vlgmr.msra.gmra.mxu2 %v781_v4  ;;  %3440 = vmatmul.bf16.vlgmr.msra.gmra.mxu3 %v782_v5  ;;  %v789_v4 = vpack.c.b16 %v593_v56, %v593_v56  ;;  %v790_v5 = vpack.c.b16 %v594_v57, %v594_v57  ;;  %v601_v56 = vunpack.c.l.b16 %v234_v50  ;;  %v602_v57 = vunpack.c.h.b16 %v234_v50  ;;  %v238_v50 = vld [vmem:[%s4373_s15 + $0x268] sm:$0xff] }
 0x222   : > { %3530 = vmatpush.bf16.xpose.msra.mxu2 %v1475_v7  ;;  %3543 = vmatpush.bf16.xpose.msra.mxu3 %v1476_v8  ;;  %v1483_v7 = vpack.c.b16 %v1287_v58, %v1287_v58  ;;  %v1484_v8 = vpack.c.b16 %v1288_v59, %v1288_v59  ;;  %v1295_v58 = vunpack.c.l.b16 %v336_v52  ;;  %v1296_v59 = vunpack.c.h.b16 %v336_v52  ;;  %v340_v52 = vld [vmem:[%s4378_s18 + $0x288] sm:$0xff] }
 0x223   : > { %v2988_v15 = vpop.f32.mrf.mxu0  ;;  %v3001_v16 = vpop.f32.mrf.mxu1 }
 0x224   : > { %v3012_v12 = vpop.f32.mrf.mxu2  ;;  %v3025_v13 = vpop.f32.mrf.mxu3 }
 0x225   : > { %v3013_v14 = vadd.f32 %v3012_v12, %v3000_v11 }
 0x227   : > { %v3026_v19 = vadd.f32 %v3025_v13, %v3013_v14 }
 0x22b   : > { %v3038_v34 = vpop.f32.mrf.mxu0  ;;  %v3051_v35 = vpop.f32.mrf.mxu1 }
 0x22c   : > { %v3014_v30 = vpop.f32.mrf.mxu2  ;;  %v3027_v31 = vpop.f32.mrf.mxu3  ;;  %v3039_v38 = vadd.f32 %v3038_v34, %v3026_v19 }
 0x22e   : > { %v3052_v43 = vadd.f32 %v3051_v35, %v3039_v38  ;;  %3453 = vmatmul.bf16.vlgmr.msrb.gmra.mxu0 %v783_v32  ;;  %3466 = vmatmul.bf16.vlgmr.msrb.gmra.mxu1 %v784_v33  ;;  %v791_v32 = vpack.c.b16 %v595_v21, %v595_v21  ;;  %v792_v33 = vpack.c.b16 %v596_v22, %v596_v22  ;;  %v603_v21 = vunpack.c.l.b16 %v235_v17 }
 0x22f   : > { %3556 = vmatpush.bf16.xpose.msrb.mxu0 %v1477_v41  ;;  %3569 = vmatpush.bf16.xpose.msrb.mxu1 %v1478_v42  ;;  %v1485_v41 = vpack.c.b16 %v1289_v28, %v1289_v28  ;;  %v1486_v42 = vpack.c.b16 %v1290_v29, %v1290_v29  ;;  %v604_v22 = vunpack.c.h.b16 %v235_v17  ;;  %v1297_v28 = vunpack.c.l.b16 %v337_v23  ;;  %v239_v17 = vld [vmem:[%s4373_s15 + $0x270] sm:$0xff] }
 0x230   : > { %v1298_v29 = vunpack.c.h.b16 %v337_v23  ;;  %v341_v23 = vld [vmem:[%s4378_s18 + $0x290] sm:$0xff] }
 0x231   : > { %3479 = vmatmul.bf16.vlgmr.msrb.gmra.mxu2 %v785_v36  ;;  %3492 = vmatmul.bf16.vlgmr.msrb.gmra.mxu3 %v786_v37  ;;  %v793_v36 = vpack.c.b16 %v597_v24, %v597_v24  ;;  %v794_v37 = vpack.c.b16 %v598_v25, %v598_v25  ;;  %v605_v24 = vunpack.c.l.b16 %v236_v18  ;;  %v606_v25 = vunpack.c.h.b16 %v236_v18  ;;  %v240_v18 = vld [vmem:[%s4373_s15 + $0x278] sm:$0xff] }
 0x232   : > { %3582 = vmatpush.bf16.xpose.msrb.mxu2 %v1479_v39  ;;  %3595 = vmatpush.bf16.xpose.msrb.mxu3 %v1480_v40  ;;  %v1487_v39 = vpack.c.b16 %v1291_v26, %v1291_v26  ;;  %v1488_v40 = vpack.c.b16 %v1292_v27, %v1292_v27  ;;  %v1299_v26 = vunpack.c.l.b16 %v338_v20  ;;  %v1300_v27 = vunpack.c.h.b16 %v338_v20  ;;  %v342_v20 = vld [vmem:[%s4378_s18 + $0x298] sm:$0xff] }
 0x233   : > { %v3040_v47 = vpop.f32.mrf.mxu0  ;;  %v3053_v48 = vpop.f32.mrf.mxu1 }
 0x234   : > { %v3064_v44 = vpop.f32.mrf.mxu2  ;;  %v3077_v45 = vpop.f32.mrf.mxu3 }
 0x235   : > { %v3065_v46 = vadd.f32 %v3064_v44, %v3052_v43 }
 0x237   : > { %v3078_v51 = vadd.f32 %v3077_v45, %v3065_v46 }
 0x23b   : > { %v3090_v2 = vpop.f32.mrf.mxu0  ;;  %v3103_v3 = vpop.f32.mrf.mxu1 }
 0x23c   : > { %v3066_v62 = vpop.f32.mrf.mxu2  ;;  %v3079_v63 = vpop.f32.mrf.mxu3  ;;  %v3091_v6 = vadd.f32 %v3090_v2, %v3078_v51 }
 0x23e   : > { %v3104_v11 = vadd.f32 %v3103_v3, %v3091_v6  ;;  %3505 = vmatmul.bf16.vlgmr.msra.gmra.mxu0 %v787_v0  ;;  %3518 = vmatmul.bf16.vlgmr.msra.gmra.mxu1 %v788_v1  ;;  %v795_v0 = vpack.c.b16 %v599_v53, %v599_v53  ;;  %v796_v1 = vpack.c.b16 %v600_v54, %v600_v54  ;;  %v607_v53 = vunpack.c.l.b16 %v237_v49 }
 0x23f   : > { %3608 = vmatpush.bf16.xpose.msra.mxu0 %v1481_v9  ;;  %3621 = vmatpush.bf16.xpose.msra.mxu1 %v1482_v10  ;;  %v1489_v9 = vpack.c.b16 %v1293_v60, %v1293_v60  ;;  %v1490_v10 = vpack.c.b16 %v1294_v61, %v1294_v61  ;;  %v608_v54 = vunpack.c.h.b16 %v237_v49  ;;  %v1301_v60 = vunpack.c.l.b16 %v339_v55  ;;  %v241_v49 = vld [vmem:[%s4373_s15 + $0x280] sm:$0xff] }
 0x240   : > { %v1302_v61 = vunpack.c.h.b16 %v339_v55  ;;  %v343_v55 = vld [vmem:[%s4378_s18 + $0x2a0] sm:$0xff] }
 0x241   : > { %3531 = vmatmul.bf16.vlgmr.msra.gmra.mxu2 %v789_v4  ;;  %3544 = vmatmul.bf16.vlgmr.msra.gmra.mxu3 %v790_v5  ;;  %v797_v4 = vpack.c.b16 %v601_v56, %v601_v56  ;;  %v798_v5 = vpack.c.b16 %v602_v57, %v602_v57  ;;  %v609_v56 = vunpack.c.l.b16 %v238_v50  ;;  %v610_v57 = vunpack.c.h.b16 %v238_v50  ;;  %v242_v50 = vld [vmem:[%s4373_s15 + $0x288] sm:$0xff] }
 0x242   : > { %3634 = vmatpush.bf16.xpose.msra.mxu2 %v1483_v7  ;;  %3647 = vmatpush.bf16.xpose.msra.mxu3 %v1484_v8  ;;  %v1491_v7 = vpack.c.b16 %v1295_v58, %v1295_v58  ;;  %v1492_v8 = vpack.c.b16 %v1296_v59, %v1296_v59  ;;  %v1303_v58 = vunpack.c.l.b16 %v340_v52  ;;  %v1304_v59 = vunpack.c.h.b16 %v340_v52  ;;  %v344_v52 = vld [vmem:[%s4378_s18 + $0x2a8] sm:$0xff] }
 0x243   : > { %v3092_v15 = vpop.f32.mrf.mxu0  ;;  %v3105_v16 = vpop.f32.mrf.mxu1 }
 0x244   : > { %v3116_v12 = vpop.f32.mrf.mxu2  ;;  %v3129_v13 = vpop.f32.mrf.mxu3 }
 0x245   : > { %v3117_v14 = vadd.f32 %v3116_v12, %v3104_v11 }
 0x247   : > { %v3130_v19 = vadd.f32 %v3129_v13, %v3117_v14 }
 0x24b   : > { %v3142_v34 = vpop.f32.mrf.mxu0  ;;  %v3155_v35 = vpop.f32.mrf.mxu1 }
 0x24c   : > { %v3118_v30 = vpop.f32.mrf.mxu2  ;;  %v3131_v31 = vpop.f32.mrf.mxu3  ;;  %v3143_v38 = vadd.f32 %v3142_v34, %v3130_v19 }
 0x24e   : > { %v3156_v43 = vadd.f32 %v3155_v35, %v3143_v38  ;;  %3557 = vmatmul.bf16.vlgmr.msrb.gmra.mxu0 %v791_v32  ;;  %3570 = vmatmul.bf16.vlgmr.msrb.gmra.mxu1 %v792_v33  ;;  %v799_v32 = vpack.c.b16 %v603_v21, %v603_v21  ;;  %v800_v33 = vpack.c.b16 %v604_v22, %v604_v22  ;;  %v611_v21 = vunpack.c.l.b16 %v239_v17 }
 0x24f   : > { %3660 = vmatpush.bf16.xpose.msrb.mxu0 %v1485_v41  ;;  %3673 = vmatpush.bf16.xpose.msrb.mxu1 %v1486_v42  ;;  %v1493_v41 = vpack.c.b16 %v1297_v28, %v1297_v28  ;;  %v1494_v42 = vpack.c.b16 %v1298_v29, %v1298_v29  ;;  %v612_v22 = vunpack.c.h.b16 %v239_v17  ;;  %v1305_v28 = vunpack.c.l.b16 %v341_v23  ;;  %v243_v17 = vld [vmem:[%s4373_s15 + $0x290] sm:$0xff] }
 0x250   : > { %v1306_v29 = vunpack.c.h.b16 %v341_v23  ;;  %v345_v23 = vld [vmem:[%s4378_s18 + $0x2b0] sm:$0xff] }
 0x251   : > { %3583 = vmatmul.bf16.vlgmr.msrb.gmra.mxu2 %v793_v36  ;;  %3596 = vmatmul.bf16.vlgmr.msrb.gmra.mxu3 %v794_v37  ;;  %v801_v36 = vpack.c.b16 %v605_v24, %v605_v24  ;;  %v802_v37 = vpack.c.b16 %v606_v25, %v606_v25  ;;  %v613_v24 = vunpack.c.l.b16 %v240_v18  ;;  %v614_v25 = vunpack.c.h.b16 %v240_v18  ;;  %v244_v18 = vld [vmem:[%s4373_s15 + $0x298] sm:$0xff] }
 0x252   : > { %3686 = vmatpush.bf16.xpose.msrb.mxu2 %v1487_v39  ;;  %3699 = vmatpush.bf16.xpose.msrb.mxu3 %v1488_v40  ;;  %v1495_v39 = vpack.c.b16 %v1299_v26, %v1299_v26  ;;  %v1496_v40 = vpack.c.b16 %v1300_v27, %v1300_v27  ;;  %v1307_v26 = vunpack.c.l.b16 %v342_v20  ;;  %v1308_v27 = vunpack.c.h.b16 %v342_v20  ;;  %v346_v20 = vld [vmem:[%s4378_s18 + $0x2b8] sm:$0xff] }
 0x253   : > { %v3144_v47 = vpop.f32.mrf.mxu0  ;;  %v3157_v48 = vpop.f32.mrf.mxu1 }
 0x254   : > { %v3168_v44 = vpop.f32.mrf.mxu2  ;;  %v3181_v45 = vpop.f32.mrf.mxu3 }
 0x255   : > { %v3169_v46 = vadd.f32 %v3168_v44, %v3156_v43 }
 0x257   : > { %v3182_v51 = vadd.f32 %v3181_v45, %v3169_v46 }
 0x25b   : > { %v3194_v2 = vpop.f32.mrf.mxu0  ;;  %v3207_v3 = vpop.f32.mrf.mxu1 }
 0x25c   : > { %v3170_v62 = vpop.f32.mrf.mxu2  ;;  %v3183_v63 = vpop.f32.mrf.mxu3  ;;  %v3195_v6 = vadd.f32 %v3194_v2, %v3182_v51 }
 0x25e   : > { %v3208_v11 = vadd.f32 %v3207_v3, %v3195_v6  ;;  %3609 = vmatmul.bf16.vlgmr.msra.gmra.mxu0 %v795_v0  ;;  %3622 = vmatmul.bf16.vlgmr.msra.gmra.mxu1 %v796_v1  ;;  %v803_v0 = vpack.c.b16 %v607_v53, %v607_v53  ;;  %v804_v1 = vpack.c.b16 %v608_v54, %v608_v54  ;;  %v615_v53 = vunpack.c.l.b16 %v241_v49 }
 0x25f   : > { %3712 = vmatpush.bf16.xpose.msra.mxu0 %v1489_v9  ;;  %3725 = vmatpush.bf16.xpose.msra.mxu1 %v1490_v10  ;;  %v1497_v9 = vpack.c.b16 %v1301_v60, %v1301_v60  ;;  %v1498_v10 = vpack.c.b16 %v1302_v61, %v1302_v61  ;;  %v616_v54 = vunpack.c.h.b16 %v241_v49  ;;  %v1309_v60 = vunpack.c.l.b16 %v343_v55  ;;  %v245_v49 = vld [vmem:[%s4373_s15 + $0x2a0] sm:$0xff] }
 0x260   : > { %v1310_v61 = vunpack.c.h.b16 %v343_v55  ;;  %v347_v55 = vld [vmem:[%s4378_s18 + $0x2c0] sm:$0xff] }
 0x261   : > { %3635 = vmatmul.bf16.vlgmr.msra.gmra.mxu2 %v797_v4  ;;  %3648 = vmatmul.bf16.vlgmr.msra.gmra.mxu3 %v798_v5  ;;  %v805_v4 = vpack.c.b16 %v609_v56, %v609_v56  ;;  %v806_v5 = vpack.c.b16 %v610_v57, %v610_v57  ;;  %v617_v56 = vunpack.c.l.b16 %v242_v50  ;;  %v618_v57 = vunpack.c.h.b16 %v242_v50  ;;  %v246_v50 = vld [vmem:[%s4373_s15 + $0x2a8] sm:$0xff] }
 0x262   : > { %3738 = vmatpush.bf16.xpose.msra.mxu2 %v1491_v7  ;;  %3751 = vmatpush.bf16.xpose.msra.mxu3 %v1492_v8  ;;  %v1499_v7 = vpack.c.b16 %v1303_v58, %v1303_v58  ;;  %v1500_v8 = vpack.c.b16 %v1304_v59, %v1304_v59  ;;  %v1311_v58 = vunpack.c.l.b16 %v344_v52  ;;  %v1312_v59 = vunpack.c.h.b16 %v344_v52  ;;  %v348_v52 = vld [vmem:[%s4378_s18 + $0x2c8] sm:$0xff] }
 0x263   : > { %v3196_v15 = vpop.f32.mrf.mxu0  ;;  %v3209_v16 = vpop.f32.mrf.mxu1 }
 0x264   : > { %v3220_v12 = vpop.f32.mrf.mxu2  ;;  %v3233_v13 = vpop.f32.mrf.mxu3 }
 0x265   : > { %v3221_v14 = vadd.f32 %v3220_v12, %v3208_v11 }
 0x267   : > { %v3234_v19 = vadd.f32 %v3233_v13, %v3221_v14 }
 0x26b   : > { %v3246_v34 = vpop.f32.mrf.mxu0  ;;  %v3259_v35 = vpop.f32.mrf.mxu1 }
 0x26c   : > { %v3222_v30 = vpop.f32.mrf.mxu2  ;;  %v3235_v31 = vpop.f32.mrf.mxu3  ;;  %v3247_v38 = vadd.f32 %v3246_v34, %v3234_v19 }
 0x26e   : > { %v3260_v43 = vadd.f32 %v3259_v35, %v3247_v38  ;;  %3661 = vmatmul.bf16.vlgmr.msrb.gmra.mxu0 %v799_v32  ;;  %3674 = vmatmul.bf16.vlgmr.msrb.gmra.mxu1 %v800_v33  ;;  %v807_v32 = vpack.c.b16 %v611_v21, %v611_v21  ;;  %v808_v33 = vpack.c.b16 %v612_v22, %v612_v22  ;;  %v619_v21 = vunpack.c.l.b16 %v243_v17 }
 0x26f   : > { %3764 = vmatpush.bf16.xpose.msrb.mxu0 %v1493_v41  ;;  %3777 = vmatpush.bf16.xpose.msrb.mxu1 %v1494_v42  ;;  %v1501_v41 = vpack.c.b16 %v1305_v28, %v1305_v28  ;;  %v1502_v42 = vpack.c.b16 %v1306_v29, %v1306_v29  ;;  %v620_v22 = vunpack.c.h.b16 %v243_v17  ;;  %v1313_v28 = vunpack.c.l.b16 %v345_v23  ;;  %v247_v17 = vld [vmem:[%s4373_s15 + $0x2b0] sm:$0xff] }
 0x270   : > { %v1314_v29 = vunpack.c.h.b16 %v345_v23  ;;  %v349_v23 = vld [vmem:[%s4378_s18 + $0x2d0] sm:$0xff] }
 0x271   : > { %3687 = vmatmul.bf16.vlgmr.msrb.gmra.mxu2 %v801_v36  ;;  %3700 = vmatmul.bf16.vlgmr.msrb.gmra.mxu3 %v802_v37  ;;  %v809_v36 = vpack.c.b16 %v613_v24, %v613_v24  ;;  %v810_v37 = vpack.c.b16 %v614_v25, %v614_v25  ;;  %v621_v24 = vunpack.c.l.b16 %v244_v18  ;;  %v622_v25 = vunpack.c.h.b16 %v244_v18  ;;  %v248_v18 = vld [vmem:[%s4373_s15 + $0x2b8] sm:$0xff] }
 0x272   : > { %3790 = vmatpush.bf16.xpose.msrb.mxu2 %v1495_v39  ;;  %3803 = vmatpush.bf16.xpose.msrb.mxu3 %v1496_v40  ;;  %v1503_v39 = vpack.c.b16 %v1307_v26, %v1307_v26  ;;  %v1504_v40 = vpack.c.b16 %v1308_v27, %v1308_v27  ;;  %v1315_v26 = vunpack.c.l.b16 %v346_v20  ;;  %v1316_v27 = vunpack.c.h.b16 %v346_v20  ;;  %v350_v20 = vld [vmem:[%s4378_s18 + $0x2d8] sm:$0xff] }
 0x273   : > { %v3248_v47 = vpop.f32.mrf.mxu0  ;;  %v3261_v48 = vpop.f32.mrf.mxu1 }
 0x274   : > { %v3272_v44 = vpop.f32.mrf.mxu2  ;;  %v3285_v45 = vpop.f32.mrf.mxu3 }
 0x275   : > { %v3273_v46 = vadd.f32 %v3272_v44, %v3260_v43 }
 0x277   : > { %v3286_v51 = vadd.f32 %v3285_v45, %v3273_v46 }
 0x27b   : > { %v3298_v2 = vpop.f32.mrf.mxu0  ;;  %v3311_v3 = vpop.f32.mrf.mxu1 }
 0x27c   : > { %v3274_v62 = vpop.f32.mrf.mxu2  ;;  %v3287_v63 = vpop.f32.mrf.mxu3  ;;  %v3299_v6 = vadd.f32 %v3298_v2, %v3286_v51 }
 0x27e   : > { %v3312_v11 = vadd.f32 %v3311_v3, %v3299_v6  ;;  %3713 = vmatmul.bf16.vlgmr.msra.gmra.mxu0 %v803_v0  ;;  %3726 = vmatmul.bf16.vlgmr.msra.gmra.mxu1 %v804_v1  ;;  %v811_v0 = vpack.c.b16 %v615_v53, %v615_v53  ;;  %v812_v1 = vpack.c.b16 %v616_v54, %v616_v54  ;;  %v623_v53 = vunpack.c.l.b16 %v245_v49 }
 0x27f   : > { %3816 = vmatpush.bf16.xpose.msra.mxu0 %v1497_v9  ;;  %3829 = vmatpush.bf16.xpose.msra.mxu1 %v1498_v10  ;;  %v1505_v9 = vpack.c.b16 %v1309_v60, %v1309_v60  ;;  %v1506_v10 = vpack.c.b16 %v1310_v61, %v1310_v61  ;;  %v624_v54 = vunpack.c.h.b16 %v245_v49  ;;  %v1317_v60 = vunpack.c.l.b16 %v347_v55  ;;  %v249_v49 = vld [vmem:[%s4373_s15 + $0x2c0] sm:$0xff] }
 0x280   : > { %v1318_v61 = vunpack.c.h.b16 %v347_v55  ;;  %v351_v55 = vld [vmem:[%s4378_s18 + $0x2e0] sm:$0xff] }
 0x281   : > { %3739 = vmatmul.bf16.vlgmr.msra.gmra.mxu2 %v805_v4  ;;  %3752 = vmatmul.bf16.vlgmr.msra.gmra.mxu3 %v806_v5  ;;  %v813_v4 = vpack.c.b16 %v617_v56, %v617_v56  ;;  %v814_v5 = vpack.c.b16 %v618_v57, %v618_v57  ;;  %v625_v56 = vunpack.c.l.b16 %v246_v50  ;;  %v626_v57 = vunpack.c.h.b16 %v246_v50  ;;  %v250_v50 = vld [vmem:[%s4373_s15 + $0x2c8] sm:$0xff] }
 0x282   : > { %3842 = vmatpush.bf16.xpose.msra.mxu2 %v1499_v7  ;;  %3855 = vmatpush.bf16.xpose.msra.mxu3 %v1500_v8  ;;  %v1507_v7 = vpack.c.b16 %v1311_v58, %v1311_v58  ;;  %v1508_v8 = vpack.c.b16 %v1312_v59, %v1312_v59  ;;  %v1319_v58 = vunpack.c.l.b16 %v348_v52  ;;  %v1320_v59 = vunpack.c.h.b16 %v348_v52  ;;  %v352_v52 = vld [vmem:[%s4378_s18 + $0x2e8] sm:$0xff] }
 0x283   : > { %v3300_v15 = vpop.f32.mrf.mxu0  ;;  %v3313_v16 = vpop.f32.mrf.mxu1 }
 0x284   : > { %v3324_v12 = vpop.f32.mrf.mxu2  ;;  %v3337_v13 = vpop.f32.mrf.mxu3 }
 0x285   : > { %v3325_v14 = vadd.f32 %v3324_v12, %v3312_v11 }
 0x287   : > { %v3338_v19 = vadd.f32 %v3337_v13, %v3325_v14 }
 0x28b   : > { %v3350_v34 = vpop.f32.mrf.mxu0  ;;  %v3363_v35 = vpop.f32.mrf.mxu1 }
 0x28c   : > { %v3326_v30 = vpop.f32.mrf.mxu2  ;;  %v3339_v31 = vpop.f32.mrf.mxu3  ;;  %v3351_v38 = vadd.f32 %v3350_v34, %v3338_v19 }
 0x28e   : > { %v3364_v43 = vadd.f32 %v3363_v35, %v3351_v38  ;;  %3765 = vmatmul.bf16.vlgmr.msrb.gmra.mxu0 %v807_v32  ;;  %3778 = vmatmul.bf16.vlgmr.msrb.gmra.mxu1 %v808_v33  ;;  %v815_v32 = vpack.c.b16 %v619_v21, %v619_v21  ;;  %v816_v33 = vpack.c.b16 %v620_v22, %v620_v22  ;;  %v627_v21 = vunpack.c.l.b16 %v247_v17 }
 0x28f   : > { %3868 = vmatpush.bf16.xpose.msrb.mxu0 %v1501_v41  ;;  %3881 = vmatpush.bf16.xpose.msrb.mxu1 %v1502_v42  ;;  %v1509_v41 = vpack.c.b16 %v1313_v28, %v1313_v28  ;;  %v1510_v42 = vpack.c.b16 %v1314_v29, %v1314_v29  ;;  %v628_v22 = vunpack.c.h.b16 %v247_v17  ;;  %v1321_v28 = vunpack.c.l.b16 %v349_v23  ;;  %v251_v17 = vld [vmem:[%s4373_s15 + $0x2d0] sm:$0xff] }
 0x290   : > { %v1322_v29 = vunpack.c.h.b16 %v349_v23  ;;  %v353_v23 = vld [vmem:[%s4378_s18 + $0x2f0] sm:$0xff] }
 0x291   : > { %3791 = vmatmul.bf16.vlgmr.msrb.gmra.mxu2 %v809_v36  ;;  %3804 = vmatmul.bf16.vlgmr.msrb.gmra.mxu3 %v810_v37  ;;  %v817_v36 = vpack.c.b16 %v621_v24, %v621_v24  ;;  %v818_v37 = vpack.c.b16 %v622_v25, %v622_v25  ;;  %v629_v24 = vunpack.c.l.b16 %v248_v18  ;;  %v630_v25 = vunpack.c.h.b16 %v248_v18  ;;  %v252_v18 = vld [vmem:[%s4373_s15 + $0x2d8] sm:$0xff] }
 0x292   : > { %3894 = vmatpush.bf16.xpose.msrb.mxu2 %v1503_v39  ;;  %3907 = vmatpush.bf16.xpose.msrb.mxu3 %v1504_v40  ;;  %v1511_v39 = vpack.c.b16 %v1315_v26, %v1315_v26  ;;  %v1512_v40 = vpack.c.b16 %v1316_v27, %v1316_v27  ;;  %v1323_v26 = vunpack.c.l.b16 %v350_v20  ;;  %v1324_v27 = vunpack.c.h.b16 %v350_v20  ;;  %v354_v20 = vld [vmem:[%s4378_s18 + $0x2f8] sm:$0xff] }
 0x293   : > { %v3352_v47 = vpop.f32.mrf.mxu0  ;;  %v3365_v48 = vpop.f32.mrf.mxu1 }
 0x294   : > { %v3376_v44 = vpop.f32.mrf.mxu2  ;;  %v3389_v45 = vpop.f32.mrf.mxu3 }
 0x295   : > { %v3377_v46 = vadd.f32 %v3376_v44, %v3364_v43 }
 0x297   : > { %v3390_v51 = vadd.f32 %v3389_v45, %v3377_v46 }
 0x29b   : > { %v3402_v2 = vpop.f32.mrf.mxu0  ;;  %v3415_v3 = vpop.f32.mrf.mxu1 }
 0x29c   : > { %v3378_v62 = vpop.f32.mrf.mxu2  ;;  %v3391_v63 = vpop.f32.mrf.mxu3  ;;  %v3403_v6 = vadd.f32 %v3402_v2, %v3390_v51 }
 0x29e   : > { %v3416_v11 = vadd.f32 %v3415_v3, %v3403_v6  ;;  %3817 = vmatmul.bf16.vlgmr.msra.gmra.mxu0 %v811_v0  ;;  %3830 = vmatmul.bf16.vlgmr.msra.gmra.mxu1 %v812_v1  ;;  %v819_v0 = vpack.c.b16 %v623_v53, %v623_v53  ;;  %v820_v1 = vpack.c.b16 %v624_v54, %v624_v54  ;;  %v631_v53 = vunpack.c.l.b16 %v249_v49 }
 0x29f   : > { %3920 = vmatpush.bf16.xpose.msra.mxu0 %v1505_v9  ;;  %3933 = vmatpush.bf16.xpose.msra.mxu1 %v1506_v10  ;;  %v1513_v9 = vpack.c.b16 %v1317_v60, %v1317_v60  ;;  %v1514_v10 = vpack.c.b16 %v1318_v61, %v1318_v61  ;;  %v632_v54 = vunpack.c.h.b16 %v249_v49  ;;  %v1325_v60 = vunpack.c.l.b16 %v351_v55  ;;  %v253_v49 = vld [vmem:[%s4373_s15 + $0x2e0] sm:$0xff] }
 0x2a0   : > { %v1326_v61 = vunpack.c.h.b16 %v351_v55  ;;  %v355_v55 = vld [vmem:[%s4378_s18 + $0x300] sm:$0xff] }
 0x2a1   : > { %3843 = vmatmul.bf16.vlgmr.msra.gmra.mxu2 %v813_v4  ;;  %3856 = vmatmul.bf16.vlgmr.msra.gmra.mxu3 %v814_v5  ;;  %v821_v4 = vpack.c.b16 %v625_v56, %v625_v56  ;;  %v822_v5 = vpack.c.b16 %v626_v57, %v626_v57  ;;  %v633_v56 = vunpack.c.l.b16 %v250_v50  ;;  %v634_v57 = vunpack.c.h.b16 %v250_v50  ;;  %v254_v50 = vld [vmem:[%s4373_s15 + $0x2e8] sm:$0xff] }
 0x2a2   : > { %3946 = vmatpush.bf16.xpose.msra.mxu2 %v1507_v7  ;;  %3959 = vmatpush.bf16.xpose.msra.mxu3 %v1508_v8  ;;  %v1515_v7 = vpack.c.b16 %v1319_v58, %v1319_v58  ;;  %v1516_v8 = vpack.c.b16 %v1320_v59, %v1320_v59  ;;  %v1327_v58 = vunpack.c.l.b16 %v352_v52  ;;  %v1328_v59 = vunpack.c.h.b16 %v352_v52  ;;  %v356_v52 = vld [vmem:[%s4378_s18 + $0x308] sm:$0xff] }
 0x2a3   : > { %v3404_v15 = vpop.f32.mrf.mxu0  ;;  %v3417_v16 = vpop.f32.mrf.mxu1 }
 0x2a4   : > { %v3428_v12 = vpop.f32.mrf.mxu2  ;;  %v3441_v13 = vpop.f32.mrf.mxu3 }
 0x2a5   : > { %v3429_v14 = vadd.f32 %v3428_v12, %v3416_v11 }
 0x2a7   : > { %v3442_v19 = vadd.f32 %v3441_v13, %v3429_v14 }
 0x2ab   : > { %v3454_v34 = vpop.f32.mrf.mxu0  ;;  %v3467_v35 = vpop.f32.mrf.mxu1 }
 0x2ac   : > { %v3430_v30 = vpop.f32.mrf.mxu2  ;;  %v3443_v31 = vpop.f32.mrf.mxu3  ;;  %v3455_v38 = vadd.f32 %v3454_v34, %v3442_v19 }
 0x2ae   : > { %v3468_v43 = vadd.f32 %v3467_v35, %v3455_v38  ;;  %3869 = vmatmul.bf16.vlgmr.msrb.gmra.mxu0 %v815_v32  ;;  %3882 = vmatmul.bf16.vlgmr.msrb.gmra.mxu1 %v816_v33  ;;  %v823_v32 = vpack.c.b16 %v627_v21, %v627_v21  ;;  %v824_v33 = vpack.c.b16 %v628_v22, %v628_v22  ;;  %v635_v21 = vunpack.c.l.b16 %v251_v17 }
 0x2af   : > { %3972 = vmatpush.bf16.xpose.msrb.mxu0 %v1509_v41  ;;  %3985 = vmatpush.bf16.xpose.msrb.mxu1 %v1510_v42  ;;  %v1517_v41 = vpack.c.b16 %v1321_v28, %v1321_v28  ;;  %v1518_v42 = vpack.c.b16 %v1322_v29, %v1322_v29  ;;  %v636_v22 = vunpack.c.h.b16 %v251_v17  ;;  %v1329_v28 = vunpack.c.l.b16 %v353_v23  ;;  %v255_v17 = vld [vmem:[%s4373_s15 + $0x2f0] sm:$0xff] }
 0x2b0   : > { %v1330_v29 = vunpack.c.h.b16 %v353_v23 }
 0x2b1   : > { %3895 = vmatmul.bf16.vlgmr.msrb.gmra.mxu2 %v817_v36  ;;  %3908 = vmatmul.bf16.vlgmr.msrb.gmra.mxu3 %v818_v37  ;;  %v825_v36 = vpack.c.b16 %v629_v24, %v629_v24  ;;  %v826_v37 = vpack.c.b16 %v630_v25, %v630_v25  ;;  %v637_v24 = vunpack.c.l.b16 %v252_v18  ;;  %v638_v25 = vunpack.c.h.b16 %v252_v18  ;;  %v256_v18 = vld [vmem:[%s4373_s15 + $0x2f8] sm:$0xff] }
 0x2b2   : > { %3998 = vmatpush.bf16.xpose.msrb.mxu2 %v1511_v39  ;;  %4011 = vmatpush.bf16.xpose.msrb.mxu3 %v1512_v40  ;;  %v1519_v39 = vpack.c.b16 %v1323_v26, %v1323_v26  ;;  %v1520_v40 = vpack.c.b16 %v1324_v27, %v1324_v27  ;;  %v1331_v26 = vunpack.c.l.b16 %v354_v20  ;;  %v1332_v27 = vunpack.c.h.b16 %v354_v20 }
 0x2b3   : > { %v3456_v47 = vpop.f32.mrf.mxu0  ;;  %v3469_v48 = vpop.f32.mrf.mxu1  ;;  %v643_v20 = vunpack.c.l.b16 %v255_v17  ;;  %v646_v23 = vunpack.c.h.b16 %v256_v18 }
 0x2b4   : > { %v3480_v44 = vpop.f32.mrf.mxu2  ;;  %v3493_v45 = vpop.f32.mrf.mxu3 }
 0x2b5   : > { %v3481_v46 = vadd.f32 %v3480_v44, %v3468_v43 }
 0x2b7   : > { %v3494_v51 = vadd.f32 %v3493_v45, %v3481_v46 }
 0x2bb   : > { %v3506_v2 = vpop.f32.mrf.mxu0  ;;  %v3519_v3 = vpop.f32.mrf.mxu1 }
 0x2bc   : > { %v3482_v62 = vpop.f32.mrf.mxu2  ;;  %v3495_v63 = vpop.f32.mrf.mxu3  ;;  %v3507_v6 = vadd.f32 %v3506_v2, %v3494_v51 }
 0x2be   : > { %v3520_v11 = vadd.f32 %v3519_v3, %v3507_v6  ;;  %3921 = vmatmul.bf16.vlgmr.msra.gmra.mxu0 %v819_v0  ;;  %3934 = vmatmul.bf16.vlgmr.msra.gmra.mxu1 %v820_v1  ;;  %v827_v0 = vpack.c.b16 %v631_v53, %v631_v53  ;;  %v828_v1 = vpack.c.b16 %v632_v54, %v632_v54  ;;  %v639_v53 = vunpack.c.l.b16 %v253_v49 }
 0x2bf   : > { %4024 = vmatpush.bf16.xpose.msra.mxu0 %v1513_v9  ;;  %4037 = vmatpush.bf16.xpose.msra.mxu1 %v1514_v10  ;;  %v1521_v9 = vpack.c.b16 %v1325_v60, %v1325_v60  ;;  %v1522_v10 = vpack.c.b16 %v1326_v61, %v1326_v61  ;;  %v640_v54 = vunpack.c.h.b16 %v253_v49  ;;  %v1333_v60 = vunpack.c.l.b16 %v355_v55 }
 0x2c0   : > { %v1334_v61 = vunpack.c.h.b16 %v355_v55 }
 0x2c1   : > { %3947 = vmatmul.bf16.vlgmr.msra.gmra.mxu2 %v821_v4  ;;  %3960 = vmatmul.bf16.vlgmr.msra.gmra.mxu3 %v822_v5  ;;  %v829_v4 = vpack.c.b16 %v633_v56, %v633_v56  ;;  %v830_v5 = vpack.c.b16 %v634_v57, %v634_v57  ;;  %v641_v56 = vunpack.c.l.b16 %v254_v50  ;;  %v642_v57 = vunpack.c.h.b16 %v254_v50 }
 0x2c2   : > { %4050 = vmatpush.bf16.xpose.msra.mxu2 %v1515_v7  ;;  %4063 = vmatpush.bf16.xpose.msra.mxu3 %v1516_v8  ;;  %v1523_v7 = vpack.c.b16 %v1327_v58, %v1327_v58  ;;  %v1524_v8 = vpack.c.b16 %v1328_v59, %v1328_v59  ;;  %v1335_v58 = vunpack.c.l.b16 %v356_v52  ;;  %v1336_v59 = vunpack.c.h.b16 %v356_v52 }
 0x2c3   : > { %v3508_v15 = vpop.f32.mrf.mxu0  ;;  %v3521_v16 = vpop.f32.mrf.mxu1 }
 0x2c4   : > { %v3532_v12 = vpop.f32.mrf.mxu2  ;;  %v3545_v13 = vpop.f32.mrf.mxu3 }
 0x2c5   : > { %v3533_v14 = vadd.f32 %v3532_v12, %v3520_v11 }
 0x2c7   : > { %v3546_v19 = vadd.f32 %v3545_v13, %v3533_v14 }
 0x2cb   : > { %v3558_v34 = vpop.f32.mrf.mxu0  ;;  %v3571_v35 = vpop.f32.mrf.mxu1 }
 0x2cc   : > { %v3534_v30 = vpop.f32.mrf.mxu2  ;;  %v3547_v31 = vpop.f32.mrf.mxu3  ;;  %v3559_v38 = vadd.f32 %v3558_v34, %v3546_v19 }
 0x2ce   : > { %v3572_v43 = vadd.f32 %v3571_v35, %v3559_v38  ;;  %3973 = vmatmul.bf16.vlgmr.msrb.gmra.mxu0 %v823_v32  ;;  %3986 = vmatmul.bf16.vlgmr.msrb.gmra.mxu1 %v824_v33  ;;  %v831_v32 = vpack.c.b16 %v635_v21, %v635_v21  ;;  %v832_v33 = vpack.c.b16 %v636_v22, %v636_v22  ;;  %v644_v21 = vunpack.c.h.b16 %v255_v17 }
 0x2cf   : > { %4076 = vmatpush.bf16.xpose.msrb.mxu0 %v1517_v41  ;;  %4089 = vmatpush.bf16.xpose.msrb.mxu1 %v1518_v42  ;;  %v1525_v41 = vpack.c.b16 %v1329_v28, %v1329_v28  ;;  %v1526_v42 = vpack.c.b16 %v1330_v29, %v1330_v29  ;;  %v645_v22 = vunpack.c.l.b16 %v256_v18 }
 0x2d1   : > { %3999 = vmatmul.bf16.vlgmr.msrb.gmra.mxu2 %v825_v36  ;;  %4012 = vmatmul.bf16.vlgmr.msrb.gmra.mxu3 %v826_v37  ;;  %v833_v36 = vpack.c.b16 %v637_v24, %v637_v24  ;;  %v834_v37 = vpack.c.b16 %v638_v25, %v638_v25 }
 0x2d2   : > { %4102 = vmatpush.bf16.xpose.msrb.mxu2 %v1519_v39  ;;  %4115 = vmatpush.bf16.xpose.msrb.mxu3 %v1520_v40  ;;  %v1527_v39 = vpack.c.b16 %v1331_v26, %v1331_v26  ;;  %v1528_v40 = vpack.c.b16 %v1332_v27, %v1332_v27  ;;  %v839_v26 = vpack.c.b16 %v643_v20, %v643_v20 }
 0x2d3   : > { %v3560_v47 = vpop.f32.mrf.mxu0  ;;  %v3573_v48 = vpop.f32.mrf.mxu1  ;;  %v840_v27 = vpack.c.b16 %v644_v21, %v644_v21 }
 0x2d4   : > { %v3584_v44 = vpop.f32.mrf.mxu2  ;;  %v3597_v45 = vpop.f32.mrf.mxu3 }
 0x2d5   : > { %v3585_v46 = vadd.f32 %v3584_v44, %v3572_v43 }
 0x2d7   : > { %v3598_v51 = vadd.f32 %v3597_v45, %v3585_v46 }
 0x2db   : > { %v3610_v2 = vpop.f32.mrf.mxu0  ;;  %v3623_v3 = vpop.f32.mrf.mxu1 }
 0x2dc   : > { %v3586_v62 = vpop.f32.mrf.mxu2  ;;  %v3599_v63 = vpop.f32.mrf.mxu3  ;;  %v3611_v6 = vadd.f32 %v3610_v2, %v3598_v51 }
 0x2de   : > { %v3624_v11 = vadd.f32 %v3623_v3, %v3611_v6  ;;  %4025 = vmatmul.bf16.vlgmr.msra.gmra.mxu0 %v827_v0  ;;  %4038 = vmatmul.bf16.vlgmr.msra.gmra.mxu1 %v828_v1  ;;  %v835_v0 = vpack.c.b16 %v639_v53, %v639_v53  ;;  %v836_v1 = vpack.c.b16 %v640_v54, %v640_v54 }
 0x2df   : > { %4128 = vmatpush.bf16.xpose.msra.mxu0 %v1521_v9  ;;  %4141 = vmatpush.bf16.xpose.msra.mxu1 %v1522_v10  ;;  %v1529_v9 = vpack.c.b16 %v1333_v60, %v1333_v60  ;;  %v1530_v10 = vpack.c.b16 %v1334_v61, %v1334_v61 }
 0x2e1   : > { %4051 = vmatmul.bf16.vlgmr.msra.gmra.mxu2 %v829_v4  ;;  %4064 = vmatmul.bf16.vlgmr.msra.gmra.mxu3 %v830_v5  ;;  %v837_v4 = vpack.c.b16 %v641_v56, %v641_v56  ;;  %v838_v5 = vpack.c.b16 %v642_v57, %v642_v57 }
 0x2e2   : > { %4154 = vmatpush.bf16.xpose.msra.mxu2 %v1523_v7  ;;  %4167 = vmatpush.bf16.xpose.msra.mxu3 %v1524_v8  ;;  %v1531_v7 = vpack.c.b16 %v1335_v58, %v1335_v58  ;;  %v1532_v8 = vpack.c.b16 %v1336_v59, %v1336_v59 }
 0x2e3   : > { %v3612_v15 = vpop.f32.mrf.mxu0  ;;  %v3625_v16 = vpop.f32.mrf.mxu1 }
 0x2e4   : > { %v3636_v12 = vpop.f32.mrf.mxu2  ;;  %v3649_v13 = vpop.f32.mrf.mxu3 }
 0x2e5   : > { %v3637_v14 = vadd.f32 %v3636_v12, %v3624_v11 }
 0x2e7   : > { %v3650_v19 = vadd.f32 %v3649_v13, %v3637_v14 }
 0x2eb   : > { %v3662_v34 = vpop.f32.mrf.mxu0  ;;  %v3675_v35 = vpop.f32.mrf.mxu1 }
 0x2ec   : > { %v3638_v30 = vpop.f32.mrf.mxu2  ;;  %v3651_v31 = vpop.f32.mrf.mxu3  ;;  %v3663_v38 = vadd.f32 %v3662_v34, %v3650_v19 }
 0x2ed   : > { %v841_v30 = vpack.c.b16 %v645_v22, %v645_v22  ;;  %v842_v31 = vpack.c.b16 %v646_v23, %v646_v23 }
 0x2ee   : > { %v3676_v43 = vadd.f32 %v3675_v35, %v3663_v38  ;;  %4077 = vmatmul.bf16.vlgmr.msrb.gmra.mxu0 %v831_v32  ;;  %4090 = vmatmul.bf16.vlgmr.msrb.gmra.mxu1 %v832_v33 }
 0x2ef   : > { %4180 = vmatpush.bf16.xpose.msrb.mxu0 %v1525_v41  ;;  %4193 = vmatpush.bf16.xpose.msrb.mxu1 %v1526_v42 }
 0x2f1   : > { %4103 = vmatmul.bf16.vlgmr.msrb.gmra.mxu2 %v833_v36  ;;  %4116 = vmatmul.bf16.vlgmr.msrb.gmra.mxu3 %v834_v37 }
 0x2f2   : > { %4206 = vmatpush.bf16.xpose.msrb.mxu2 %v1527_v39  ;;  %4219 = vmatpush.bf16.xpose.msrb.mxu3 %v1528_v40  ;;  %v257_v39 = vld [vmem:[%s4373_s15 + $0x300] sm:$0xff]  ;;  %v258_v40 = vld [vmem:[%s4373_s15 + $0x308] sm:$0xff] }
 0x2f3   : > { %v3664_v47 = vpop.f32.mrf.mxu0  ;;  %v3677_v48 = vpop.f32.mrf.mxu1  ;;  %v647_v42 = vunpack.c.l.b16 %v257_v39 }
 0x2f4   : > { %v3688_v44 = vpop.f32.mrf.mxu2  ;;  %v3701_v45 = vpop.f32.mrf.mxu3 }
 0x2f5   : > { %v3689_v46 = vadd.f32 %v3688_v44, %v3676_v43  ;;  %v648_v43 = vunpack.c.h.b16 %v257_v39  ;;  %v649_v44 = vunpack.c.l.b16 %v258_v40  ;;  %v843_v48 = vpack.c.b16 %v647_v42, %v647_v42 }
 0x2f7   : > { %v3702_v51 = vadd.f32 %v3701_v45, %v3689_v46  ;;  %v650_v45 = vunpack.c.h.b16 %v258_v40  ;;  %v844_v49 = vpack.c.b16 %v648_v43, %v648_v43  ;;  %v845_v52 = vpack.c.b16 %v649_v44, %v649_v44 }
 0x2f9   : > { %v846_v53 = vpack.c.b16 %v650_v45, %v650_v45 }
 0x2fb   : > { %v3714_v2 = vpop.f32.mrf.mxu0  ;;  %v3727_v3 = vpop.f32.mrf.mxu1 }
 0x2fc   : > { %v3690_v62 = vpop.f32.mrf.mxu2  ;;  %v3703_v63 = vpop.f32.mrf.mxu3  ;;  %v3715_v6 = vadd.f32 %v3714_v2, %v3702_v51 }
 0x2fe   : > { %v3728_v11 = vadd.f32 %v3727_v3, %v3715_v6  ;;  %4129 = vmatmul.bf16.vlgmr.msra.gmra.mxu0 %v835_v0  ;;  %4142 = vmatmul.bf16.vlgmr.msra.gmra.mxu1 %v836_v1 }
 0x2ff   : > { %4232 = vmatpush.bf16.xpose.msra.mxu0 %v1529_v9  ;;  %4245 = vmatpush.bf16.xpose.msra.mxu1 %v1530_v10 }
 0x301   : > { %4155 = vmatmul.bf16.vlgmr.msra.gmra.mxu2 %v837_v4  ;;  %4168 = vmatmul.bf16.vlgmr.msra.gmra.mxu3 %v838_v5 }
 0x302   : > { %4258 = vmatpush.bf16.xpose.msra.mxu2 %v1531_v7  ;;  %4271 = vmatpush.bf16.xpose.msra.mxu3 %v1532_v8 }
 0x303   : > { %v3716_v15 = vpop.f32.mrf.mxu0  ;;  %v3729_v16 = vpop.f32.mrf.mxu1 }
 0x304   : > { %v3740_v12 = vpop.f32.mrf.mxu2  ;;  %v3753_v13 = vpop.f32.mrf.mxu3 }
 0x305   : > { %v3741_v14 = vadd.f32 %v3740_v12, %v3728_v11 }
 0x307   : > { %v3754_v19 = vadd.f32 %v3753_v13, %v3741_v14 }
 0x30b   : > { %v3766_v28 = vpop.f32.mrf.mxu0  ;;  %v3779_v29 = vpop.f32.mrf.mxu1 }
 0x30c   : > { %v3742_v24 = vpop.f32.mrf.mxu2  ;;  %v3755_v25 = vpop.f32.mrf.mxu3  ;;  %v3767_v32 = vadd.f32 %v3766_v28, %v3754_v19 }
 0x30e   : > { %v3780_v33 = vadd.f32 %v3779_v29, %v3767_v32  ;;  %4181 = vmatmul.bf16.vlgmr.msrb.gmra.mxu0 %v839_v26  ;;  %4194 = vmatmul.bf16.vlgmr.msrb.gmra.mxu1 %v840_v27 }
 0x311   : > { %4207 = vmatmul.bf16.vlgmr.msrb.gmra.mxu2 %v841_v30  ;;  %4220 = vmatmul.bf16.vlgmr.msrb.gmra.mxu3 %v842_v31 }
 0x313   : > { %v3768_v37 = vpop.f32.mrf.mxu0  ;;  %v3781_v38 = vpop.f32.mrf.mxu1 }
 0x314   : > { %v3792_v34 = vpop.f32.mrf.mxu2  ;;  %v3805_v35 = vpop.f32.mrf.mxu3 }
 0x315   : > { %v3793_v36 = vadd.f32 %v3792_v34, %v3780_v33 }
 0x317   : > { %v3806_v41 = vadd.f32 %v3805_v35, %v3793_v36 }
 0x31b   : > { %v3818_v50 = vpop.f32.mrf.mxu0  ;;  %v3831_v51 = vpop.f32.mrf.mxu1 }
 0x31c   : > { %v3794_v46 = vpop.f32.mrf.mxu2  ;;  %v3807_v47 = vpop.f32.mrf.mxu3  ;;  %v3819_v54 = vadd.f32 %v3818_v50, %v3806_v41 }
 0x31e   : > { %v3832_v55 = vadd.f32 %v3831_v51, %v3819_v54  ;;  %4233 = vmatmul.bf16.vlgmr.msra.gmra.mxu0 %v843_v48  ;;  %4246 = vmatmul.bf16.vlgmr.msra.gmra.mxu1 %v844_v49 }
 0x321   : > { %4259 = vmatmul.bf16.vlgmr.msra.gmra.mxu2 %v845_v52  ;;  %4272 = vmatmul.bf16.vlgmr.msra.gmra.mxu3 %v846_v53 }
 0x323   : > { %v3820_v59 = vpop.f32.mrf.mxu0  ;;  %v3833_v60 = vpop.f32.mrf.mxu1 }
 0x324   : > { %v3844_v56 = vpop.f32.mrf.mxu2  ;;  %v3857_v57 = vpop.f32.mrf.mxu3 }
 0x325   : > { %v3845_v58 = vadd.f32 %v3844_v56, %v3832_v55 }
 0x327   : > { %v3858_v61 = vadd.f32 %v3857_v57, %v3845_v58 }
 0x32b   : > { %v3870_v0 = vpop.f32.mrf.mxu0  ;;  %v3883_v1 = vpop.f32.mrf.mxu1 }
 0x32c   : > { %v3846_v62 = vpop.f32.mrf.mxu2  ;;  %v3859_v63 = vpop.f32.mrf.mxu3  ;;  %v3871_v14 = vadd.f32 %v3870_v0, %v3858_v61 }
 0x32e   : > { %v3884_v19 = vadd.f32 %v3883_v1, %v3871_v14 }
 0x333   : > { %v3872_v4 = vpop.f32.mrf.mxu0  ;;  %v3885_v5 = vpop.f32.mrf.mxu1 }
 0x334   : > { %v3896_v2 = vpop.f32.mrf.mxu2  ;;  %v3909_v3 = vpop.f32.mrf.mxu3 }
 0x335   : > { %v3897_v20 = vadd.f32 %v3896_v2, %v3884_v19 }
 0x337   : > { %v3910_v23 = vadd.f32 %v3909_v3, %v3897_v20 }
 0x33b   : > { %v3922_v8 = vpop.f32.mrf.mxu0  ;;  %v3935_v9 = vpop.f32.mrf.mxu1 }
 0x33c   : > { %v3898_v6 = vpop.f32.mrf.mxu2  ;;  %v3911_v7 = vpop.f32.mrf.mxu3  ;;  %v3923_v26 = vadd.f32 %v3922_v8, %v3910_v23 }
 0x33e   : > { %v3936_v27 = vadd.f32 %v3935_v9, %v3923_v26 }
 0x343   : > { %v3924_v12 = vpop.f32.mrf.mxu0  ;;  %v3937_v13 = vpop.f32.mrf.mxu1 }
 0x344   : > { %v3948_v10 = vpop.f32.mrf.mxu2  ;;  %v3961_v11 = vpop.f32.mrf.mxu3 }
 0x345   : > { %v3949_v30 = vadd.f32 %v3948_v10, %v3936_v27 }
 0x347   : > { %v3962_v33 = vadd.f32 %v3961_v11, %v3949_v30 }
 0x34b   : > { %v3974_v17 = vpop.f32.mrf.mxu0  ;;  %v3987_v18 = vpop.f32.mrf.mxu1 }
 0x34c   : > { %v3950_v15 = vpop.f32.mrf.mxu2  ;;  %v3963_v16 = vpop.f32.mrf.mxu3  ;;  %v3975_v34 = vadd.f32 %v3974_v17, %v3962_v33 }
 0x34e   : > { %v3988_v39 = vadd.f32 %v3987_v18, %v3975_v34 }
 0x353   : > { %v3976_v24 = vpop.f32.mrf.mxu0  ;;  %v3989_v25 = vpop.f32.mrf.mxu1 }
 0x354   : > { %v4000_v21 = vpop.f32.mrf.mxu2  ;;  %v4013_v22 = vpop.f32.mrf.mxu3 }
 0x355   : > { %v4001_v40 = vadd.f32 %v4000_v21, %v3988_v39 }
 0x357   : > { %v4014_v43 = vadd.f32 %v4013_v22, %v4001_v40 }
 0x35b   : > { %v4026_v31 = vpop.f32.mrf.mxu0  ;;  %v4039_v32 = vpop.f32.mrf.mxu1 }
 0x35c   : > { %v4002_v28 = vpop.f32.mrf.mxu2  ;;  %v4015_v29 = vpop.f32.mrf.mxu3  ;;  %v4027_v46 = vadd.f32 %v4026_v31, %v4014_v43 }
 0x35d   : > { %v160_v29 = vld [vmem:[%s4590_s2] sm:$0xff] }
 0x35e   : > { %v4040_v47 = vadd.f32 %v4039_v32, %v4027_v46 }
 0x363   : > { %v4028_v37 = vpop.f32.mrf.mxu0  ;;  %v4041_v38 = vpop.f32.mrf.mxu1 }
 0x364   : > { %v4052_v35 = vpop.f32.mrf.mxu2  ;;  %v4065_v36 = vpop.f32.mrf.mxu3 }
 0x365   : > { %v4053_v50 = vadd.f32 %v4052_v35, %v4040_v47 }
 0x367   : > { %v4066_v53 = vadd.f32 %v4065_v36, %v4053_v50 }
 0x36b   : > { %v4078_v44 = vpop.f32.mrf.mxu0  ;;  %v4091_v45 = vpop.f32.mrf.mxu1 }
 0x36c   : > { %v4054_v41 = vpop.f32.mrf.mxu2  ;;  %v4067_v42 = vpop.f32.mrf.mxu3  ;;  %v4079_v54 = vadd.f32 %v4078_v44, %v4066_v53 }
 0x36e   : > { %v4092_v59 = vadd.f32 %v4091_v45, %v4079_v54 }
 0x373   : > { %v4080_v51 = vpop.f32.mrf.mxu0  ;;  %v4093_v52 = vpop.f32.mrf.mxu1 }
 0x374   : > { %v4104_v48 = vpop.f32.mrf.mxu2  ;;  %v4117_v49 = vpop.f32.mrf.mxu3 }
 0x375   : > { %v4105_v60 = vadd.f32 %v4104_v48, %v4092_v59 }
 0x377   : > { %v4118_v63 = vadd.f32 %v4117_v49, %v4105_v60 }
 0x37b   : > { %v4130_v57 = vpop.f32.mrf.mxu0  ;;  %v4143_v58 = vpop.f32.mrf.mxu1 }
 0x37c   : > { %v4106_v55 = vpop.f32.mrf.mxu2  ;;  %v4119_v56 = vpop.f32.mrf.mxu3  ;;  %v4131_v2 = vadd.f32 %v4130_v57, %v4118_v63 }
 0x37e   : > { %v4144_v3 = vadd.f32 %v4143_v58, %v4131_v2 }
 0x383   : > { %v4132_v0 = vpop.f32.mrf.mxu0  ;;  %v4145_v1 = vpop.f32.mrf.mxu1 }
 0x384   : > { %v4156_v61 = vpop.f32.mrf.mxu2  ;;  %v4169_v62 = vpop.f32.mrf.mxu3 }
 0x385   : > { %v4157_v6 = vadd.f32 %v4156_v61, %v4144_v3 }
 0x387   : > { %v4170_v9 = vadd.f32 %v4169_v62, %v4157_v6 }
 0x38b   : > { %v4182_v7 = vpop.f32.mrf.mxu0  ;;  %v4195_v8 = vpop.f32.mrf.mxu1 }
 0x38c   : > { %v4158_v4 = vpop.f32.mrf.mxu2  ;;  %v4171_v5 = vpop.f32.mrf.mxu3  ;;  %v4183_v10 = vadd.f32 %v4182_v7, %v4170_v9 }
 0x38e   : > { %v4196_v15 = vadd.f32 %v4195_v8, %v4183_v10 }
 0x393   : > { %v4184_v13 = vpop.f32.mrf.mxu0  ;;  %v4197_v14 = vpop.f32.mrf.mxu1 }
 0x394   : > { %v4208_v11 = vpop.f32.mrf.mxu2  ;;  %v4221_v12 = vpop.f32.mrf.mxu3 }
 0x395   : > { %v4209_v16 = vadd.f32 %v4208_v11, %v4196_v15 }
 0x397   : > { %v4222_v19 = vadd.f32 %v4221_v12, %v4209_v16 }
 0x39b   : > { %v4234_v20 = vpop.f32.mrf.mxu0  ;;  %v4247_v21 = vpop.f32.mrf.mxu1 }
 0x39c   : > { %v4210_v17 = vpop.f32.mrf.mxu2  ;;  %v4223_v18 = vpop.f32.mrf.mxu3  ;;  %v4235_v22 = vadd.f32 %v4234_v20, %v4222_v19 }
 0x39e   : > { %v4248_v23 = vadd.f32 %v4247_v21, %v4235_v22 }
 0x3a3   : > { %v4236_v27 = vpop.f32.mrf.mxu0  ;;  %v4249_v28 = vpop.f32.mrf.mxu1 }
 0x3a4   : > { %v4260_v24 = vpop.f32.mrf.mxu2  ;;  %v4273_v25 = vpop.f32.mrf.mxu3 }
 0x3a5   : > { %v4261_v26 = vadd.f32 %v4260_v24, %v4248_v23 }
 0x3a7   : > { %v4274_v30 = vadd.f32 %v4273_v25, %v4261_v26 }
 0x3a9   : > { %v4277_v31 = vadd.f32 %v4274_v30, %v160_v29 }
 0x3ab   : > { %4279 = vst.msk [vmem:[%s4590_s2] sm:$0xff] %vm4278_vm1, %v4277_v31 }
 0x3ac   : > { %v4262_v32 = vpop.f32.mrf.mxu2  ;;  %v4275_v33 = vpop.f32.mrf.mxu3 }
 0x3ad PF: > { %s12_s9 = sadd.s32 1, %s4344_s9  }
 0x3ae   : > { %p9_p5 = scmp.ge.s32.totalorder %s12_s9, 4  }
 0x3b0   :  { %11 = sbr.rel (!%p9_p5) target bundleno = 1 (0x1), region = 61 }

// kernel: style_loss.4
= control target key start
LH: loop header
LB: loop body
LE: loop exit
PB: predicated region body
PF: predicated region fallthrough
CT: control target
= control target key end

     0   :  { %vm935_vm0 = vcmask 523264   ;;  %vm16_vm1 = vcmask 392192   ;;  %s3397_s1 = inlined_call_operand.vmem [shape: bf16[48,3136], index: 1, kind: input, shape index: {}]   ;;  %s3398_s0 = inlined_call_operand.vmem [shape: bf16[48,3136], index: 0, kind: input, shape index: {}]   ;;  %s3399_s2 = inlined_call_operand.vmem [shape: f32[48,48], index: 2, kind: output, shape index: {}]  }
   0x1   :  { %v2073_v0 = vld [vmem:[%s3397_s1 + $0x190] sm:$0xf]  ;;  %v2311_v1 = vld [vmem:[%s3397_s1 + $0x1f0] sm:$0xf0]  ;;  %v2081_v2 = vld [vmem:[%s3397_s1 + $0x198] sm:$0xf] }
   0x2   :  { %v2074_v3 = vor.u32 %v2311_v1, %v2073_v0  ;;  %v2312_v4 = vld [vmem:[%s3397_s1 + $0x1f8] sm:$0xf0]  ;;  %v2083_v6 = vld [vmem:[%s3397_s1 + $0x1fc] sm:$0xf0]  ;;  %v1973_v9 = vld [vmem:[%s3397_s1 + $0xc8] sm:$0xf] }
   0x3   :  { %v2300_v5 = vld [vmem:[%s3397_s1 + $0x19c] sm:$0xf]  ;;  %v2082_v7 = vor.u32 %v2312_v4, %v2081_v2  ;;  %v2286_v10 = vld [vmem:[%s3397_s1 + $0x128] sm:$0xf0]  ;;  %v1981_v11 = vld [vmem:[%s3397_s1 + $0xd0] sm:$0xf] }
   0x4   :  { %v2086_v8 = vor.u32 %v2300_v5, %v2083_v6  ;;  %959 = vmatpush.bf16.xpose.msra.mxu0 %v2074_v3  ;;  %2324 = vmatpush.bf16.xpose.msra.mxu1 %v2074_v3  ;;  %v2287_v12 = vld [vmem:[%s3397_s1 + $0x130] sm:$0xf0]  ;;  %v1983_v14 = vld [vmem:[%s3397_s1 + $0x134] sm:$0xf0]  ;;  %v1974_v15 = vor.u32 %v2286_v10, %v1973_v9  ;;  %v1873_v18 = vld [vmem:[%s3397_s1] sm:$0xf] }
   0x5   :  { %1007 = vmatpush.bf16.xpose.msra.mxu2 %v2082_v7  ;;  %v2275_v13 = vld [vmem:[%s3397_s1 + $0xd4] sm:$0xf]  ;;  %v1982_v16 = vor.u32 %v2287_v12, %v1981_v11  ;;  %v2261_v19 = vld [vmem:[%s3397_s1 + $0x60] sm:$0xf0]  ;;  %v1881_v20 = vld [vmem:[%s3397_s1 + $0x8] sm:$0xf] }
   0x6   :  { %1031 = vmatpush.bf16.xpose.msra.mxu3 %v2086_v8  ;;  %v1986_v17 = vor.u32 %v2275_v13, %v1983_v14  ;;  %v2262_v21 = vld [vmem:[%s3397_s1 + $0x68] sm:$0xf0]  ;;  %v2299_v22 = vld [vmem:[%s3397_s1 + $0x194] sm:$0xf]  ;;  %v2075_v23 = vld [vmem:[%s3397_s1 + $0x1f4] sm:$0xf0]  ;;  %v1874_v29 = vor.u32 %v2261_v19, %v1873_v18 }
   0x7   :  { %v2250_v24 = vld [vmem:[%s3397_s1 + $0xc] sm:$0xf]  ;;  %v1883_v25 = vld [vmem:[%s3397_s1 + $0x6c] sm:$0xf0]  ;;  %v2097_v26 = vld [vmem:[%s3397_s1 + $0x1a8] sm:$0xf]  ;;  %v1882_v33 = vor.u32 %v2262_v21, %v1881_v20  ;;  %v2078_v34 = vor.u32 %v2299_v22, %v2075_v23 }
   0x8   :  { %v2314_v27 = vld [vmem:[%s3397_s1 + $0x208] sm:$0xf0]  ;;  %v2089_v28 = vld [vmem:[%s3397_s1 + $0x1a0] sm:$0xf]  ;;  %v2313_v30 = vld [vmem:[%s3397_s1 + $0x200] sm:$0xf0]  ;;  %v1886_v35 = vor.u32 %v2250_v24, %v1883_v25 }
   0x9   :  { %v2302_v31 = vld [vmem:[%s3397_s1 + $0x1ac] sm:$0xf]  ;;  %v2099_v32 = vld [vmem:[%s3397_s1 + $0x20c] sm:$0xf0]  ;;  %v2098_v36 = vor.u32 %v2314_v27, %v2097_v26  ;;  %v1573_v37 = vld [vmem:[%s3398_s0] sm:$0xf]  ;;  %v2090_v38 = vor.u32 %v2313_v30, %v2089_v28 }
   0xa   :  { %v2102_v39 = vor.u32 %v2302_v31, %v2099_v32  ;;  %v2186_v40 = vld [vmem:[%s3398_s0 + $0x60] sm:$0xf0]  ;;  %v1773_v41 = vld [vmem:[%s3398_s0 + $0x190] sm:$0xf]  ;;  %v2236_v42 = vld [vmem:[%s3398_s0 + $0x1f0] sm:$0xf0] }
   0xb   :  { %v1581_v43 = vld [vmem:[%s3398_s0 + $0x8] sm:$0xf]  ;;  %v2187_v44 = vld [vmem:[%s3398_s0 + $0x68] sm:$0xf0]  ;;  %v1975_v46 = vld [vmem:[%s3397_s1 + $0x12c] sm:$0xf0]  ;;  %v1574_v49 = vor.u32 %v2186_v40, %v1573_v37  ;;  %v1774_v50 = vor.u32 %v2236_v42, %v1773_v41 }
   0xc   :  { %960 = vmatpush.bf16.xpose.msra.mxu0 %v1974_v15  ;;  %2325 = vmatpush.bf16.xpose.msra.mxu1 %v1974_v15  ;;  %v2274_v45 = vld [vmem:[%s3397_s1 + $0xcc] sm:$0xf]  ;;  %v1583_v48 = vld [vmem:[%s3398_s0 + $0x6c] sm:$0xf0]  ;;  %v1989_v51 = vld [vmem:[%s3397_s1 + $0xd8] sm:$0xf]  ;;  %v1582_v54 = vor.u32 %v2187_v44, %v1581_v43 }
   0xd   :  { %1008 = vmatpush.bf16.xpose.msra.mxu2 %v1982_v16  ;;  %v2175_v47 = vld [vmem:[%s3398_s0 + $0xc] sm:$0xf]  ;;  %v1997_v52 = vld [vmem:[%s3397_s1 + $0xe0] sm:$0xf]  ;;  %v2289_v53 = vld [vmem:[%s3397_s1 + $0x140] sm:$0xf0]  ;;  %v1978_v58 = vor.u32 %v2274_v45, %v1975_v46 }
   0xe   :  { %1032 = vmatpush.bf16.xpose.msra.mxu3 %v1986_v17  ;;  %v2288_v55 = vld [vmem:[%s3397_s1 + $0x138] sm:$0xf0]  ;;  %v2277_v56 = vld [vmem:[%s3397_s1 + $0xe4] sm:$0xf]  ;;  %v1999_v57 = vld [vmem:[%s3397_s1 + $0x144] sm:$0xf0]  ;;  %v1586_v59 = vor.u32 %v2175_v47, %v1583_v48  ;;  %v1998_v60 = vor.u32 %v2289_v53, %v1997_v52 }
   0xf   :  { %v1990_v61 = vor.u32 %v2288_v55, %v1989_v51  ;;  %v2002_v62 = vor.u32 %v2277_v56, %v1999_v57  ;;  %v2249_v63 = vld [vmem:[%s3397_s1 + $0x4] sm:$0xf]  ;;  %v1875_v0 = vld [vmem:[%s3397_s1 + $0x64] sm:$0xf0]  ;;  %v1889_v3 = vld [vmem:[%s3397_s1 + $0x10] sm:$0xf] }
  0x10   :  { %v2301_v1 = vld [vmem:[%s3397_s1 + $0x1a4] sm:$0xf]  ;;  %v2091_v2 = vld [vmem:[%s3397_s1 + $0x204] sm:$0xf0]  ;;  %v1897_v4 = vld [vmem:[%s3397_s1 + $0x18] sm:$0xf]  ;;  %v1878_v9 = vor.u32 %v2249_v63, %v1875_v0 }
  0x11   :  { %v2264_v5 = vld [vmem:[%s3397_s1 + $0x78] sm:$0xf0]  ;;  %v2263_v6 = vld [vmem:[%s3397_s1 + $0x70] sm:$0xf0]  ;;  %v1899_v8 = vld [vmem:[%s3397_s1 + $0x7c] sm:$0xf0]  ;;  %v2094_v12 = vor.u32 %v2301_v1, %v2091_v2 }
  0x12   :  { %v2252_v7 = vld [vmem:[%s3397_s1 + $0x1c] sm:$0xf]  ;;  %v2105_v10 = vld [vmem:[%s3397_s1 + $0x1b0] sm:$0xf]  ;;  %v2315_v11 = vld [vmem:[%s3397_s1 + $0x210] sm:$0xf0]  ;;  %v1898_v13 = vor.u32 %v2264_v5, %v1897_v4  ;;  %v1890_v14 = vor.u32 %v2263_v6, %v1889_v3 }
  0x13   :  { %v1902_v15 = vor.u32 %v2252_v7, %v1899_v8  ;;  %v1673_v16 = vld [vmem:[%s3398_s0 + $0xc8] sm:$0xf]  ;;  %v2211_v17 = vld [vmem:[%s3398_s0 + $0x128] sm:$0xf0]  ;;  %v1681_v18 = vld [vmem:[%s3398_s0 + $0xd0] sm:$0xf]  ;;  %v2106_v19 = vor.u32 %v2315_v11, %v2105_v10 }
  0x14   :  { %961 = vmatpush.bf16.xpose.msra.mxu0 %v1874_v29  ;;  %2326 = vmatpush.bf16.xpose.msra.mxu1 %v1874_v29  ;;  %v2212_v20 = vld [vmem:[%s3398_s0 + $0x130] sm:$0xf0]  ;;  %v2174_v21 = vld [vmem:[%s3398_s0 + $0x4] sm:$0xf]  ;;  %v1575_v22 = vld [vmem:[%s3398_s0 + $0x64] sm:$0xf0]  ;;  %v1674_v25 = vor.u32 %v2211_v17, %v1673_v16 }
  0x15   :  { %1009 = vmatpush.bf16.xpose.msra.mxu2 %v1882_v33  ;;  %v2200_v23 = vld [vmem:[%s3398_s0 + $0xd4] sm:$0xf]  ;;  %v1683_v24 = vld [vmem:[%s3398_s0 + $0x134] sm:$0xf0]  ;;  %v2276_v26 = vld [vmem:[%s3397_s1 + $0xdc] sm:$0xf]  ;;  %v1682_v28 = vor.u32 %v2212_v20, %v1681_v18  ;;  %v1578_v29 = vor.u32 %v2174_v21, %v1575_v22 }
  0x16   :  { %1033 = vmatpush.bf16.xpose.msra.mxu3 %v1886_v35  ;;  %v1991_v27 = vld [vmem:[%s3397_s1 + $0x13c] sm:$0xf0]  ;;  %v1686_v30 = vor.u32 %v2200_v23, %v1683_v24  ;;  %v2113_v32 = vld [vmem:[%s3397_s1 + $0x1b8] sm:$0xf]  ;;  %v2316_v33 = vld [vmem:[%s3397_s1 + $0x218] sm:$0xf0] }
  0x17   :  { %v1994_v31 = vor.u32 %v2276_v26, %v1991_v27  ;;  %v2005_v35 = vld [vmem:[%s3397_s1 + $0xe8] sm:$0xf]  ;;  %v2304_v37 = vld [vmem:[%s3397_s1 + $0x1bc] sm:$0xf]  ;;  %v2115_v41 = vld [vmem:[%s3397_s1 + $0x21c] sm:$0xf0] }
  0x18   :  { %v2118_v42 = vor.u32 %v2304_v37, %v2115_v41  ;;  %v1781_v44 = vld [vmem:[%s3398_s0 + $0x198] sm:$0xf]  ;;  %v1589_v45 = vld [vmem:[%s3398_s0 + $0x10] sm:$0xf]  ;;  %v2188_v46 = vld [vmem:[%s3398_s0 + $0x70] sm:$0xf0] }
  0x19   :  { %v2237_v47 = vld [vmem:[%s3398_s0 + $0x1f8] sm:$0xf0]  ;;  %v2199_v48 = vld [vmem:[%s3398_s0 + $0xcc] sm:$0xf]  ;;  %v1783_v51 = vld [vmem:[%s3398_s0 + $0x1fc] sm:$0xf0]  ;;  %v1590_v52 = vor.u32 %v2188_v46, %v1589_v45 }
  0x1a   :  { %v1782_v53 = vor.u32 %v2237_v47, %v1781_v44  ;;  %v2303_v56 = vld [vmem:[%s3397_s1 + $0x1b4] sm:$0xf]  ;;  %v2107_v57 = vld [vmem:[%s3397_s1 + $0x214] sm:$0xf0]  ;;  %v2265_v63 = vld [vmem:[%s3397_s1 + $0x80] sm:$0xf0] }
  0x1b   :  { %962 = vmatmul.bf16.vlgmr.msra.gmra.mxu0 %v1574_v49  ;;  %972 = vmatmul.bf16.vlgmr.msra.gmra.mxu1 %v1774_v50  ;;  %v1675_v49 = vld [vmem:[%s3398_s0 + $0x12c] sm:$0xf0]  ;;  %v2225_v50 = vld [vmem:[%s3398_s0 + $0x19c] sm:$0xf]  ;;  %v2279_v0 = vld [vmem:[%s3397_s1 + $0xf4] sm:$0xf] }
  0x1c   :  { %983 = vmatpush.bf16.xpose.msrb.mxu1 %v2078_v34  ;;  %1055 = vmatpush.bf16.xpose.msrb.mxu0 %v2090_v38  ;;  %v2114_v34 = vor.u32 %v2316_v33, %v2113_v32  ;;  %v2251_v38 = vld [vmem:[%s3397_s1 + $0x14] sm:$0xf]  ;;  %v1786_v55 = vor.u32 %v2225_v50, %v1783_v51  ;;  %v2015_v2 = vld [vmem:[%s3397_s1 + $0x154] sm:$0xf0]  ;;  %v2213_v5 = vld [vmem:[%s3398_s0 + $0x138] sm:$0xf0] }
  0x1d   :  { %1103 = vmatpush.bf16.xpose.msrb.mxu2 %v2098_v36  ;;  %1034 = vmatmul.bf16.vlgmr.msra.gmra.mxu3 %v1586_v59  ;;  %v2290_v36 = vld [vmem:[%s3397_s1 + $0x148] sm:$0xf0]  ;;  %v2110_v59 = vor.u32 %v2303_v56, %v2107_v57  ;;  %v2018_v3 = vor.u32 %v2279_v0, %v2015_v2  ;;  %v1689_v4 = vld [vmem:[%s3398_s0 + $0xd8] sm:$0xf]  ;;  %v2189_v7 = vld [vmem:[%s3398_s0 + $0x78] sm:$0xf0] }
  0x1e   :  { %1127 = vmatpush.bf16.xpose.msrb.mxu3 %v2102_v39  ;;  %1010 = vmatmul.bf16.vlgmr.msra.gmra.mxu2 %v1582_v54  ;;  %v1891_v39 = vld [vmem:[%s3397_s1 + $0x74] sm:$0xf0]  ;;  %v2006_v40 = vor.u32 %v2290_v36, %v2005_v35  ;;  %v1678_v54 = vor.u32 %v2199_v48, %v1675_v49  ;;  %v2224_v8 = vld [vmem:[%s3398_s0 + $0x194] sm:$0xf]  ;;  %v2177_v10 = vld [vmem:[%s3398_s0 + $0x1c] sm:$0xf] }
  0x1f   :  { %v1894_v43 = vor.u32 %v2251_v38, %v1891_v39  ;;  %v1597_v6 = vld [vmem:[%s3398_s0 + $0x18] sm:$0xf]  ;;  %v1599_v11 = vld [vmem:[%s3398_s0 + $0x7c] sm:$0xf0]  ;;  %v2278_v16 = vld [vmem:[%s3397_s1 + $0xec] sm:$0xf] }
  0x20   :  { %v2007_v17 = vld [vmem:[%s3397_s1 + $0x14c] sm:$0xf0]  ;;  %v1913_v18 = vld [vmem:[%s3397_s1 + $0x28] sm:$0xf]  ;;  %v2266_v20 = vld [vmem:[%s3397_s1 + $0x88] sm:$0xf0] }
  0x21   :  { %v1914_v21 = vor.u32 %v2266_v20, %v1913_v18  ;;  %v2121_v22 = vld [vmem:[%s3397_s1 + $0x1c0] sm:$0xf]  ;;  %v2317_v23 = vld [vmem:[%s3397_s1 + $0x220] sm:$0xf0]  ;;  %v2254_v24 = vld [vmem:[%s3397_s1 + $0x2c] sm:$0xf] }
  0x22   :  { %v1915_v26 = vld [vmem:[%s3397_s1 + $0x8c] sm:$0xf0]  ;;  %v2176_v32 = vld [vmem:[%s3398_s0 + $0x14] sm:$0xf]  ;;  %v1591_v33 = vld [vmem:[%s3398_s0 + $0x74] sm:$0xf0] }
  0x23   :  { %v1918_v27 = vor.u32 %v2254_v24, %v1915_v26  ;;  %v1699_v35 = vld [vmem:[%s3398_s0 + $0x144] sm:$0xf0]  ;;  %v1594_v38 = vor.u32 %v2176_v32, %v1591_v33  ;;  %v2318_v44 = vld [vmem:[%s3397_s1 + $0x228] sm:$0xf0]  ;;  %v2021_v46 = vld [vmem:[%s3397_s1 + $0xf8] sm:$0xf] }
  0x24   :  { %984 = vmatpush.bf16.xpose.msrb.mxu1 %v1978_v58  ;;  %1056 = vmatpush.bf16.xpose.msrb.mxu0 %v1990_v61  ;;  %v2013_v58 = vld [vmem:[%s3397_s1 + $0xf0] sm:$0xf]  ;;  %v1907_v41 = vld [vmem:[%s3397_s1 + $0x84] sm:$0xf0]  ;;  %v2292_v47 = vld [vmem:[%s3397_s1 + $0x158] sm:$0xf0] }
  0x25   :  { %1104 = vmatpush.bf16.xpose.msrb.mxu2 %v1998_v60  ;;  %v2291_v60 = vld [vmem:[%s3397_s1 + $0x150] sm:$0xf0]  ;;  %v2306_v48 = vld [vmem:[%s3397_s1 + $0x1cc] sm:$0xf]  ;;  %v2022_v49 = vor.u32 %v2292_v47, %v2021_v46  ;;  %v2131_v50 = vld [vmem:[%s3397_s1 + $0x22c] sm:$0xf0] }
  0x26   :  { %1128 = vmatpush.bf16.xpose.msrb.mxu3 %v2002_v62  ;;  %v2014_v61 = vor.u32 %v2291_v60, %v2013_v58  ;;  %v1905_v62 = vld [vmem:[%s3397_s1 + $0x20] sm:$0xf]  ;;  %v2134_v51 = vor.u32 %v2306_v48, %v2131_v50  ;;  %v2201_v56 = vld [vmem:[%s3398_s0 + $0xdc] sm:$0xf]  ;;  %v2227_v58 = vld [vmem:[%s3398_s0 + $0x1ac] sm:$0xf] }
  0x27   :  { %v1906_v1 = vor.u32 %v2265_v63, %v1905_v62  ;;  %v1691_v57 = vld [vmem:[%s3398_s0 + $0x13c] sm:$0xf0]  ;;  %v2305_v0 = vld [vmem:[%s3397_s1 + $0x1c4] sm:$0xf]  ;;  %v2280_v24 = vld [vmem:[%s3397_s1 + $0xfc] sm:$0xf] }
  0x28   :  { %v1694_v62 = vor.u32 %v2201_v56, %v1691_v57  ;;  %v2029_v2 = vld [vmem:[%s3397_s1 + $0x100] sm:$0xf]  ;;  %v2281_v20 = vld [vmem:[%s3397_s1 + $0x104] sm:$0xf]  ;;  %v1929_v26 = vld [vmem:[%s3397_s1 + $0x38] sm:$0xf] }
  0x29   :  { %v1805_v33 = vld [vmem:[%s3398_s0 + $0x1b0] sm:$0xf]  ;;  %v1931_v46 = vld [vmem:[%s3397_s1 + $0x9c] sm:$0xf0]  ;;  %v2255_v48 = vld [vmem:[%s3397_s1 + $0x34] sm:$0xf] }
  0x2a   :  { %v2145_v50 = vld [vmem:[%s3397_s1 + $0x1d8] sm:$0xf]  ;;  %v2192_v56 = vld [vmem:[%s3398_s0 + $0x90] sm:$0xf0]  ;;  %v2037_v57 = vld [vmem:[%s3397_s1 + $0x108] sm:$0xf] }
  0x2b   :  { %967 = vmatmul.bf16.gmra.mxu0 %v1674_v25  ;;  %v2122_v25 = vor.u32 %v2317_v23, %v2121_v22 }
  0x2c   :  { %985 = vmatpush.bf16.xpose.msrb.mxu1 %v1878_v9  ;;  %1057 = vmatpush.bf16.xpose.msrb.mxu0 %v1890_v14  ;;  %v1775_v9 = vld [vmem:[%s3398_s0 + $0x1f4] sm:$0xf0] }
  0x2d   :  { %1105 = vmatpush.bf16.xpose.msrb.mxu2 %v1898_v13  ;;  %1039 = vmatmul.bf16.gmra.mxu3 %v1686_v30  ;;  %v1598_v13 = vor.u32 %v2189_v7, %v1597_v6  ;;  %v1778_v14 = vor.u32 %v2224_v8, %v1775_v9  ;;  %v1697_v30 = vld [vmem:[%s3398_s0 + $0xe0] sm:$0xf]  ;;  %v1921_v6 = vld [vmem:[%s3397_s1 + $0x30] sm:$0xf]  ;;  %v2267_v7 = vld [vmem:[%s3397_s1 + $0x90] sm:$0xf0] }
  0x2e   :  { %1129 = vmatpush.bf16.xpose.msrb.mxu3 %v1902_v15  ;;  %1015 = vmatmul.bf16.gmra.mxu2 %v1682_v28  ;;  %v1602_v15 = vor.u32 %v2177_v10, %v1599_v11  ;;  %v1789_v28 = vld [vmem:[%s3398_s0 + $0x1a0] sm:$0xf]  ;;  %v1922_v8 = vor.u32 %v2267_v7, %v1921_v6  ;;  %v1705_v9 = vld [vmem:[%s3398_s0 + $0xe8] sm:$0xf]  ;;  %v2215_v10 = vld [vmem:[%s3398_s0 + $0x148] sm:$0xf0] }
  0x2f   :  { %v1613_v11 = vld [vmem:[%s3398_s0 + $0x28] sm:$0xf]  ;;  %v2308_v7 = vld [vmem:[%s3397_s1 + $0x1dc] sm:$0xf] }
  0x33   :  { %986 = vmatmul.bf16.vlgmr.msrb.gmra.mxu1 %v1578_v29  ;;  %v2238_v29 = vld [vmem:[%s3398_s0 + $0x200] sm:$0xf0] }
  0x34   :  { %1079 = vmatpush.bf16.xpose.msra.mxu1 %v2094_v12  ;;  %1151 = vmatpush.bf16.xpose.msra.mxu0 %v2106_v19  ;;  %v1690_v12 = vor.u32 %v2213_v5, %v1689_v4  ;;  %v2010_v19 = vor.u32 %v2278_v16, %v2007_v17  ;;  %v1790_v36 = vor.u32 %v2238_v29, %v1789_v28  ;;  %v2293_v4 = vld [vmem:[%s3397_s1 + $0x160] sm:$0xf0]  ;;  %v1615_v16 = vld [vmem:[%s3398_s0 + $0x8c] sm:$0xf0]  ;;  %v2268_v28 = vld [vmem:[%s3397_s1 + $0x98] sm:$0xf0] }
  0x35   :  { %1199 = vmatpush.bf16.xpose.msra.mxu2 %v2114_v34  ;;  %v2202_v34 = vld [vmem:[%s3398_s0 + $0xe4] sm:$0xf]  ;;  %v2030_v5 = vor.u32 %v2293_v4, %v2029_v2  ;;  %v1706_v17 = vor.u32 %v2215_v10, %v1705_v9  ;;  %v1930_v29 = vor.u32 %v2268_v28, %v1929_v26  ;;  %v2307_v9 = vld [vmem:[%s3397_s1 + $0x1d4] sm:$0xf]  ;;  %v2193_v26 = vld [vmem:[%s3398_s0 + $0x98] sm:$0xf0] }
  0x36   :  { %1223 = vmatpush.bf16.xpose.msra.mxu3 %v2118_v42  ;;  %v1702_v39 = vor.u32 %v2202_v34, %v1699_v35  ;;  %v2129_v42 = vld [vmem:[%s3397_s1 + $0x1c8] sm:$0xf]  ;;  %v2240_v34 = vld [vmem:[%s3398_s0 + $0x210] sm:$0xf0]  ;;  %v1713_v35 = vld [vmem:[%s3398_s0 + $0xf0] sm:$0xf] }
  0x37   :  { %v2130_v45 = vor.u32 %v2318_v44, %v2129_v42  ;;  %v1807_v28 = vld [vmem:[%s3398_s0 + $0x214] sm:$0xf0] }
  0x3b   :  { %1058 = vmatmul.bf16.vlgmr.msrb.gmra.mxu0 %v1590_v52  ;;  %v1797_v52 = vld [vmem:[%s3398_s0 + $0x1a8] sm:$0xf] }
  0x3c   :  { %1080 = vmatpush.bf16.xpose.msra.mxu1 %v1994_v31  ;;  %1152 = vmatpush.bf16.xpose.msra.mxu0 %v2006_v40  ;;  %v2214_v31 = vld [vmem:[%s3398_s0 + $0x140] sm:$0xf0] }
  0x3d   :  { %1044 = vmatmul.bf16.gmra.mxu3 %v1786_v55  ;;  %1200 = vmatpush.bf16.xpose.msra.mxu2 %v2014_v61  ;;  %v1698_v37 = vor.u32 %v2214_v31, %v1697_v30  ;;  %v2253_v40 = vld [vmem:[%s3397_s1 + $0x24] sm:$0xf]  ;;  %v2239_v55 = vld [vmem:[%s3398_s0 + $0x208] sm:$0xf0]  ;;  %v2137_v30 = vld [vmem:[%s3397_s1 + $0x1d0] sm:$0xf] }
  0x3e   :  { %1020 = vmatmul.bf16.gmra.mxu2 %v1782_v53  ;;  %1224 = vmatpush.bf16.xpose.msra.mxu3 %v2018_v3  ;;  %v1605_v53 = vld [vmem:[%s3398_s0 + $0x20] sm:$0xf]  ;;  %v1798_v61 = vor.u32 %v2239_v55, %v1797_v52  ;;  %v2319_v31 = vld [vmem:[%s3397_s1 + $0x230] sm:$0xf0]  ;;  %v2320_v52 = vld [vmem:[%s3397_s1 + $0x238] sm:$0xf0] }
  0x3f   :  { %v2138_v32 = vor.u32 %v2319_v31, %v2137_v30  ;;  %v1621_v55 = vld [vmem:[%s3398_s0 + $0x30] sm:$0xf]  ;;  %v1631_v30 = vld [vmem:[%s3398_s0 + $0x9c] sm:$0xf0] }
  0x43   :  { %991 = vmatmul.bf16.gmra.mxu1 %v1678_v54  ;;  %v2190_v54 = vld [vmem:[%s3398_s0 + $0x80] sm:$0xf0] }
  0x44   :  { %1081 = vmatpush.bf16.xpose.msra.mxu1 %v1894_v43  ;;  %1153 = vmatpush.bf16.xpose.msra.mxu0 %v1906_v1  ;;  %v1910_v43 = vor.u32 %v2253_v40, %v1907_v41  ;;  %v1606_v60 = vor.u32 %v2190_v54, %v1605_v53  ;;  %v2123_v1 = vld [vmem:[%s3397_s1 + $0x224] sm:$0xf0]  ;;  %v1715_v40 = vld [vmem:[%s3398_s0 + $0x154] sm:$0xf0]  ;;  %v1806_v41 = vor.u32 %v2240_v34, %v1805_v33 }
  0x45   :  { %1201 = vmatpush.bf16.xpose.msra.mxu2 %v1914_v21  ;;  %v2126_v3 = vor.u32 %v2305_v0, %v2123_v1  ;;  %v2031_v21 = vld [vmem:[%s3397_s1 + $0x164] sm:$0xf0]  ;;  %v2146_v53 = vor.u32 %v2320_v52, %v2145_v50  ;;  %v1813_v54 = vld [vmem:[%s3398_s0 + $0x1b8] sm:$0xf]  ;;  %v1815_v0 = vld [vmem:[%s3398_s0 + $0x21c] sm:$0xf0]  ;;  %v1622_v1 = vor.u32 %v2192_v56, %v1621_v55 }
  0x46   :  { %1225 = vmatpush.bf16.xpose.msra.mxu3 %v1918_v27  ;;  %v2034_v23 = vor.u32 %v2281_v20, %v2031_v21  ;;  %v1937_v20 = vld [vmem:[%s3397_s1 + $0x40] sm:$0xf]  ;;  %v2269_v21 = vld [vmem:[%s3397_s1 + $0xa0] sm:$0xf0] }
  0x47   :  { %v1821_v56 = vld [vmem:[%s3398_s0 + $0x1c0] sm:$0xf] }
  0x4b   :  { %1063 = vmatmul.bf16.gmra.mxu0 %v1690_v12  ;;  %v2191_v12 = vld [vmem:[%s3398_s0 + $0x88] sm:$0xf0] }
  0x4c   :  { %1175 = vmatpush.bf16.xpose.msrb.mxu1 %v2110_v59  ;;  %1247 = vmatpush.bf16.xpose.msrb.mxu0 %v2122_v25  ;;  %v1799_v59 = vld [vmem:[%s3398_s0 + $0x20c] sm:$0xf0]  ;;  %v1614_v18 = vor.u32 %v2191_v12, %v1613_v11  ;;  %v2023_v25 = vld [vmem:[%s3397_s1 + $0x15c] sm:$0xf0]  ;;  %v2139_v11 = vld [vmem:[%s3397_s1 + $0x234] sm:$0xf0] }
  0x4d   :  { %1130 = vmatmul.bf16.vlgmr.msrb.gmra.mxu3 %v1602_v15  ;;  %v1802_v63 = vor.u32 %v2227_v58, %v1799_v59  ;;  %v2179_v15 = vld [vmem:[%s3398_s0 + $0x2c] sm:$0xf]  ;;  %v2026_v27 = vor.u32 %v2280_v24, %v2023_v25  ;;  %v2241_v59 = vld [vmem:[%s3398_s0 + $0x218] sm:$0xf0]  ;;  %v2045_v12 = vld [vmem:[%s3397_s1 + $0x110] sm:$0xf] }
  0x4e   :  { %1106 = vmatmul.bf16.vlgmr.msrb.gmra.mxu2 %v1598_v13  ;;  %1319 = vmatpush.bf16.xpose.msrb.mxu3 %v2134_v51  ;;  %v2226_v13 = vld [vmem:[%s3398_s0 + $0x1a4] sm:$0xf]  ;;  %v1618_v22 = vor.u32 %v2179_v15, %v1615_v16  ;;  %v2294_v58 = vld [vmem:[%s3397_s1 + $0x168] sm:$0xf0]  ;;  %v1814_v4 = vor.u32 %v2241_v59, %v1813_v54  ;;  %v2217_v24 = vld [vmem:[%s3398_s0 + $0x158] sm:$0xf0] }
  0x4f   :  { %1295 = vmatpush.bf16.xpose.msrb.mxu2 %v2130_v45  ;;  %v2256_v45 = vld [vmem:[%s3397_s1 + $0x3c] sm:$0xf]  ;;  %v1629_v25 = vld [vmem:[%s3398_s0 + $0x38] sm:$0xf]  ;;  %v1729_v59 = vld [vmem:[%s3398_s0 + $0x100] sm:$0xf] }
  0x50   :  { %v1934_v47 = vor.u32 %v2256_v45, %v1931_v46  ;;  %v1630_v34 = vor.u32 %v2193_v26, %v1629_v25  ;;  %v2039_v45 = vld [vmem:[%s3397_s1 + $0x16c] sm:$0xf0]  ;;  %v1945_v46 = vld [vmem:[%s3397_s1 + $0x48] sm:$0xf]  ;;  %v2322_v25 = vld [vmem:[%s3397_s1 + $0x248] sm:$0xf0] }
  0x53   :  { %996 = vmatmul.bf16.gmra.mxu1 %v1778_v14  ;;  %v1791_v14 = vld [vmem:[%s3398_s0 + $0x204] sm:$0xf0] }
  0x54   :  { %1176 = vmatpush.bf16.xpose.msrb.mxu1 %v2010_v19  ;;  %1248 = vmatpush.bf16.xpose.msrb.mxu0 %v2022_v49  ;;  %v1794_v19 = vor.u32 %v2226_v13, %v1791_v14  ;;  %v1923_v49 = vld [vmem:[%s3397_s1 + $0x94] sm:$0xf0]  ;;  %v2295_v13 = vld [vmem:[%s3397_s1 + $0x170] sm:$0xf0]  ;;  %v2142_v14 = vor.u32 %v2307_v9, %v2139_v11 }
  0x55   :  { %v1926_v51 = vor.u32 %v2255_v48, %v1923_v49  ;;  %v2046_v15 = vor.u32 %v2295_v13, %v2045_v12 }
  0x56   :  { %1320 = vmatpush.bf16.xpose.msrb.mxu3 %v2034_v23  ;;  %v1721_v23 = vld [vmem:[%s3398_s0 + $0xf8] sm:$0xf] }
  0x57   :  { %1296 = vmatpush.bf16.xpose.msrb.mxu2 %v2030_v5 }
  0x5b   :  { %1068 = vmatmul.bf16.gmra.mxu0 %v1790_v36  ;;  %v2216_v36 = vld [vmem:[%s3398_s0 + $0x150] sm:$0xf0] }
  0x5c   :  { %1177 = vmatpush.bf16.xpose.msrb.mxu1 %v1910_v43  ;;  %1249 = vmatpush.bf16.xpose.msrb.mxu0 %v1922_v8  ;;  %v1714_v42 = vor.u32 %v2216_v36, %v1713_v35  ;;  %v2147_v8 = vld [vmem:[%s3397_s1 + $0x23c] sm:$0xf0] }
  0x5d   :  { %1135 = vmatmul.bf16.gmra.mxu3 %v1702_v39  ;;  %v2204_v39 = vld [vmem:[%s3398_s0 + $0xf4] sm:$0xf]  ;;  %v2150_v10 = vor.u32 %v2308_v7, %v2147_v8 }
  0x5e   :  { %1111 = vmatmul.bf16.gmra.mxu2 %v1698_v37  ;;  %v2178_v37 = vld [vmem:[%s3398_s0 + $0x24] sm:$0xf]  ;;  %v1718_v44 = vor.u32 %v2204_v39, %v1715_v40  ;;  %1321 = vmatpush.bf16.xpose.msrb.mxu3 %v1934_v47  ;;  %v2270_v47 = vld [vmem:[%s3397_s1 + $0xa8] sm:$0xf0] }
  0x5f   :  { %1297 = vmatpush.bf16.xpose.msrb.mxu2 %v1930_v29  ;;  %v2181_v29 = vld [vmem:[%s3398_s0 + $0x3c] sm:$0xf]  ;;  %v1946_v50 = vor.u32 %v2270_v47, %v1945_v46  ;;  %v1831_v46 = vld [vmem:[%s3398_s0 + $0x22c] sm:$0xf0] }
  0x63   :  { %1082 = vmatmul.bf16.vlgmr.msra.gmra.mxu1 %v1594_v38  ;;  %v1607_v38 = vld [vmem:[%s3398_s0 + $0x84] sm:$0xf0] }
  0x64   :  { %1271 = vmatpush.bf16.xpose.msra.mxu1 %v2126_v3  ;;  %v1610_v43 = vor.u32 %v2178_v37, %v1607_v38  ;;  %v1634_v38 = vor.u32 %v2181_v29, %v1631_v30 }
  0x6b   :  { %1154 = vmatmul.bf16.vlgmr.msra.gmra.mxu0 %v1606_v60  ;;  %v2203_v60 = vld [vmem:[%s3398_s0 + $0xec] sm:$0xf] }
  0x6c   :  { %1272 = vmatpush.bf16.xpose.msra.mxu1 %v2026_v27  ;;  %1343 = vmatpush.bf16.xpose.msra.mxu0 %v2138_v32  ;;  %v2228_v27 = vld [vmem:[%s3398_s0 + $0x1b4] sm:$0xf]  ;;  %v1722_v32 = vor.u32 %v2217_v24, %v1721_v23  ;;  %v2161_v23 = vld [vmem:[%s3397_s1 + $0x1e8] sm:$0xf] }
  0x6d   :  { %1140 = vmatmul.bf16.gmra.mxu3 %v1802_v63  ;;  %v2229_v63 = vld [vmem:[%s3398_s0 + $0x1bc] sm:$0xf]  ;;  %v1810_v35 = vor.u32 %v2228_v27, %v1807_v28  ;;  %v2162_v27 = vor.u32 %v2322_v25, %v2161_v23  ;;  %v1647_v23 = vld [vmem:[%s3398_s0 + $0xac] sm:$0xf0] }
  0x6e   :  { %1116 = vmatmul.bf16.gmra.mxu2 %v1798_v61  ;;  %v1707_v61 = vld [vmem:[%s3398_s0 + $0x14c] sm:$0xf0]  ;;  %v1818_v6 = vor.u32 %v2229_v63, %v1815_v0  ;;  %v2180_v63 = vld [vmem:[%s3398_s0 + $0x34] sm:$0xf]  ;;  %v1623_v0 = vld [vmem:[%s3398_s0 + $0x94] sm:$0xf0] }
  0x6f   :  { %v1710_v5 = vor.u32 %v2203_v60, %v1707_v61  ;;  %v2153_v60 = vld [vmem:[%s3397_s1 + $0x1e0] sm:$0xf]  ;;  %v2321_v61 = vld [vmem:[%s3397_s1 + $0x240] sm:$0xf0] }
  0x73   :  { %1087 = vmatmul.bf16.gmra.mxu1 %v1694_v62  ;;  %v2038_v62 = vor.u32 %v2294_v58, %v2037_v57  ;;  %v2242_v57 = vld [vmem:[%s3398_s0 + $0x220] sm:$0xf0] }
  0x74   :  { %1273 = vmatpush.bf16.xpose.msra.mxu1 %v1926_v51  ;;  %v1822_v7 = vor.u32 %v2242_v57, %v1821_v56 }
  0x75   :  { %1344 = vmatpush.bf16.xpose.msra.mxu0 %v2038_v62  ;;  %v2218_v62 = vld [vmem:[%s3398_s0 + $0x160] sm:$0xf0] }
  0x76   :  { %v1730_v9 = vor.u32 %v2218_v62, %v1729_v59  ;;  %v2163_v59 = vld [vmem:[%s3397_s1 + $0x24c] sm:$0xf0]  ;;  %v2061_v62 = vld [vmem:[%s3397_s1 + $0x120] sm:$0xf] }
  0x7b   :  { %1159 = vmatmul.bf16.gmra.mxu0 %v1706_v17 }
  0x7d   :  { %1226 = vmatmul.bf16.vlgmr.msra.gmra.mxu3 %v1618_v22  ;;  %v1938_v22 = vor.u32 %v2269_v21, %v1937_v20  ;;  %v2257_v21 = vld [vmem:[%s3397_s1 + $0x44] sm:$0xf] }
  0x7e   :  { %1202 = vmatmul.bf16.vlgmr.msra.gmra.mxu2 %v1614_v18  ;;  %1415 = vmatpush.bf16.xpose.msra.mxu3 %v2150_v10  ;;  %v1626_v10 = vor.u32 %v2180_v63, %v1623_v0  ;;  %v2297_v63 = vld [vmem:[%s3397_s1 + $0x180] sm:$0xf0] }
  0x7f   :  { %1391 = vmatpush.bf16.xpose.msra.mxu2 %v2146_v53  ;;  %1345 = vmatpush.bf16.xpose.msra.mxu0 %v1938_v22  ;;  %v1939_v22 = vld [vmem:[%s3397_s1 + $0xa4] sm:$0xf0] }
  0x80   :  { %v1942_v24 = vor.u32 %v2257_v21, %v1939_v22  ;;  %v2183_v22 = vld [vmem:[%s3398_s0 + $0x4c] sm:$0xf] }
  0x83   :  { %1092 = vmatmul.bf16.gmra.mxu1 %v1794_v19 }
  0x87   :  { %1392 = vmatpush.bf16.xpose.msra.mxu2 %v2046_v15  ;;  %v2258_v15 = vld [vmem:[%s3397_s1 + $0x4c] sm:$0xf] }
  0x8b   :  { %1164 = vmatmul.bf16.gmra.mxu0 %v1806_v41  ;;  %v2283_v41 = vld [vmem:[%s3397_s1 + $0x114] sm:$0xf] }
  0x8d   :  { %1231 = vmatmul.bf16.gmra.mxu3 %v1718_v44 }
  0x8e   :  { %1207 = vmatmul.bf16.gmra.mxu2 %v1714_v42  ;;  %v2047_v42 = vld [vmem:[%s3397_s1 + $0x174] sm:$0xf0] }
  0x8f   :  { %v2050_v44 = vor.u32 %v2283_v41, %v2047_v42  ;;  %1393 = vmatpush.bf16.xpose.msra.mxu2 %v1946_v50  ;;  %v2205_v41 = vld [vmem:[%s3398_s0 + $0xfc] sm:$0xf]  ;;  %v1723_v42 = vld [vmem:[%s3398_s0 + $0x15c] sm:$0xf0] }
  0x91   :  { %1416 = vmatpush.bf16.xpose.msra.mxu3 %v2050_v44 }
  0x93   :  { %1178 = vmatmul.bf16.vlgmr.msrb.gmra.mxu1 %v1610_v43  ;;  %v2282_v43 = vld [vmem:[%s3397_s1 + $0x10c] sm:$0xf] }
  0x94   :  { %1367 = vmatpush.bf16.xpose.msrb.mxu1 %v2142_v14  ;;  %v2042_v49 = vor.u32 %v2282_v43, %v2039_v45  ;;  %v2231_v45 = vld [vmem:[%s3398_s0 + $0x1cc] sm:$0xf] }
  0x98   :  { %v963_v2 = vpop.f32.mrf.mxu0  ;;  %v2869_v3 = vpop.f32.mrf.mxu1 }
  0x9b   :  { %1250 = vmatmul.bf16.vlgmr.msrb.gmra.mxu0 %v1622_v1  ;;  %v2154_v1 = vor.u32 %v2321_v61, %v2153_v60  ;;  %v2309_v60 = vld [vmem:[%s3397_s1 + $0x1e4] sm:$0xf] }
  0x9c   :  { %1368 = vmatpush.bf16.xpose.msrb.mxu1 %v2042_v49 }
  0x9d   :  { %1236 = vmatmul.bf16.gmra.mxu3 %v1818_v6  ;;  %1439 = vmatpush.bf16.xpose.msrb.mxu0 %v2154_v1 }
  0x9e   :  { %1212 = vmatmul.bf16.gmra.mxu2 %v1814_v4  ;;  %v2206_v4 = vld [vmem:[%s3398_s0 + $0x104] sm:$0xf] }
  0xa0   :  { %v965_v17 = vpop.f32.mrf.mxu0  ;;  %v2889_v18 = vpop.f32.mrf.mxu1 }
  0xa1   :  { %v1011_v16 = vpop.f32.mrf.mxu2  ;;  %v1035_v19 = vpop.f32.mrf.mxu3 }
  0xa3   :  { %1183 = vmatmul.bf16.gmra.mxu1 %v1710_v5  ;;  %v1731_v5 = vld [vmem:[%s3398_s0 + $0x164] sm:$0xf0] }
  0xa4   :  { %v1734_v14 = vor.u32 %v2206_v4, %v1731_v5  ;;  %1369 = vmatpush.bf16.xpose.msrb.mxu1 %v1942_v24 }
  0xa8   :  { %v968_v33 = vpop.f32.mrf.mxu0 }
  0xa9   :  { %v1013_v31 = vpop.f32.mrf.mxu2  ;;  %v1037_v37 = vpop.f32.mrf.mxu3 }
  0xab   :  { %1255 = vmatmul.bf16.gmra.mxu0 %v1722_v32 }
  0xad   :  { %1322 = vmatmul.bf16.vlgmr.msrb.gmra.mxu3 %v1634_v38  ;;  %v2053_v38 = vld [vmem:[%s3397_s1 + $0x118] sm:$0xf] }
  0xae   :  { %1298 = vmatmul.bf16.vlgmr.msrb.gmra.mxu2 %v1630_v34  ;;  %v1829_v34 = vld [vmem:[%s3398_s0 + $0x1c8] sm:$0xf] }
  0xaf   :  { %1487 = vmatpush.bf16.xpose.msrb.mxu2 %v2162_v27 }
  0xb0   :  { %v987_v36 = vpop.f32.mrf.mxu1  ;;  %v970_v52 = vpop.f32.mrf.mxu0 }
  0xb1   :  { %v988_v39 = vadd.f32 %v987_v36, %v963_v2  ;;  %v1016_v51 = vpop.f32.mrf.mxu2  ;;  %v1040_v54 = vpop.f32.mrf.mxu3 }
  0xb3   :  { %v1012_v40 = vadd.f32 %v1011_v16, %v988_v39  ;;  %1188 = vmatmul.bf16.gmra.mxu1 %v1810_v35  ;;  %v1947_v16 = vld [vmem:[%s3397_s1 + $0xac] sm:$0xf0]  ;;  %v1637_v35 = vld [vmem:[%s3398_s0 + $0x40] sm:$0xf]  ;;  %v2296_v39 = vld [vmem:[%s3397_s1 + $0x178] sm:$0xf0] }
  0xb4   :  { %v2054_v43 = vor.u32 %v2296_v39, %v2053_v38  ;;  %v2284_v38 = vld [vmem:[%s3397_s1 + $0x11c] sm:$0xf] }
  0xb5   :  { %v1036_v48 = vadd.f32 %v1035_v19, %v1012_v40  ;;  %v1950_v19 = vor.u32 %v2258_v15, %v1947_v16  ;;  %v2243_v40 = vld [vmem:[%s3398_s0 + $0x228] sm:$0xf0]  ;;  %v1737_v15 = vld [vmem:[%s3398_s0 + $0x108] sm:$0xf] }
  0xb6   :  { %1440 = vmatpush.bf16.xpose.msrb.mxu0 %v2054_v43  ;;  %v1830_v50 = vor.u32 %v2243_v40, %v1829_v34  ;;  %v2219_v16 = vld [vmem:[%s3398_s0 + $0x168] sm:$0xf0]  ;;  %v1961_v40 = vld [vmem:[%s3397_s1 + $0x58] sm:$0xf] }
  0xb7   :  { %1417 = vmatpush.bf16.xpose.msra.mxu3 %v1950_v19  ;;  %v2230_v19 = vld [vmem:[%s3398_s0 + $0x1c4] sm:$0xf]  ;;  %v1738_v25 = vor.u32 %v2219_v16, %v1737_v15 }
  0xb8   :  { %v989_v53 = vpop.f32.mrf.mxu1  ;;  %v1059_v8 = vpop.f32.mrf.mxu0 }
  0xb9   :  { %v990_v55 = vadd.f32 %v989_v53, %v965_v17  ;;  %v1018_v6 = vpop.f32.mrf.mxu2  ;;  %v2969_v11 = vadd.f32 %v1059_v8, %v1036_v48  ;;  %v1042_v13 = vpop.f32.mrf.mxu3 }
  0xbb   :  { %v1014_v58 = vadd.f32 %v1013_v31, %v990_v55  ;;  %1260 = vmatmul.bf16.gmra.mxu0 %v1822_v7  ;;  %v1834_v55 = vor.u32 %v2231_v45, %v1831_v46 }
  0xbd   :  { %v1038_v2 = vadd.f32 %v1037_v37, %v1014_v58  ;;  %1327 = vmatmul.bf16.gmra.mxu3 %v1734_v14  ;;  %v2194_v37 = vld [vmem:[%s3398_s0 + $0xa0] sm:$0xf0]  ;;  %v2310_v58 = vld [vmem:[%s3397_s1 + $0x1ec] sm:$0xf] }
  0xbe   :  { %1303 = vmatmul.bf16.gmra.mxu2 %v1730_v9  ;;  %v1638_v48 = vor.u32 %v2194_v37, %v1637_v35  ;;  %v2166_v61 = vor.u32 %v2310_v58, %v2163_v59  ;;  %v2063_v37 = vld [vmem:[%s3397_s1 + $0x184] sm:$0xf0]  ;;  %v2182_v58 = vld [vmem:[%s3398_s0 + $0x44] sm:$0xf] }
  0xbf   :  { %v1639_v59 = vld [vmem:[%s3398_s0 + $0xa4] sm:$0xf0] }
  0xc0   :  { %v992_v12 = vpop.f32.mrf.mxu1  ;;  %v1061_v29 = vpop.f32.mrf.mxu0  ;;  %1511 = vmatpush.bf16.xpose.msrb.mxu3 %v2166_v61 }
  0xc1   :  { %v993_v17 = vadd.f32 %v992_v12, %v968_v33  ;;  %v1021_v28 = vpop.f32.mrf.mxu2  ;;  %v2989_v30 = vadd.f32 %v1061_v29, %v1038_v2  ;;  %v1045_v32 = vpop.f32.mrf.mxu3  ;;  %v2062_v2 = vor.u32 %v2297_v63, %v2061_v62  ;;  %v2271_v12 = vld [vmem:[%s3397_s1 + $0xb0] sm:$0xf0]  ;;  %v1747_v62 = vld [vmem:[%s3398_s0 + $0x174] sm:$0xf0] }
  0xc3   :  { %v1017_v20 = vadd.f32 %v1016_v51, %v993_v17  ;;  %1274 = vmatmul.bf16.vlgmr.msra.gmra.mxu1 %v1626_v10  ;;  %v1726_v51 = vor.u32 %v2205_v41, %v1723_v42  ;;  %1488 = vmatpush.bf16.xpose.msrb.mxu2 %v2062_v2  ;;  %v1953_v10 = vld [vmem:[%s3397_s1 + $0x50] sm:$0xf]  ;;  %v2195_v17 = vld [vmem:[%s3398_s0 + $0xa8] sm:$0xf0]  ;;  %v2272_v41 = vld [vmem:[%s3397_s1 + $0xb8] sm:$0xf0] }
  0xc5   :  { %v1041_v26 = vadd.f32 %v1040_v54, %v1017_v20  ;;  %v1823_v20 = vld [vmem:[%s3398_s0 + $0x224] sm:$0xf0] }
  0xc8   :  { %v994_v31 = vpop.f32.mrf.mxu1  ;;  %v1064_v49 = vpop.f32.mrf.mxu0 }
  0xc9   :  { %v995_v33 = vadd.f32 %v994_v31, %v970_v52  ;;  %v1023_v47 = vpop.f32.mrf.mxu2  ;;  %v3021_v52 = vadd.f32 %v1064_v49, %v1041_v26  ;;  %v1047_v54 = vpop.f32.mrf.mxu3 }
  0xcb   :  { %v1019_v36 = vadd.f32 %v1018_v6, %v995_v33  ;;  %1346 = vmatmul.bf16.vlgmr.msra.gmra.mxu0 %v1638_v48  ;;  %v1650_v33 = vor.u32 %v2183_v22, %v1647_v23 }
  0xcd   :  { %v1043_v44 = vadd.f32 %v1042_v13, %v1019_v36  ;;  %1332 = vmatmul.bf16.gmra.mxu3 %v1834_v55  ;;  %v1954_v13 = vor.u32 %v2271_v12, %v1953_v10  ;;  %v2285_v36 = vld [vmem:[%s3397_s1 + $0x124] sm:$0xf]  ;;  %v2260_v12 = vld [vmem:[%s3397_s1 + $0x5c] sm:$0xf] }
  0xce   :  { %1308 = vmatmul.bf16.gmra.mxu2 %v1830_v50  ;;  %v2066_v39 = vor.u32 %v2285_v36, %v2063_v37 }
  0xcf   :  { %1441 = vmatpush.bf16.xpose.msrb.mxu0 %v1954_v13  ;;  %v1963_v13 = vld [vmem:[%s3397_s1 + $0xbc] sm:$0xf0] }
  0xd0   :  { %v997_v53 = vpop.f32.mrf.mxu1  ;;  %v1066_v5 = vpop.f32.mrf.mxu0  ;;  %1512 = vmatpush.bf16.xpose.msrb.mxu3 %v2066_v39  ;;  %v1966_v15 = vor.u32 %v2260_v12, %v1963_v13  ;;  %v1847_v39 = vld [vmem:[%s3398_s0 + $0x23c] sm:$0xf0] }
  0xd1   :  { %v998_v56 = vadd.f32 %v997_v53, %v2869_v3  ;;  %v2155_v3 = vld [vmem:[%s3397_s1 + $0x244] sm:$0xf0]  ;;  %v1107_v4 = vpop.f32.mrf.mxu2  ;;  %v3042_v6 = vadd.f32 %v1066_v5, %v1043_v44  ;;  %v1131_v8 = vpop.f32.mrf.mxu3  ;;  %v1962_v44 = vor.u32 %v2272_v41, %v1961_v40  ;;  %v2244_v53 = vld [vmem:[%s3398_s0 + $0x230] sm:$0xf0]  ;;  %v1642_v5 = vor.u32 %v2182_v58, %v1639_v59  ;;  %v1969_v58 = vld [vmem:[%s3397_s1 + $0x60] sm:$0xf] }
  0xd2   :  { %v2158_v1 = vor.u32 %v2309_v60, %v2155_v3  ;;  %v2208_v3 = vld [vmem:[%s3398_s0 + $0x114] sm:$0xf] }
  0xd3   :  { %v1022_v57 = vadd.f32 %v1021_v28, %v998_v56  ;;  %1279 = vmatmul.bf16.gmra.mxu1 %v1726_v51  ;;  %v1826_v28 = vor.u32 %v2230_v19, %v1823_v20  ;;  %1489 = vmatpush.bf16.xpose.msrb.mxu2 %v1962_v44  ;;  %v1837_v51 = vld [vmem:[%s3398_s0 + $0x1d0] sm:$0xf]  ;;  %v1750_v10 = vor.u32 %v2208_v3, %v1747_v62  ;;  %v2221_v62 = vld [vmem:[%s3398_s0 + $0x178] sm:$0xf0] }
  0xd4   :  { %1463 = vmatpush.bf16.xpose.msra.mxu1 %v2158_v1  ;;  %v2169_v56 = vld [vmem:[%s3397_s1 + $0x1f0] sm:$0xf] }
  0xd5   :  { %v1046_v0 = vadd.f32 %v1045_v32, %v1022_v57  ;;  %v2220_v57 = vld [vmem:[%s3398_s0 + $0x170] sm:$0xf0] }
  0xd8   :  { %v999_v7 = vpop.f32.mrf.mxu1  ;;  %v1069_v26 = vpop.f32.mrf.mxu0  ;;  %1513 = vmatpush.bf16.xpose.msrb.mxu3 %v1966_v15 }
  0xd9   :  { %v1000_v9 = vadd.f32 %v999_v7, %v2889_v18  ;;  %v1645_v18 = vld [vmem:[%s3398_s0 + $0x48] sm:$0xf]  ;;  %v1109_v24 = vpop.f32.mrf.mxu2  ;;  %v3075_v29 = vadd.f32 %v1069_v26, %v1046_v0  ;;  %v1133_v32 = vpop.f32.mrf.mxu3  ;;  %v1838_v0 = vor.u32 %v2244_v53, %v1837_v51  ;;  %v1845_v26 = vld [vmem:[%s3398_s0 + $0x1d8] sm:$0xf] }
  0xda   :  { %v1646_v27 = vor.u32 %v2195_v17, %v1645_v18  ;;  %v2259_v18 = vld [vmem:[%s3397_s1 + $0x54] sm:$0xf]  ;;  %v1955_v17 = vld [vmem:[%s3397_s1 + $0xb4] sm:$0xf0] }
  0xdb   :  { %v1024_v14 = vadd.f32 %v1023_v47, %v1000_v9  ;;  %1351 = vmatmul.bf16.gmra.mxu0 %v1738_v25  ;;  %v1958_v19 = vor.u32 %v2259_v18, %v1955_v17 }
  0xdd   :  { %v1048_v21 = vadd.f32 %v1047_v54, %v1024_v14  ;;  %1418 = vmatmul.bf16.vlgmr.msra.gmra.mxu3 %v1650_v33  ;;  %v1745_v54 = vld [vmem:[%s3398_s0 + $0x110] sm:$0xf]  ;;  %v2245_v33 = vld [vmem:[%s3398_s0 + $0x238] sm:$0xf0] }
  0xde   :  { %1394 = vmatmul.bf16.vlgmr.msra.gmra.mxu2 %v1646_v27  ;;  %v1653_v27 = vld [vmem:[%s3398_s0 + $0x50] sm:$0xf] }
  0xe0   :  { %v1083_v31 = vpop.f32.mrf.mxu1  ;;  %v1071_v46 = vpop.f32.mrf.mxu0 }
  0xe1   :  { %v1084_v34 = vadd.f32 %v1083_v31, %v2969_v11  ;;  %v2055_v11 = vld [vmem:[%s3397_s1 + $0x17c] sm:$0xf0]  ;;  %v1112_v45 = vpop.f32.mrf.mxu2  ;;  %v3096_v47 = vadd.f32 %v1071_v46, %v1048_v21  ;;  %v1136_v49 = vpop.f32.mrf.mxu3  ;;  %v2196_v31 = vld [vmem:[%s3398_s0 + $0xb0] sm:$0xf0] }
  0xe2   :  { %v2058_v43 = vor.u32 %v2284_v38, %v2055_v11  ;;  %v2233_v38 = vld [vmem:[%s3398_s0 + $0x1dc] sm:$0xf]  ;;  %v1654_v40 = vor.u32 %v2196_v31, %v1653_v27  ;;  %v1853_v31 = vld [vmem:[%s3398_s0 + $0x1e0] sm:$0xf] }
  0xe3   :  { %v1108_v35 = vadd.f32 %v1107_v4, %v1084_v34  ;;  %1284 = vmatmul.bf16.gmra.mxu1 %v1826_v28  ;;  %v1746_v4 = vor.u32 %v2220_v57, %v1745_v54  ;;  %v2207_v34 = vld [vmem:[%s3398_s0 + $0x10c] sm:$0xf] }
  0xe4   :  { %1464 = vmatpush.bf16.xpose.msra.mxu1 %v2058_v43  ;;  %v1846_v43 = vor.u32 %v2245_v33, %v1845_v26  ;;  %v1655_v33 = vld [vmem:[%s3398_s0 + $0xb4] sm:$0xf0] }
  0xe5   :  { %v1132_v42 = vadd.f32 %v1131_v8, %v1108_v35  ;;  %v1739_v35 = vld [vmem:[%s3398_s0 + $0x16c] sm:$0xf0] }
  0xe6   :  { %v1742_v44 = vor.u32 %v2207_v34, %v1739_v35  ;;  %v2210_v35 = vld [vmem:[%s3398_s0 + $0x124] sm:$0xf] }
  0xe8   :  { %v1085_v48 = vpop.f32.mrf.mxu1  ;;  %v1155_v2 = vpop.f32.mrf.mxu0 }
  0xe9   :  { %v1086_v50 = vadd.f32 %v1085_v48, %v2989_v30  ;;  %v2323_v30 = vld [vmem:[%s3397_s1 + $0x250] sm:$0xf0]  ;;  %v1114_v63 = vpop.f32.mrf.mxu2  ;;  %v3130_v7 = vadd.f32 %v1155_v2, %v1132_v42  ;;  %v1138_v9 = vpop.f32.mrf.mxu3  ;;  %v1839_v2 = vld [vmem:[%s3398_s0 + $0x234] sm:$0xf0] }
  0xea   :  { %v2170_v60 = vor.u32 %v2323_v30, %v2169_v56 }
  0xeb   :  { %v1110_v55 = vadd.f32 %v1109_v24, %v1086_v50  ;;  %1356 = vmatmul.bf16.gmra.mxu0 %v1838_v0 }
  0xec   :  { %v952_v1 = vsel %vm935_vm0, %v2170_v60, 0  ;;  %1465 = vmatpush.bf16.xpose.msra.mxu1 %v1958_v19 }
  0xed   :  { %v1134_v61 = vadd.f32 %v1133_v32, %v1110_v55  ;;  %1535 = vmatpush.bf16.xpose.msra.mxu0 %v952_v1  ;;  %2327 = vmatpush.bf16.xpose.msra.mxu2 %v952_v1  ;;  %v2069_v32 = vld [vmem:[%s3397_s1 + $0x128] sm:$0xf]  ;;  %v2232_v1 = vld [vmem:[%s3398_s0 + $0x1d4] sm:$0xf] }
  0xee   :  { %1399 = vmatmul.bf16.gmra.mxu2 %v1746_v4  ;;  %1423 = vmatmul.bf16.gmra.mxu3 %v1750_v10 }
  0xf0   :  { %v1088_v8 = vpop.f32.mrf.mxu1 }
  0xf1   :  { %v1089_v14 = vadd.f32 %v1088_v8, %v3021_v52  ;;  %v1117_v21 = vpop.f32.mrf.mxu2  ;;  %v1157_v52 = vpop.f32.mrf.mxu0  ;;  %v1663_v8 = vld [vmem:[%s3398_s0 + $0xbc] sm:$0xf0] }
  0xf2   :  { %v3145_v22 = vadd.f32 %v1157_v52, %v1134_v61  ;;  %v1141_v24 = vpop.f32.mrf.mxu3  ;;  %v1753_v61 = vld [vmem:[%s3398_s0 + $0x118] sm:$0xf] }
  0xf3   :  { %v1113_v16 = vadd.f32 %v1112_v45, %v1089_v14  ;;  %1370 = vmatmul.bf16.vlgmr.msrb.gmra.mxu1 %v1642_v5  ;;  %v2185_v5 = vld [vmem:[%s3398_s0 + $0x5c] sm:$0xf]  ;;  %v1754_v10 = vor.u32 %v2221_v62, %v1753_v61  ;;  %v1842_v14 = vor.u32 %v2232_v1, %v1839_v2  ;;  %v1863_v62 = vld [vmem:[%s3398_s0 + $0x24c] sm:$0xf0] }
  0xf4   :  { %v1666_v17 = vor.u32 %v2185_v5, %v1663_v8 }
  0xf5   :  { %v1137_v20 = vadd.f32 %v1136_v49, %v1113_v16  ;;  %v1850_v49 = vor.u32 %v2233_v38, %v1847_v39 }
  0xf8   :  { %v1090_v23 = vpop.f32.mrf.mxu1 }
  0xf9   :  { %v1091_v25 = vadd.f32 %v1090_v23, %v3042_v6  ;;  %v2298_v6 = vld [vmem:[%s3397_s1 + $0x188] sm:$0xf0]  ;;  %v1119_v11 = vpop.f32.mrf.mxu2  ;;  %v1160_v42 = vpop.f32.mrf.mxu0 }
  0xfa   :  { %v2070_v36 = vor.u32 %v2298_v6, %v2069_v32  ;;  %v3179_v45 = vadd.f32 %v1160_v42, %v1137_v20  ;;  %v1143_v48 = vpop.f32.mrf.mxu3  ;;  %v1761_v32 = vld [vmem:[%s3398_s0 + $0x120] sm:$0xf]  ;;  %v2222_v6 = vld [vmem:[%s3398_s0 + $0x180] sm:$0xf0] }
  0xfb   :  { %v1115_v28 = vadd.f32 %v1114_v63, %v1091_v25  ;;  %1442 = vmatmul.bf16.vlgmr.msrb.gmra.mxu0 %v1654_v40  ;;  %v1661_v63 = vld [vmem:[%s3398_s0 + $0x58] sm:$0xf] }
  0xfc   :  { %v949_v41 = vsel %vm935_vm0, %v2070_v36, 0  ;;  %v1763_v36 = vld [vmem:[%s3398_s0 + $0x184] sm:$0xf0] }
  0xfd   :  { %v1139_v37 = vadd.f32 %v1138_v9, %v1115_v28  ;;  %1536 = vmatpush.bf16.xpose.msra.mxu0 %v949_v41  ;;  %2328 = vmatpush.bf16.xpose.msra.mxu2 %v949_v41 }
  0xfe   :  { %1404 = vmatmul.bf16.gmra.mxu2 %v1846_v43  ;;  %1428 = vmatmul.bf16.gmra.mxu3 %v1850_v49 }
 0x100   :  { %v1093_v46 = vpop.f32.mrf.mxu1 }
 0x101   :  { %v1094_v50 = vadd.f32 %v1093_v46, %v3075_v29  ;;  %v1203_v54 = vpop.f32.mrf.mxu2  ;;  %v1162_v55 = vpop.f32.mrf.mxu0  ;;  %v2273_v29 = vld [vmem:[%s3397_s1 + $0xc0] sm:$0xf0] }
 0x102   :  { %v3182_v56 = vadd.f32 %v1162_v55, %v1139_v37  ;;  %v1227_v57 = vpop.f32.mrf.mxu3  ;;  %v1970_v60 = vor.u32 %v2273_v29, %v1969_v58  ;;  %v1861_v58 = vld [vmem:[%s3398_s0 + $0x1e8] sm:$0xf]  ;;  %v2198_v29 = vld [vmem:[%s3398_s0 + $0xc0] sm:$0xf0] }
 0x103   :  { %v1118_v51 = vadd.f32 %v1117_v21, %v1094_v50  ;;  %1375 = vmatmul.bf16.gmra.mxu1 %v1742_v44  ;;  %v1766_v44 = vor.u32 %v2210_v35, %v1763_v36 }
 0x104   :  { %v946_v0 = vsel %vm935_vm0, %v1970_v60, 0  ;;  %v1755_v60 = vld [vmem:[%s3398_s0 + $0x17c] sm:$0xf0] }
 0x105   :  { %v1142_v53 = vadd.f32 %v1141_v24, %v1118_v51  ;;  %1537 = vmatpush.bf16.xpose.msra.mxu0 %v946_v0  ;;  %2329 = vmatpush.bf16.xpose.msra.mxu2 %v946_v0 }
 0x108   :  { %v1095_v30 = vpop.f32.mrf.mxu1 }
 0x109   :  { %v1096_v59 = vadd.f32 %v1095_v30, %v3096_v47  ;;  %v2197_v47 = vld [vmem:[%s3398_s0 + $0xb8] sm:$0xf0]  ;;  %v1205_v9 = vpop.f32.mrf.mxu2  ;;  %v1165_v12 = vpop.f32.mrf.mxu0 }
 0x10a   :  { %v1662_v13 = vor.u32 %v2197_v47, %v1661_v63  ;;  %v3216_v15 = vadd.f32 %v1165_v12, %v1142_v53  ;;  %v1229_v18 = vpop.f32.mrf.mxu3 }
 0x10b   :  { %v1120_v3 = vadd.f32 %v1119_v11, %v1096_v59  ;;  %1447 = vmatmul.bf16.gmra.mxu0 %v1754_v10  ;;  %v1762_v11 = vor.u32 %v2222_v6, %v1761_v32  ;;  %v2247_v59 = vld [vmem:[%s3398_s0 + $0x248] sm:$0xf0] }
 0x10c   :  { %v1862_v1 = vor.u32 %v2247_v59, %v1861_v58 }
 0x10d   :  { %v1144_v4 = vadd.f32 %v1143_v48, %v1120_v3  ;;  %v2235_v3 = vld [vmem:[%s3398_s0 + $0x1ec] sm:$0xf] }
 0x10e   :  { %1490 = vmatmul.bf16.vlgmr.msrb.gmra.mxu2 %v1662_v13  ;;  %1514 = vmatmul.bf16.vlgmr.msrb.gmra.mxu3 %v1666_v17 }
 0x110   :  { %v1179_v16 = vpop.f32.mrf.mxu1 }
 0x111   :  { %v1180_v19 = vadd.f32 %v1179_v16, %v3130_v7  ;;  %v1208_v52 = vpop.f32.mrf.mxu2  ;;  %v1167_v23 = vpop.f32.mrf.mxu0  ;;  %v2246_v7 = vld [vmem:[%s3398_s0 + $0x240] sm:$0xf0] }
 0x112   :  { %v3219_v24 = vadd.f32 %v1167_v23, %v1144_v4  ;;  %v1232_v26 = vpop.f32.mrf.mxu3  ;;  %v1854_v38 = vor.u32 %v2246_v7, %v1853_v31  ;;  %v1869_v23 = vld [vmem:[%s3398_s0 + $0x1f0] sm:$0xf] }
 0x113   :  { %v1204_v20 = vadd.f32 %v1203_v54, %v1180_v19  ;;  %1380 = vmatmul.bf16.gmra.mxu1 %v1842_v14 }
 0x115   :  { %v1228_v21 = vadd.f32 %v1227_v57, %v1204_v20 }
 0x118   :  { %v1181_v25 = vpop.f32.mrf.mxu1 }
 0x119   :  { %v1182_v27 = vadd.f32 %v1181_v25, %v3145_v22  ;;  %v2184_v22 = vld [vmem:[%s3398_s0 + $0x54] sm:$0xf]  ;;  %v1210_v37 = vpop.f32.mrf.mxu2  ;;  %v1251_v39 = vpop.f32.mrf.mxu0 }
 0x11a   :  { %v1658_v40 = vor.u32 %v2184_v22, %v1655_v33  ;;  %v3246_v41 = vadd.f32 %v1251_v39, %v1228_v21  ;;  %v1234_v43 = vpop.f32.mrf.mxu3  ;;  %v2248_v25 = vld [vmem:[%s3398_s0 + $0x250] sm:$0xf0] }
 0x11b   :  { %v1206_v28 = vadd.f32 %v1205_v9, %v1182_v27  ;;  %1452 = vmatmul.bf16.gmra.mxu0 %v1854_v38  ;;  %v1866_v9 = vor.u32 %v2235_v3, %v1863_v62  ;;  %v1870_v32 = vor.u32 %v2248_v25, %v1869_v23 }
 0x11d   :  { %v1230_v34 = vadd.f32 %v1229_v18, %v1206_v28 }
 0x11e   :  { %1495 = vmatmul.bf16.gmra.mxu2 %v1762_v11  ;;  %1519 = vmatmul.bf16.gmra.mxu3 %v1766_v44 }
 0x120   :  { %v1184_v42 = vpop.f32.mrf.mxu1 }
 0x121   :  { %v1185_v46 = vadd.f32 %v1184_v42, %v3179_v45  ;;  %v1213_v50 = vpop.f32.mrf.mxu2  ;;  %v1253_v51 = vpop.f32.mrf.mxu0  ;;  %v1669_v45 = vld [vmem:[%s3398_s0 + $0x60] sm:$0xf] }
 0x122   :  { %v3249_v53 = vadd.f32 %v1253_v51, %v1230_v34  ;;  %v1237_v55 = vpop.f32.mrf.mxu3  ;;  %v1670_v0 = vor.u32 %v2198_v29, %v1669_v45 }
 0x123   :  { %v1209_v48 = vadd.f32 %v1208_v52, %v1185_v46  ;;  %1466 = vmatmul.bf16.vlgmr.msra.gmra.mxu1 %v1658_v40  ;;  %v1769_v52 = vld [vmem:[%s3398_s0 + $0x128] sm:$0xf] }
 0x125   :  { %v1233_v49 = vadd.f32 %v1232_v26, %v1209_v48  ;;  %v1855_v26 = vld [vmem:[%s3398_s0 + $0x244] sm:$0xf0] }
 0x128   :  { %v1186_v54 = vpop.f32.mrf.mxu1 }
 0x129   :  { %v1187_v30 = vadd.f32 %v1186_v54, %v3182_v56  ;;  %v2209_v56 = vld [vmem:[%s3398_s0 + $0x11c] sm:$0xf]  ;;  %v1215_v63 = vpop.f32.mrf.mxu2  ;;  %v1256_v47 = vpop.f32.mrf.mxu0 }
 0x12a   :  { %v1758_v2 = vor.u32 %v2209_v56, %v1755_v60  ;;  %v1257_v4 = vadd.f32 %v1256_v47, %v1233_v49  ;;  %v1239_v8 = vpop.f32.mrf.mxu3 }
 0x12b   :  { %v1211_v57 = vadd.f32 %v1210_v37, %v1187_v30  ;;  %2171 = vmatmul.msk.bf16.vlgmr.msra.gmra.mxu0 %vm935_vm0, %v1670_v0 }
 0x12d   :  { %v1235_v61 = vadd.f32 %v1234_v43, %v1211_v57 }
 0x12e   :  { %1500 = vmatmul.bf16.gmra.mxu2 %v1862_v1  ;;  %1524 = vmatmul.bf16.gmra.mxu3 %v1866_v9 }
 0x130   :  { %v1189_v5 = vpop.f32.mrf.mxu1 }
 0x131   :  { %v1190_v10 = vadd.f32 %v1189_v5, %v3216_v15  ;;  %v1299_v14 = vpop.f32.mrf.mxu2  ;;  %v1258_v16 = vpop.f32.mrf.mxu0  ;;  %v2223_v15 = vld [vmem:[%s3398_s0 + $0x188] sm:$0xf0] }
 0x132   :  { %v1259_v18 = vadd.f32 %v1258_v16, %v1235_v61  ;;  %v1323_v19 = vpop.f32.mrf.mxu3  ;;  %v1770_v31 = vor.u32 %v2223_v15, %v1769_v52 }
 0x133   :  { %v1214_v12 = vadd.f32 %v1213_v50, %v1190_v10  ;;  %1471 = vmatmul.bf16.gmra.mxu1 %v1758_v2 }
 0x135   :  { %v1238_v13 = vadd.f32 %v1237_v55, %v1214_v12 }
 0x138   :  { %v1191_v17 = vpop.f32.mrf.mxu1 }
 0x139   :  { %v1192_v20 = vadd.f32 %v1191_v17, %v3219_v24  ;;  %v2234_v24 = vld [vmem:[%s3398_s0 + $0x1e4] sm:$0xf]  ;;  %v1301_v28 = vpop.f32.mrf.mxu2  ;;  %v1261_v7 = vpop.f32.mrf.mxu0 }
 0x13a   :  { %v1858_v6 = vor.u32 %v2234_v24, %v1855_v26  ;;  %v1262_v22 = vadd.f32 %v1261_v7, %v1238_v13  ;;  %v1325_v34 = vpop.f32.mrf.mxu3 }
 0x13b   :  { %v1216_v21 = vadd.f32 %v1215_v63, %v1192_v20  ;;  %2172 = vmatmul.msk.bf16.gmra.mxu0 %vm935_vm0, %v1770_v31 }
 0x13d   :  { %v1240_v27 = vadd.f32 %v1239_v8, %v1216_v21 }
 0x13e   :  { %2173 = vmatmul.msk.bf16.vlgmr.msra.gmra.mxu2 %vm935_vm0, %v1870_v32 }
 0x140   :  { %v1275_v33 = vpop.f32.mrf.mxu1 }
 0x141   :  { %v1276_v35 = vadd.f32 %v1275_v33, %v3246_v41  ;;  %v1304_v38 = vpop.f32.mrf.mxu2  ;;  %v1263_v39 = vpop.f32.mrf.mxu0 }
 0x142   :  { %v1264_v11 = vadd.f32 %v1263_v39, %v1240_v27  ;;  %v1328_v42 = vpop.f32.mrf.mxu3 }
 0x143   :  { %v1300_v36 = vadd.f32 %v1299_v14, %v1276_v35  ;;  %1476 = vmatmul.bf16.gmra.mxu1 %v1858_v6 }
 0x145   :  { %v1324_v37 = vadd.f32 %v1323_v19, %v1300_v36 }
 0x148   :  { %v1277_v40 = vpop.f32.mrf.mxu1 }
 0x149   :  { %v1278_v43 = vadd.f32 %v1277_v40, %v3249_v53  ;;  %v1306_v48 = vpop.f32.mrf.mxu2  ;;  %v1347_v49 = vpop.f32.mrf.mxu0 }
 0x14a   :  { %v3301_v50 = vadd.f32 %v1347_v49, %v1324_v37  ;;  %v1330_v51 = vpop.f32.mrf.mxu3 }
 0x14b   :  { %v1302_v44 = vadd.f32 %v1301_v28, %v1278_v43 }
 0x14d   :  { %v1326_v46 = vadd.f32 %v1325_v34, %v1302_v44 }
 0x150   :  { %v1280_v41 = vpop.f32.mrf.mxu1 }
 0x151   :  { %v1281_v54 = vadd.f32 %v1280_v41, %v1257_v4  ;;  %v1309_v57 = vpop.f32.mrf.mxu2  ;;  %v1349_v58 = vpop.f32.mrf.mxu0 }
 0x152   :  { %v1350_v45 = vadd.f32 %v1349_v58, %v1326_v46  ;;  %v1333_v59 = vpop.f32.mrf.mxu3 }
 0x153   :  { %v1305_v55 = vadd.f32 %v1304_v38, %v1281_v54 }
 0x155   :  { %v1329_v30 = vadd.f32 %v1328_v42, %v1305_v55 }
 0x158   :  { %v1282_v29 = vpop.f32.mrf.mxu1 }
 0x159   :  { %v1283_v56 = vadd.f32 %v1282_v29, %v1259_v18  ;;  %v1311_v53 = vpop.f32.mrf.mxu2  ;;  %v1352_v3 = vpop.f32.mrf.mxu0 }
 0x15a   :  { %v3303_v62 = vadd.f32 %v1352_v3, %v1329_v30  ;;  %v1335_v0 = vpop.f32.mrf.mxu3 }
 0x15b   :  { %v1307_v60 = vadd.f32 %v1306_v48, %v1283_v56 }
 0x15d   :  { %v1331_v61 = vadd.f32 %v1330_v51, %v1307_v60 }
 0x160   :  { %v1285_v63 = vpop.f32.mrf.mxu1 }
 0x161   :  { %v1286_v47 = vadd.f32 %v1285_v63, %v1262_v22  ;;  %v1395_v4 = vpop.f32.mrf.mxu2  ;;  %v1354_v5 = vpop.f32.mrf.mxu0  ;;  %v2331_v22 = vmov 0.0  }
 0x162   :  { %v3305_v8 = vadd.f32 %v1354_v5, %v1331_v61  ;;  %v1419_v10 = vpop.f32.mrf.mxu3  ;;  %17 = vst.msk [vmem:[%s3399_s2] sm:$0xff] %vm16_vm1, %v2331_v22 }
 0x163   :  { %v1310_v1 = vadd.f32 %v1309_v57, %v1286_v47  ;;  %18 = vst.msk [vmem:[%s3399_s2 + $0x8] sm:$0xff] %vm16_vm1, %v2331_v22 }
 0x164   :  { %19 = vst.msk [vmem:[%s3399_s2 + $0x10] sm:$0xff] %vm16_vm1, %v2331_v22 }
 0x165   :  { %v1334_v2 = vadd.f32 %v1333_v59, %v1310_v1  ;;  %20 = vst.msk [vmem:[%s3399_s2 + $0x18] sm:$0xff] %vm16_vm1, %v2331_v22 }
 0x166   :  { %21 = vst.msk [vmem:[%s3399_s2 + $0x20] sm:$0xff] %vm16_vm1, %v2331_v22 }
 0x167   :  { %22 = vst.msk [vmem:[%s3399_s2 + $0x28] sm:$0xff] %vm16_vm1, %v2331_v22 }
 0x168   :  { %v1287_v9 = vpop.f32.mrf.mxu1 }
 0x169   :  { %v1288_v12 = vadd.f32 %v1287_v9, %v1264_v11  ;;  %v1397_v16 = vpop.f32.mrf.mxu2  ;;  %v1357_v18 = vpop.f32.mrf.mxu0 }
 0x16a   :  { %v3307_v17 = vadd.f32 %v1357_v18, %v1334_v2  ;;  %v1421_v20 = vpop.f32.mrf.mxu3  ;;  %v24_v18 = vld [vmem:[%s3399_s2 + $0x8] sm:$0xff] }
 0x16b   :  { %v1312_v13 = vadd.f32 %v1311_v53, %v1288_v12 }
 0x16d   :  { %v1336_v14 = vadd.f32 %v1335_v0, %v1312_v13 }
 0x170   :  { %v1371_v19 = vpop.f32.mrf.mxu1 }
 0x171   :  { %v1400_v21 = vpop.f32.mrf.mxu2  ;;  %v1359_v52 = vpop.f32.mrf.mxu0  ;;  %v1372_v11 = vadd.f32 %v1371_v19, %v3301_v50 }
 0x172   :  { %v3309_v15 = vadd.f32 %v1359_v52, %v1336_v14  ;;  %v1424_v25 = vpop.f32.mrf.mxu3 }
 0x173   :  { %v1396_v42 = vadd.f32 %v1395_v4, %v1372_v11 }
 0x175   :  { %v1420_v49 = vadd.f32 %v1419_v10, %v1396_v42 }
 0x178   :  { %v1373_v23 = vpop.f32.mrf.mxu1 }
 0x179   :  { %v1402_v24 = vpop.f32.mrf.mxu2  ;;  %v1443_v26 = vpop.f32.mrf.mxu0  ;;  %v1374_v48 = vadd.f32 %v1373_v23, %v1350_v45  ;;  %v23_v45 = vld [vmem:[%s3399_s2] sm:$0xff] }
 0x17a   :  { %v3311_v28 = vpop.f32.mrf.mxu3  ;;  %v1444_v41 = vadd.f32 %v1443_v26, %v1420_v49 }
 0x17b   :  { %v1398_v54 = vadd.f32 %v1397_v16, %v1374_v48 }
 0x17d   :  { %v1422_v59 = vadd.f32 %v1421_v20, %v1398_v54 }
 0x180   :  { %v1376_v27 = vpop.f32.mrf.mxu1 }
 0x181   :  { %v3313_v31 = vpop.f32.mrf.mxu2  ;;  %v1445_v7 = vpop.f32.mrf.mxu0  ;;  %v1377_v29 = vadd.f32 %v1376_v27, %v3303_v62 }
 0x182   :  { %v3315_v6 = vpop.f32.mrf.mxu3  ;;  %v1446_v60 = vadd.f32 %v1445_v7, %v1422_v59 }
 0x183   :  { %v1401_v50 = vadd.f32 %v1400_v21, %v1377_v29 }
 0x185   :  { %v1425_v4 = vadd.f32 %v1424_v25, %v1401_v50 }
 0x188   :  { %v1378_v32 = vpop.f32.mrf.mxu1 }
 0x189   :  { %v3329_v33 = vpop.f32.mrf.mxu2  ;;  %v1448_v34 = vpop.f32.mrf.mxu0  ;;  %v1379_v2 = vadd.f32 %v1378_v32, %v3305_v8 }
 0x18a   :  { %v3339_v36 = vpop.f32.mrf.mxu3  ;;  %v1449_v9 = vadd.f32 %v1448_v34, %v1425_v4 }
 0x18b   :  { %v1403_v12 = vadd.f32 %v1402_v24, %v1379_v2 }
 0x18d   :  { %v1427_v23 = vadd.f32 %v3311_v28, %v1403_v12  ;;  %v25_v28 = vld [vmem:[%s3399_s2 + $0x10] sm:$0xff] }
 0x190   :  { %v1381_v35 = vpop.f32.mrf.mxu1 }
 0x191   :  { %v1491_v37 = vpop.f32.mrf.mxu2  ;;  %v1450_v38 = vpop.f32.mrf.mxu0  ;;  %v1382_v10 = vadd.f32 %v1381_v35, %v3307_v17 }
 0x192   :  { %v1515_v40 = vpop.f32.mrf.mxu3  ;;  %v1451_v27 = vadd.f32 %v1450_v38, %v1427_v23 }
 0x193   :  { %v1406_v52 = vadd.f32 %v3313_v31, %v1382_v10 }
 0x195   :  { %v1430_v24 = vadd.f32 %v3315_v6, %v1406_v52 }
 0x198   :  { %v1383_v39 = vpop.f32.mrf.mxu1 }
 0x199   :  { %v1493_v43 = vpop.f32.mrf.mxu2  ;;  %v1453_v44 = vpop.f32.mrf.mxu0  ;;  %v1384_v17 = vadd.f32 %v1383_v39, %v3309_v15 }
 0x19a   :  { %v1517_v51 = vpop.f32.mrf.mxu3  ;;  %v1454_v34 = vadd.f32 %v1453_v44, %v1430_v24  ;;  %v27_v44 = vld [vmem:[%s3399_s2 + $0x20] sm:$0xff] }
 0x19b   :  { %v1408_v38 = vadd.f32 %v3329_v33, %v1384_v17 }
 0x19d   :  { %v1432_v6 = vadd.f32 %v3339_v36, %v1408_v38 }
 0x1a0   :  { %v1467_v46 = vpop.f32.mrf.mxu1 }
 0x1a1   :  { %v1468_v55 = vadd.f32 %v1467_v46, %v1444_v41  ;;  %v1496_v30 = vpop.f32.mrf.mxu2  ;;  %v1455_v57 = vpop.f32.mrf.mxu0  ;;  %v26_v41 = vld [vmem:[%s3399_s2 + $0x18] sm:$0xff] }
 0x1a2   :  { %v1520_v53 = vpop.f32.mrf.mxu3  ;;  %v1456_v33 = vadd.f32 %v1455_v57, %v1432_v6 }
 0x1a3   :  { %v1492_v56 = vadd.f32 %v1491_v37, %v1468_v55 }
 0x1a5   :  { %v1516_v63 = vadd.f32 %v1515_v40, %v1492_v56  ;;  %v28_v56 = vld [vmem:[%s3399_s2 + $0x28] sm:$0xff] }
 0x1a8   :  { %v1469_v58 = vpop.f32.mrf.mxu1 }
 0x1a9   :  { %v1470_v61 = vadd.f32 %v1469_v58, %v1446_v60  ;;  %v1498_v3 = vpop.f32.mrf.mxu2  ;;  %v1539_v0 = vpop.f32.mrf.mxu0 }
 0x1aa   :  { %v1540_v47 = vadd.f32 %v1539_v0, %v1516_v63  ;;  %v1522_v19 = vpop.f32.mrf.mxu3 }
 0x1ab   :  { %v1494_v5 = vadd.f32 %v1493_v43, %v1470_v61 }
 0x1ac   :  { %v1554_v62 = vadd.f32 %v1540_v47, %v23_v45 }
 0x1ad   :  { %v1518_v16 = vadd.f32 %v1517_v51, %v1494_v5 }
 0x1ae   :  { %1561 = vst.msk [vmem:[%s3399_s2] sm:$0xff] %vm16_vm1, %v1554_v62 }
 0x1b0   :  { %v1472_v1 = vpop.f32.mrf.mxu1 }
 0x1b1   :  { %v1473_v13 = vadd.f32 %v1472_v1, %v1449_v9  ;;  %v1501_v14 = vpop.f32.mrf.mxu2  ;;  %v1541_v8 = vpop.f32.mrf.mxu0 }
 0x1b2   :  { %v1542_v20 = vadd.f32 %v1541_v8, %v1518_v16  ;;  %v1525_v42 = vpop.f32.mrf.mxu3 }
 0x1b3   :  { %v1497_v25 = vadd.f32 %v1496_v30, %v1473_v13 }
 0x1b4   :  { %v1555_v26 = vadd.f32 %v1542_v20, %v24_v18 }
 0x1b5   :  { %v1521_v22 = vadd.f32 %v1520_v53, %v1497_v25 }
 0x1b6   :  { %1562 = vst.msk [vmem:[%s3399_s2 + $0x8] sm:$0xff] %vm16_vm1, %v1555_v26 }
 0x1b8   :  { %v1474_v21 = vpop.f32.mrf.mxu1 }
 0x1b9   :  { %v1475_v7 = vadd.f32 %v1474_v21, %v1451_v27  ;;  %v1503_v32 = vpop.f32.mrf.mxu2  ;;  %v1544_v31 = vpop.f32.mrf.mxu0 }
 0x1ba   :  { %v1545_v35 = vadd.f32 %v1544_v31, %v1521_v22  ;;  %v1527_v59 = vpop.f32.mrf.mxu3 }
 0x1bb   :  { %v1499_v40 = vadd.f32 %v1498_v3, %v1475_v7 }
 0x1bc   :  { %v1556_v43 = vadd.f32 %v1545_v35, %v25_v28 }
 0x1bd   :  { %v1523_v48 = vadd.f32 %v1522_v19, %v1499_v40 }
 0x1be   :  { %1563 = vst.msk [vmem:[%s3399_s2 + $0x10] sm:$0xff] %vm16_vm1, %v1556_v43 }
 0x1c0   :  { %v1477_v37 = vpop.f32.mrf.mxu1 }
 0x1c1   :  { %v1478_v11 = vadd.f32 %v1477_v37, %v1454_v34  ;;  %v1549_v46 = vpop.f32.mrf.mxu2  ;;  %v1546_v51 = vpop.f32.mrf.mxu0 }
 0x1c2   :  { %v1547_v54 = vadd.f32 %v1546_v51, %v1523_v48 }
 0x1c3   :  { %v1502_v15 = vadd.f32 %v1501_v14, %v1478_v11 }
 0x1c4   :  { %v1557_v29 = vadd.f32 %v1547_v54, %v26_v41 }
 0x1c5   :  { %v1526_v39 = vadd.f32 %v1525_v42, %v1502_v15 }
 0x1c6   :  { %1564 = vst.msk [vmem:[%s3399_s2 + $0x18] sm:$0xff] %vm16_vm1, %v1557_v29 }
 0x1c7   :  { %v1550_v49 = vadd.f32 %v1549_v46, %v1526_v39 }
 0x1c8   :  { %v1479_v55 = vpop.f32.mrf.mxu1 }
 0x1c9   :  { %v1558_v30 = vadd.f32 %v1550_v49, %v27_v44  ;;  %v1480_v58 = vadd.f32 %v1479_v55, %v1456_v33  ;;  %v1551_v60 = vpop.f32.mrf.mxu2 }
 0x1cb   :  { %1565 = vst.msk [vmem:[%s3399_s2 + $0x20] sm:$0xff] %vm16_vm1, %v1558_v30  ;;  %v1504_v36 = vadd.f32 %v1503_v32, %v1480_v58 }
 0x1cd   :  { %v1528_v57 = vadd.f32 %v1527_v59, %v1504_v36 }
 0x1cf   :  { %v1552_v50 = vadd.f32 %v1551_v60, %v1528_v57 }
 0x1d1   :  { %v1559_v61 = vadd.f32 %v1552_v50, %v28_v56 }
 0x1d3   :  { %1566 = vst.msk [vmem:[%s3399_s2 + $0x28] sm:$0xff] %vm16_vm1, %v1559_v61 }

// kernel: style_loss.5
= control target key start
LH: loop header
LB: loop body
LE: loop exit
PB: predicated region body
PF: predicated region fallthrough
CT: control target
= control target key end

     0   :  { %vm377_vm0 = vcmask 130048   ;;  %vm16_vm1 = vcmask 523264   ;;  %s1423_s1 = inlined_call_operand.vmem [shape: bf16[64,784], index: 1, kind: input, shape index: {}]   ;;  %s1424_s0 = inlined_call_operand.vmem [shape: bf16[64,784], index: 0, kind: input, shape index: {}]   ;;  %s1425_s2 = inlined_call_operand.vmem [shape: f32[64,64], index: 2, kind: output, shape index: {}]  }
   0x1   :  { %v824_v0 = vld [vmem:[%s1423_s1 + $0xa8] sm:$0xf]  ;;  %v906_v1 = vld [vmem:[%s1423_s1 + $0xc0] sm:$0xf0]  ;;  %v903_v2 = vld [vmem:[%s1423_s1 + $0xac] sm:$0xf] }
   0x2   :  { %v825_v3 = vor.u32 %v906_v1, %v824_v0  ;;  %v826_v4 = vld [vmem:[%s1423_s1 + $0xc4] sm:$0xf0]  ;;  %v832_v5 = vld [vmem:[%s1423_s1 + $0xb0] sm:$0xf]  ;;  %v907_v6 = vld [vmem:[%s1423_s1 + $0xc8] sm:$0xf0] }
   0x3   :  { %v829_v7 = vor.u32 %v903_v2, %v826_v4  ;;  %v833_v8 = vor.u32 %v907_v6, %v832_v5  ;;  %v796_v9 = vld [vmem:[%s1423_s1 + $0x70] sm:$0xf]  ;;  %v899_v10 = vld [vmem:[%s1423_s1 + $0x88] sm:$0xf0]  ;;  %v896_v11 = vld [vmem:[%s1423_s1 + $0x74] sm:$0xf] }
   0x4   :  { %406 = vmatpush.bf16.xpose.msra.mxu0 %v825_v3  ;;  %910 = vmatpush.bf16.xpose.msra.mxu3 %v825_v3  ;;  %v798_v12 = vld [vmem:[%s1423_s1 + $0x8c] sm:$0xf0]  ;;  %v804_v13 = vld [vmem:[%s1423_s1 + $0x78] sm:$0xf]  ;;  %v900_v14 = vld [vmem:[%s1423_s1 + $0x90] sm:$0xf0]  ;;  %v797_v15 = vor.u32 %v899_v10, %v796_v9 }
   0x5   :  { %435 = vmatpush.bf16.xpose.msra.mxu1 %v829_v7  ;;  %464 = vmatpush.bf16.xpose.msra.mxu2 %v833_v8  ;;  %v801_v16 = vor.u32 %v896_v11, %v798_v12  ;;  %v805_v17 = vor.u32 %v900_v14, %v804_v13  ;;  %v768_v18 = vld [vmem:[%s1423_s1 + $0x38] sm:$0xf]  ;;  %v892_v19 = vld [vmem:[%s1423_s1 + $0x50] sm:$0xf0]  ;;  %v889_v20 = vld [vmem:[%s1423_s1 + $0x3c] sm:$0xf] }
   0x6   :  { %v770_v21 = vld [vmem:[%s1423_s1 + $0x54] sm:$0xf0]  ;;  %v776_v22 = vld [vmem:[%s1423_s1 + $0x40] sm:$0xf]  ;;  %v893_v23 = vld [vmem:[%s1423_s1 + $0x58] sm:$0xf0]  ;;  %v769_v24 = vor.u32 %v892_v19, %v768_v18 }
   0x7   :  { %v773_v25 = vor.u32 %v889_v20, %v770_v21  ;;  %v777_v26 = vor.u32 %v893_v23, %v776_v22  ;;  %v740_v27 = vld [vmem:[%s1423_s1] sm:$0xf]  ;;  %v909_v29 = vld [vmem:[%s1423_s1 + $0xd8] sm:$0xf0]  ;;  %v882_v31 = vld [vmem:[%s1423_s1 + $0x4] sm:$0xf] }
   0x8   :  { %v848_v28 = vld [vmem:[%s1423_s1 + $0xc0] sm:$0xf]  ;;  %v885_v30 = vld [vmem:[%s1423_s1 + $0x18] sm:$0xf0]  ;;  %v748_v33 = vld [vmem:[%s1423_s1 + $0x8] sm:$0xf] }
   0x9   :  { %v742_v32 = vld [vmem:[%s1423_s1 + $0x1c] sm:$0xf0]  ;;  %v886_v34 = vld [vmem:[%s1423_s1 + $0x20] sm:$0xf0]  ;;  %v904_v35 = vld [vmem:[%s1423_s1 + $0xb4] sm:$0xf]  ;;  %v849_v37 = vor.u32 %v909_v29, %v848_v28  ;;  %v741_v39 = vor.u32 %v885_v30, %v740_v27 }
   0xa   :  { %v834_v36 = vld [vmem:[%s1423_s1 + $0xcc] sm:$0xf0]  ;;  %v840_v38 = vld [vmem:[%s1423_s1 + $0xb8] sm:$0xf]  ;;  %v908_v40 = vld [vmem:[%s1423_s1 + $0xd0] sm:$0xf0]  ;;  %v745_v43 = vor.u32 %v882_v31, %v742_v32  ;;  %v749_v44 = vor.u32 %v886_v34, %v748_v33 }
   0xb   :  { %v905_v41 = vld [vmem:[%s1423_s1 + $0xbc] sm:$0xf]  ;;  %v842_v42 = vld [vmem:[%s1423_s1 + $0xd4] sm:$0xf0]  ;;  %v628_v45 = vld [vmem:[%s1424_s0] sm:$0xf]  ;;  %v837_v47 = vor.u32 %v904_v35, %v834_v36  ;;  %v841_v51 = vor.u32 %v908_v40, %v840_v38 }
   0xc   :  { %407 = vmatpush.bf16.xpose.msra.mxu0 %v797_v15  ;;  %911 = vmatpush.bf16.xpose.msra.mxu3 %v797_v15  ;;  %v857_v46 = vld [vmem:[%s1424_s0 + $0x18] sm:$0xf0]  ;;  %v684_v48 = vld [vmem:[%s1424_s0 + $0x70] sm:$0xf]  ;;  %v871_v49 = vld [vmem:[%s1424_s0 + $0x88] sm:$0xf0]  ;;  %v1050_v52 = vor.u32 %v905_v41, %v842_v42 }
   0xd   :  { %436 = vmatpush.bf16.xpose.msra.mxu1 %v801_v16  ;;  %465 = vmatpush.bf16.xpose.msra.mxu2 %v805_v17  ;;  %v1048_v50 = vsel %vm377_vm0, %v849_v37, 0  ;;  %v854_v53 = vld [vmem:[%s1424_s0 + $0x4] sm:$0xf]  ;;  %v820_v54 = vld [vmem:[%s1423_s1 + $0x88] sm:$0xf]  ;;  %v629_v59 = vor.u32 %v857_v46, %v628_v45  ;;  %v685_v60 = vor.u32 %v871_v49, %v684_v48 }
   0xe   :  { %v902_v55 = vld [vmem:[%s1423_s1 + $0xa0] sm:$0xf0]  ;;  %v630_v56 = vld [vmem:[%s1424_s0 + $0x1c] sm:$0xf0]  ;;  %v636_v57 = vld [vmem:[%s1424_s0 + $0x8] sm:$0xf] }
   0xf   :  { %v858_v58 = vld [vmem:[%s1424_s0 + $0x20] sm:$0xf0]  ;;  %v897_v61 = vld [vmem:[%s1423_s1 + $0x7c] sm:$0xf]  ;;  %v806_v62 = vld [vmem:[%s1423_s1 + $0x94] sm:$0xf0]  ;;  %v821_v0 = vor.u32 %v902_v55, %v820_v54  ;;  %v633_v1 = vor.u32 %v854_v53, %v630_v56 }
  0x10   :  { %v812_v63 = vld [vmem:[%s1423_s1 + $0x80] sm:$0xf]  ;;  %v637_v2 = vor.u32 %v858_v58, %v636_v57  ;;  %v901_v3 = vld [vmem:[%s1423_s1 + $0x98] sm:$0xf0]  ;;  %v898_v4 = vld [vmem:[%s1423_s1 + $0x84] sm:$0xf]  ;;  %v809_v6 = vor.u32 %v897_v61, %v806_v62 }
  0x11   :  { %v814_v5 = vld [vmem:[%s1423_s1 + $0x9c] sm:$0xf0]  ;;  %v813_v7 = vor.u32 %v901_v3, %v812_v63  ;;  %v1091_v8 = vsel %vm377_vm0, %v821_v0, 0  ;;  %v792_v10 = vld [vmem:[%s1423_s1 + $0x50] sm:$0xf] }
  0x12   :  { %v1093_v9 = vor.u32 %v898_v4, %v814_v5  ;;  %v895_v11 = vld [vmem:[%s1423_s1 + $0x68] sm:$0xf0]  ;;  %v890_v12 = vld [vmem:[%s1423_s1 + $0x44] sm:$0xf]  ;;  %v778_v13 = vld [vmem:[%s1423_s1 + $0x5c] sm:$0xf0] }
  0x13   :  { %v784_v14 = vld [vmem:[%s1423_s1 + $0x48] sm:$0xf]  ;;  %v793_v15 = vor.u32 %v895_v11, %v792_v10  ;;  %v894_v16 = vld [vmem:[%s1423_s1 + $0x60] sm:$0xf0]  ;;  %v891_v17 = vld [vmem:[%s1423_s1 + $0x4c] sm:$0xf]  ;;  %v781_v19 = vor.u32 %v890_v12, %v778_v13 }
  0x14   :  { %408 = vmatpush.bf16.xpose.msra.mxu0 %v769_v24  ;;  %912 = vmatpush.bf16.xpose.msra.mxu3 %v769_v24  ;;  %v786_v18 = vld [vmem:[%s1423_s1 + $0x64] sm:$0xf0]  ;;  %v656_v20 = vld [vmem:[%s1424_s0 + $0x38] sm:$0xf]  ;;  %v864_v21 = vld [vmem:[%s1424_s0 + $0x50] sm:$0xf0]  ;;  %v785_v22 = vor.u32 %v894_v16, %v784_v14 }
  0x15   :  { %437 = vmatpush.bf16.xpose.msra.mxu1 %v773_v25  ;;  %466 = vmatpush.bf16.xpose.msra.mxu2 %v777_v26  ;;  %v394_v23 = vsel %vm377_vm0, %v793_v15, 0  ;;  %v789_v24 = vor.u32 %v891_v17, %v786_v18  ;;  %v712_v25 = vld [vmem:[%s1424_s0 + $0xa8] sm:$0xf]  ;;  %v878_v26 = vld [vmem:[%s1424_s0 + $0xc0] sm:$0xf0]  ;;  %v657_v31 = vor.u32 %v864_v21, %v656_v20 }
  0x16   :  { %v861_v27 = vld [vmem:[%s1424_s0 + $0x3c] sm:$0xf]  ;;  %v658_v28 = vld [vmem:[%s1424_s0 + $0x54] sm:$0xf0]  ;;  %v664_v29 = vld [vmem:[%s1424_s0 + $0x40] sm:$0xf]  ;;  %v713_v32 = vor.u32 %v878_v26, %v712_v25 }
  0x17   :  { %v865_v30 = vld [vmem:[%s1424_s0 + $0x58] sm:$0xf0]  ;;  %v883_v33 = vld [vmem:[%s1423_s1 + $0xc] sm:$0xf]  ;;  %v750_v34 = vld [vmem:[%s1423_s1 + $0x24] sm:$0xf0]  ;;  %v661_v35 = vor.u32 %v861_v27, %v658_v28 }
  0x18   :  { %v665_v36 = vor.u32 %v865_v30, %v664_v29  ;;  %v756_v37 = vld [vmem:[%s1423_s1 + $0x10] sm:$0xf]  ;;  %v887_v38 = vld [vmem:[%s1423_s1 + $0x28] sm:$0xf0]  ;;  %v764_v41 = vld [vmem:[%s1423_s1 + $0x18] sm:$0xf] }
  0x19   :  { %v757_v40 = vor.u32 %v887_v38, %v756_v37  ;;  %v888_v42 = vld [vmem:[%s1423_s1 + $0x30] sm:$0xf0]  ;;  %v758_v45 = vld [vmem:[%s1423_s1 + $0x2c] sm:$0xf0]  ;;  %v855_v49 = vld [vmem:[%s1424_s0 + $0xc] sm:$0xf] }
  0x1a   :  { %v868_v48 = vld [vmem:[%s1424_s0 + $0x74] sm:$0xf]  ;;  %v686_v53 = vld [vmem:[%s1424_s0 + $0x8c] sm:$0xf0]  ;;  %v692_v54 = vld [vmem:[%s1424_s0 + $0x78] sm:$0xf] }
  0x1b   :  { %v872_v55 = vld [vmem:[%s1424_s0 + $0x90] sm:$0xf0]  ;;  %v689_v58 = vor.u32 %v868_v48, %v686_v53  ;;  %v862_v61 = vld [vmem:[%s1424_s0 + $0x44] sm:$0xf]  ;;  %v666_v62 = vld [vmem:[%s1424_s0 + $0x5c] sm:$0xf0] }
  0x1c   :  { %409 = vmatpush.bf16.xpose.msra.mxu0 %v741_v39  ;;  %913 = vmatpush.bf16.xpose.msra.mxu3 %v741_v39  ;;  %v753_v39 = vor.u32 %v883_v33, %v750_v34  ;;  %v672_v63 = vld [vmem:[%s1424_s0 + $0x48] sm:$0xf]  ;;  %v866_v0 = vld [vmem:[%s1424_s0 + $0x60] sm:$0xf0]  ;;  %v879_v3 = vld [vmem:[%s1424_s0 + $0xc8] sm:$0xf0]  ;;  %v669_v4 = vor.u32 %v862_v61, %v666_v62 }
  0x1d   :  { %438 = vmatpush.bf16.xpose.msra.mxu1 %v745_v43  ;;  %467 = vmatpush.bf16.xpose.msra.mxu2 %v749_v44  ;;  %v884_v43 = vld [vmem:[%s1423_s1 + $0x14] sm:$0xf]  ;;  %v765_v44 = vor.u32 %v888_v42, %v764_v41  ;;  %v673_v5 = vor.u32 %v866_v0, %v672_v63  ;;  %v700_v10 = vld [vmem:[%s1424_s0 + $0x80] sm:$0xf]  ;;  %v873_v11 = vld [vmem:[%s1424_s0 + $0x98] sm:$0xf0] }
  0x1e   :  { %v761_v46 = vor.u32 %v884_v43, %v758_v45  ;;  %v863_v12 = vld [vmem:[%s1424_s0 + $0x4c] sm:$0xf]  ;;  %v674_v13 = vld [vmem:[%s1424_s0 + $0x64] sm:$0xf0]  ;;  %v652_v14 = vld [vmem:[%s1424_s0 + $0x18] sm:$0xf]  ;;  %v701_v17 = vor.u32 %v873_v11, %v700_v10 }
  0x1f   :  { %v860_v15 = vld [vmem:[%s1424_s0 + $0x30] sm:$0xf0]  ;;  %v677_v18 = vor.u32 %v863_v12, %v674_v13  ;;  %v722_v21 = vld [vmem:[%s1424_s0 + $0xcc] sm:$0xf0]  ;;  %v702_v25 = vld [vmem:[%s1424_s0 + $0x9c] sm:$0xf0] }
  0x20   :  { %v876_v20 = vld [vmem:[%s1424_s0 + $0xb4] sm:$0xf]  ;;  %v680_v26 = vld [vmem:[%s1424_s0 + $0x50] sm:$0xf]  ;;  %v867_v27 = vld [vmem:[%s1424_s0 + $0x68] sm:$0xf0] }
  0x21   :  { %v725_v28 = vor.u32 %v876_v20, %v722_v21  ;;  %v646_v33 = vld [vmem:[%s1424_s0 + $0x2c] sm:$0xf0]  ;;  %v877_v34 = vld [vmem:[%s1424_s0 + $0xbc] sm:$0xf]  ;;  %v730_v37 = vld [vmem:[%s1424_s0 + $0xd4] sm:$0xf0] }
  0x22   :  { %v708_v38 = vld [vmem:[%s1424_s0 + $0x88] sm:$0xf]  ;;  %v733_v42 = vor.u32 %v877_v34, %v730_v37  ;;  %v923_v10 = vmov 0.0  }
  0x23   :  { %410 = vmatmul.bf16.vlgmr.msra.gmra.mxu0 %v629_v59  ;;  %420 = vmatmul.bf16.vlgmr.msra.gmra.mxu3 %v685_v60  ;;  %v693_v59 = vor.u32 %v872_v55, %v692_v54  ;;  %v875_v60 = vld [vmem:[%s1424_s0 + $0xac] sm:$0xf]  ;;  %19 = vst.msk [vmem:[%s1425_s2 + $0x10] sm:$0xff] %vm16_vm1, %v923_v10 }
  0x24   :  { %493 = vmatpush.bf16.xpose.msrb.mxu3 %v837_v47  ;;  %522 = vmatpush.bf16.xpose.msrb.mxu0 %v841_v51  ;;  %v391_v47 = vsel %vm377_vm0, %v765_v44, 0  ;;  %v638_v51 = vld [vmem:[%s1424_s0 + $0x24] sm:$0xf0]  ;;  %17 = vst.msk [vmem:[%s1425_s2] sm:$0xff] %vm16_vm1, %v923_v10 }
  0x25   :  { %580 = vmatpush.bf16.xpose.msrb.mxu2 %v1048_v50  ;;  %914 = vmatpush.bf16.xpose.msrb.mxu1 %v1050_v52  ;;  %v641_v56 = vor.u32 %v855_v49, %v638_v51  ;;  %18 = vst.msk [vmem:[%s1425_s2 + $0x8] sm:$0xff] %vm16_vm1, %v923_v10 }
  0x26   :  { %439 = vmatmul.bf16.vlgmr.msra.gmra.mxu1 %v633_v1  ;;  %468 = vmatmul.bf16.vlgmr.msra.gmra.mxu2 %v637_v2  ;;  %v714_v1 = vld [vmem:[%s1424_s0 + $0xc4] sm:$0xf0]  ;;  %v720_v2 = vld [vmem:[%s1424_s0 + $0xb0] sm:$0xf]  ;;  %20 = vst.msk [vmem:[%s1425_s2 + $0x18] sm:$0xff] %vm16_vm1, %v923_v10 }
  0x27   :  { %21 = vst.msk [vmem:[%s1425_s2 + $0x20] sm:$0xff] %vm16_vm1, %v923_v10 }
  0x28   :  { %22 = vst.msk [vmem:[%s1425_s2 + $0x28] sm:$0xff] %vm16_vm1, %v923_v10 }
  0x29   :  { %23 = vst.msk [vmem:[%s1425_s2 + $0x30] sm:$0xff] %vm16_vm1, %v923_v10 }
  0x2a   :  { %24 = vst.msk [vmem:[%s1425_s2 + $0x38] sm:$0xff] %vm16_vm1, %v923_v10 }
  0x2c   :  { %494 = vmatpush.bf16.xpose.msrb.mxu3 %v809_v6  ;;  %523 = vmatpush.bf16.xpose.msrb.mxu0 %v813_v7  ;;  %v717_v6 = vor.u32 %v875_v60, %v714_v1  ;;  %v721_v7 = vor.u32 %v879_v3, %v720_v2 }
  0x2d   :  { %581 = vmatpush.bf16.xpose.msrb.mxu2 %v1091_v8  ;;  %915 = vmatpush.bf16.xpose.msrb.mxu1 %v1093_v9 }
  0x33   :  { %415 = vmatmul.bf16.gmra.mxu0 %v657_v31  ;;  %425 = vmatmul.bf16.gmra.mxu3 %v713_v32  ;;  %v681_v31 = vor.u32 %v867_v27, %v680_v26  ;;  %v856_v32 = vld [vmem:[%s1424_s0 + $0x14] sm:$0xf] }
  0x34   :  { %495 = vmatpush.bf16.xpose.msrb.mxu3 %v781_v19  ;;  %524 = vmatpush.bf16.xpose.msrb.mxu0 %v785_v22  ;;  %v653_v19 = vor.u32 %v860_v15, %v652_v14  ;;  %v728_v22 = vld [vmem:[%s1424_s0 + $0xb8] sm:$0xf] }
  0x35   :  { %582 = vmatpush.bf16.xpose.msrb.mxu2 %v394_v23  ;;  %916 = vmatpush.bf16.xpose.msrb.mxu1 %v789_v24 }
  0x36   :  { %444 = vmatmul.bf16.gmra.mxu1 %v661_v35  ;;  %473 = vmatmul.bf16.gmra.mxu2 %v665_v36  ;;  %v736_v35 = vld [vmem:[%s1424_s0 + $0xc0] sm:$0xf]  ;;  %v881_v36 = vld [vmem:[%s1424_s0 + $0xd8] sm:$0xf0] }
  0x37   :  { %v737_v41 = vor.u32 %v881_v36, %v736_v35  ;;  %v27_v35 = vld [vmem:[%s1425_s2 + $0x10] sm:$0xff] }
  0x3c   :  { %496 = vmatpush.bf16.xpose.msrb.mxu3 %v753_v39  ;;  %525 = vmatpush.bf16.xpose.msrb.mxu0 %v757_v40  ;;  %v874_v39 = vld [vmem:[%s1424_s0 + $0xa0] sm:$0xf0]  ;;  %v649_v40 = vor.u32 %v856_v32, %v646_v33 }
  0x3d   :  { %583 = vmatpush.bf16.xpose.msrb.mxu2 %v391_v47  ;;  %917 = vmatpush.bf16.xpose.msrb.mxu1 %v761_v46  ;;  %v709_v43 = vor.u32 %v874_v39, %v708_v38 }
  0x43   :  { %497 = vmatmul.bf16.vlgmr.msrb.gmra.mxu3 %v641_v56 }
  0x44   :  { %918 = vmatpush.bf16.xpose.msra.mxu3 %v1048_v50  ;;  %551 = vmatpush.bf16.xpose.msra.mxu0 %v1050_v52  ;;  %v644_v50 = vld [vmem:[%s1424_s0 + $0x10] sm:$0xf]  ;;  %v859_v52 = vld [vmem:[%s1424_s0 + $0x28] sm:$0xf0] }
  0x45   :  { %v645_v57 = vor.u32 %v859_v52, %v644_v50 }
  0x46   :  { %449 = vmatmul.bf16.gmra.mxu1 %v689_v58  ;;  %478 = vmatmul.bf16.gmra.mxu2 %v693_v59 }
  0x47   :  { %526 = vmatmul.bf16.vlgmr.msrb.gmra.mxu0 %v645_v57 }
  0x4c   :  { %919 = vmatpush.bf16.xpose.msra.mxu3 %v1091_v8  ;;  %552 = vmatpush.bf16.xpose.msra.mxu0 %v1093_v9  ;;  %v869_v8 = vld [vmem:[%s1424_s0 + $0x7c] sm:$0xf]  ;;  %v694_v9 = vld [vmem:[%s1424_s0 + $0x94] sm:$0xf0] }
  0x4d   :  { %v697_v16 = vor.u32 %v869_v8, %v694_v9 }
  0x53   :  { %502 = vmatmul.bf16.gmra.mxu3 %v669_v4 }
  0x54   :  { %920 = vmatpush.bf16.xpose.msra.mxu3 %v394_v23  ;;  %553 = vmatpush.bf16.xpose.msra.mxu0 %v789_v24  ;;  %v880_v23 = vld [vmem:[%s1424_s0 + $0xd0] sm:$0xf0]  ;;  %v870_v24 = vld [vmem:[%s1424_s0 + $0x84] sm:$0xf] }
  0x55   :  { %v729_v29 = vor.u32 %v880_v23, %v728_v22  ;;  %v705_v30 = vor.u32 %v870_v24, %v702_v25 }
  0x56   :  { %454 = vmatmul.bf16.gmra.mxu1 %v717_v6  ;;  %483 = vmatmul.bf16.gmra.mxu2 %v721_v7 }
  0x57   :  { %531 = vmatmul.bf16.gmra.mxu0 %v673_v5 }
  0x5c   :  { %921 = vmatpush.bf16.xpose.msra.mxu3 %v391_v47  ;;  %554 = vmatpush.bf16.xpose.msra.mxu0 %v761_v46 }
  0x63   :  { %507 = vmatmul.bf16.gmra.mxu3 %v697_v16 }
  0x66   :  { %560 = vmatmul.bf16.vlgmr.msrb.gmra.mxu1 %v677_v18  ;;  %850 = vmatmul.msk.bf16.vlgmr.msrb.gmra.mxu2 %vm377_vm0, %v653_v19 }
  0x67   :  { %536 = vmatmul.bf16.gmra.mxu0 %v701_v17 }
  0x73   :  { %512 = vmatmul.bf16.gmra.mxu3 %v725_v28 }
  0x76   :  { %565 = vmatmul.bf16.gmra.mxu1 %v705_v30  ;;  %851 = vmatmul.msk.bf16.gmra.mxu2 %vm377_vm0, %v681_v31 }
  0x77   :  { %541 = vmatmul.bf16.gmra.mxu0 %v729_v29 }
  0x83   :  { %853 = vmatmul.msk.bf16.vlgmr.msra.gmra.mxu3 %vm377_vm0, %v737_v41 }
  0x86   :  { %570 = vmatmul.bf16.gmra.mxu1 %v733_v42  ;;  %852 = vmatmul.msk.bf16.gmra.mxu2 %vm377_vm0, %v709_v43 }
  0x87   :  { %555 = vmatmul.bf16.vlgmr.msra.gmra.mxu0 %v649_v40 }
  0xa0   :  { %v411_v44 = vpop.f32.mrf.mxu0 }
  0xa3   :  { %v440_v45 = vpop.f32.mrf.mxu1 }
  0xa4   :  { %v441_v46 = vadd.f32 %v440_v45, %v411_v44 }
  0xa6   :  { %v1299_v47 = vpop.f32.mrf.mxu3 }
  0xa8   :  { %v413_v51 = vpop.f32.mrf.mxu0 }
  0xa9   :  { %v469_v48 = vpop.f32.mrf.mxu2 }
  0xaa   :  { %v1301_v49 = vadd.f32 %v469_v48, %v441_v46 }
  0xab   :  { %v442_v50 = vpop.f32.mrf.mxu1 }
  0xac   :  { %v443_v52 = vadd.f32 %v442_v50, %v413_v51 }
  0xae   :  { %v1303_v53 = vpop.f32.mrf.mxu3 }
  0xb0   :  { %v416_v56 = vpop.f32.mrf.mxu0 }
  0xb1   :  { %v471_v54 = vpop.f32.mrf.mxu2 }
  0xb2   :  { %v1305_v55 = vadd.f32 %v471_v54, %v443_v52  ;;  %v28_v54 = vld [vmem:[%s1425_s2 + $0x18] sm:$0xff] }
  0xb3   :  { %v445_v57 = vpop.f32.mrf.mxu1 }
  0xb4   :  { %v446_v23 = vadd.f32 %v445_v57, %v416_v56 }
  0xb6   :  { %v426_v58 = vpop.f32.mrf.mxu3 }
  0xb8   :  { %v418_v60 = vpop.f32.mrf.mxu0 }
  0xb9   :  { %v474_v59 = vpop.f32.mrf.mxu2 }
  0xba   :  { %v475_v24 = vadd.f32 %v474_v59, %v446_v23  ;;  %v26_v23 = vld [vmem:[%s1425_s2 + $0x8] sm:$0xff] }
  0xbb   :  { %v447_v61 = vpop.f32.mrf.mxu1 }
  0xbc   :  { %v448_v30 = vadd.f32 %v447_v61, %v418_v60 }
  0xbe   :  { %v1307_v62 = vpop.f32.mrf.mxu3 }
  0xc1   :  { %v476_v63 = vpop.f32.mrf.mxu2 }
  0xc2   :  { %v477_v32 = vadd.f32 %v476_v63, %v448_v30  ;;  %v25_v63 = vld [vmem:[%s1425_s2] sm:$0xff] }
  0xc3   :  { %v450_v1 = vpop.f32.mrf.mxu1 }
  0xc4   :  { %v1309_v0 = vpop.f32.mrf.mxu0  ;;  %v451_v44 = vadd.f32 %v450_v1, %v1299_v47 }
  0xc6   :  { %v498_v2 = vpop.f32.mrf.mxu3 }
  0xc7   :  { %v499_v42 = vadd.f32 %v498_v2, %v1301_v49 }
  0xc9   :  { %v479_v3 = vpop.f32.mrf.mxu2  ;;  %v528_v49 = vadd.f32 %v1309_v0, %v499_v42 }
  0xca   :  { %v480_v48 = vadd.f32 %v479_v3, %v451_v44 }
  0xcb   :  { %v1313_v5 = vpop.f32.mrf.mxu1 }
  0xcc   :  { %v1311_v4 = vpop.f32.mrf.mxu0  ;;  %v453_v0 = vadd.f32 %v1313_v5, %v1303_v53  ;;  %v29_v53 = vld [vmem:[%s1425_s2 + $0x20] sm:$0xff] }
  0xce   :  { %v1315_v6 = vpop.f32.mrf.mxu3 }
  0xcf   :  { %v501_v1 = vadd.f32 %v1315_v6, %v1305_v55  ;;  %v31_v55 = vld [vmem:[%s1425_s2 + $0x30] sm:$0xff] }
  0xd1   :  { %v1317_v7 = vpop.f32.mrf.mxu2 }
  0xd3   :  { %v455_v9 = vpop.f32.mrf.mxu1 }
  0xd4   :  { %v532_v8 = vpop.f32.mrf.mxu0  ;;  %v456_v43 = vadd.f32 %v455_v9, %v426_v58 }
  0xd6   :  { %v503_v11 = vpop.f32.mrf.mxu3 }
  0xd7   :  { %v504_v27 = vadd.f32 %v503_v11, %v475_v24 }
  0xd9   :  { %v484_v12 = vpop.f32.mrf.mxu2  ;;  %v533_v31 = vadd.f32 %v532_v8, %v504_v27 }
  0xda   :  { %v485_v46 = vadd.f32 %v484_v12, %v456_v43 }
  0xdb   :  { %v457_v14 = vpop.f32.mrf.mxu1 }
  0xdc   :  { %v534_v13 = vpop.f32.mrf.mxu0  ;;  %v458_v2 = vadd.f32 %v457_v14, %v1307_v62 }
  0xde   :  { %v505_v15 = vpop.f32.mrf.mxu3 }
  0xdf   :  { %v506_v37 = vadd.f32 %v505_v15, %v477_v32 }
  0xe1   :  { %v486_v16 = vpop.f32.mrf.mxu2  ;;  %v535_v45 = vadd.f32 %v534_v13, %v506_v37  ;;  %v482_v13 = vadd.f32 %v1317_v7, %v453_v0  ;;  %v530_v7 = vadd.f32 %v1311_v4, %v501_v1 }
  0xe2   :  { %v487_v10 = vadd.f32 %v486_v16, %v458_v2 }
  0xe3   :  { %v561_v18 = vpop.f32.mrf.mxu1 }
  0xe4   :  { %v537_v17 = vpop.f32.mrf.mxu0  ;;  %v562_v33 = vadd.f32 %v561_v18, %v533_v31  ;;  %v32_v31 = vld [vmem:[%s1425_s2 + $0x38] sm:$0xff] }
  0xe6   :  { %v508_v19 = vpop.f32.mrf.mxu3 }
  0xe7   :  { %v509_v57 = vadd.f32 %v508_v19, %v480_v48 }
  0xe9   :  { %v585_v20 = vpop.f32.mrf.mxu2  ;;  %v538_v9 = vadd.f32 %v537_v17, %v509_v57 }
  0xeb   :  { %v563_v22 = vpop.f32.mrf.mxu1 }
  0xec   :  { %v1351_v21 = vpop.f32.mrf.mxu0  ;;  %v564_v51 = vadd.f32 %v563_v22, %v535_v45 }
  0xee   :  { %v510_v25 = vpop.f32.mrf.mxu3 }
  0xef   :  { %v511_v16 = vadd.f32 %v510_v25, %v482_v13 }
  0xf1   :  { %v1353_v26 = vpop.f32.mrf.mxu2  ;;  %v540_v4 = vadd.f32 %v1351_v21, %v511_v16  ;;  %v30_v21 = vld [vmem:[%s1425_s2 + $0x28] sm:$0xff] }
  0xf3   :  { %v566_v29 = vpop.f32.mrf.mxu1 }
  0xf4   :  { %v542_v28 = vpop.f32.mrf.mxu0  ;;  %v567_v15 = vadd.f32 %v566_v29, %v538_v9 }
  0xf6   :  { %v513_v34 = vpop.f32.mrf.mxu3 }
  0xf7   :  { %v514_v52 = vadd.f32 %v513_v34, %v485_v46 }
  0xf9   :  { %v590_v36 = vpop.f32.mrf.mxu2  ;;  %v543_v8 = vadd.f32 %v542_v28, %v514_v52 }
  0xfa   :  { %v591_v38 = vadd.f32 %v590_v36, %v562_v33 }
  0xfb   :  { %v568_v40 = vpop.f32.mrf.mxu1 }
  0xfc   :  { %v544_v39 = vpop.f32.mrf.mxu0  ;;  %v607_v41 = vadd.f32 %v591_v38, %v27_v35  ;;  %v569_v30 = vadd.f32 %v568_v40, %v540_v4 }
  0xfe   :  { %616 = vst.msk [vmem:[%s1425_s2 + $0x10] sm:$0xff] %vm16_vm1, %v607_v41  ;;  %v515_v50 = vpop.f32.mrf.mxu3 }
  0xff   :  { %v516_v6 = vadd.f32 %v515_v50, %v487_v10 }
 0x101   :  { %v592_v56 = vpop.f32.mrf.mxu2  ;;  %v545_v28 = vadd.f32 %v544_v39, %v516_v6 }
 0x102   :  { %v593_v47 = vadd.f32 %v592_v56, %v564_v51 }
 0x103   :  { %v571_v60 = vpop.f32.mrf.mxu1 }
 0x104   :  { %v556_v58 = vpop.f32.mrf.mxu0  ;;  %v608_v61 = vadd.f32 %v593_v47, %v28_v54  ;;  %v572_v12 = vadd.f32 %v571_v60, %v543_v8 }
 0x105   :  { %v557_v59 = vadd.f32 %v556_v58, %v528_v49 }
 0x106   :  { %617 = vst.msk [vmem:[%s1425_s2 + $0x18] sm:$0xff] %vm16_vm1, %v608_v61  ;;  %v600_v62 = vpop.f32.mrf.mxu3 }
 0x107   :  { %v586_v3 = vadd.f32 %v585_v20, %v557_v59  ;;  %v601_v14 = vadd.f32 %v600_v62, %v572_v12 }
 0x109   :  { %v605_v11 = vadd.f32 %v586_v3, %v25_v63  ;;  %v595_v5 = vpop.f32.mrf.mxu2  ;;  %v611_v19 = vadd.f32 %v601_v14, %v31_v55 }
 0x10a   :  { %v596_v17 = vadd.f32 %v595_v5, %v567_v15 }
 0x10b   :  { %614 = vst.msk [vmem:[%s1425_s2] sm:$0xff] %vm16_vm1, %v605_v11  ;;  %v573_v24 = vpop.f32.mrf.mxu1 }
 0x10c   :  { %v558_v18 = vpop.f32.mrf.mxu0  ;;  %v609_v22 = vadd.f32 %v596_v17, %v29_v53  ;;  %620 = vst.msk [vmem:[%s1425_s2 + $0x30] sm:$0xff] %vm16_vm1, %v611_v19  ;;  %v574_v29 = vadd.f32 %v573_v24, %v545_v28 }
 0x10d   :  { %v559_v20 = vadd.f32 %v558_v18, %v530_v7 }
 0x10e   :  { %618 = vst.msk [vmem:[%s1425_s2 + $0x20] sm:$0xff] %vm16_vm1, %v609_v22  ;;  %v602_v32 = vpop.f32.mrf.mxu3 }
 0x10f   :  { %v588_v27 = vadd.f32 %v1353_v26, %v559_v20  ;;  %v603_v33 = vadd.f32 %v602_v32, %v574_v29 }
 0x111   :  { %v606_v25 = vadd.f32 %v588_v27, %v26_v23  ;;  %v597_v26 = vpop.f32.mrf.mxu2  ;;  %v612_v35 = vadd.f32 %v603_v33, %v32_v31 }
 0x112   :  { %v598_v34 = vadd.f32 %v597_v26, %v569_v30 }
 0x113   :  { %615 = vst.msk [vmem:[%s1425_s2 + $0x8] sm:$0xff] %vm16_vm1, %v606_v25 }
 0x114   :  { %v610_v36 = vadd.f32 %v598_v34, %v30_v21  ;;  %621 = vst.msk [vmem:[%s1425_s2 + $0x38] sm:$0xff] %vm16_vm1, %v612_v35 }
 0x116   :  { %619 = vst.msk [vmem:[%s1425_s2 + $0x28] sm:$0xff] %vm16_vm1, %v610_v36 }

</bundles_post_ra>
